<compile_context>
chip_gen: v7x
topology: tpu7x:2x2x1
jax: 0.10.0
libtpu: 0.0.40
codegen_flags: <defaults>
</compile_context>

<pallas_src>
import math
import functools

import numpy as np
import jax
import jax.numpy as jnp
from jax import lax
from jax.experimental import pallas as pl
from jax.experimental.pallas import tpu as pltpu

_LN_EPS = 1e-6
_MASK_NEG = -1e12


# ----------------------------- shared math helpers ---------------------------

def _layer_norm(v, g, b, eps=_LN_EPS):
    mu = jnp.mean(v, axis=-1, keepdims=True)
    var = jnp.mean((v - mu) ** 2, axis=-1, keepdims=True)
    return (v - mu) * lax.rsqrt(var + eps) * g + b


# ----------------------------- in-kernel math --------------------------------

def _erf_poly(z):
    # Abramowitz & Stegun 7.1.26 (max abs err 1.5e-7) — exp + approx reciprocal
    # only, so the transcendental work lands on the EUP slot.
    a1, a2, a3, a4, a5 = 0.254829592, -0.284496736, 1.421413741, -1.453152027, 1.061405429
    p = 0.3275911
    az = jnp.abs(z)
    t = pl.reciprocal(1.0 + p * az, approx=True)
    poly = t * (a1 + t * (a2 + t * (a3 + t * (a4 + t * a5))))
    y = 1.0 - poly * jnp.exp(-az * az)
    return jnp.where(z >= 0.0, y, -y)


def _gelu_exact(x):
    # PyTorch nn.GELU() default: 0.5 * x * (1 + erf(x / sqrt(2)))
    return 0.5 * x * (1.0 + _erf_poly(x * (1.0 / math.sqrt(2.0))))


def _silu(x):
    # x * sigmoid(x); division -> EUP approx reciprocal.
    return x * pl.reciprocal(1.0 + jnp.exp(-x), approx=True)


# --------------------------------- kernel ------------------------------------

def encoder_atom_kernel(x_q_ref, x_kv_ref, bias_ref,
                        wq_ref, bq_ref, wk_ref, bk_ref, wv_ref, bv_ref,
                        ws1_ref, bs1_ref, ws2_ref, bs2_ref, g1_ref, be1_ref,
                        wf1_ref, bf1_ref, wf2_ref, bf2_ref, g2_ref, be2_ref,
                        o_ref, *, num_heads, mm_dtype):
    H = num_heads
    xq = x_q_ref[0].astype(jnp.float32)     # [Tq, D] query rows of this tile
    xkv = x_kv_ref[0].astype(jnp.float32)   # [N,  D] all rows (keys/values)
    tq, D = xq.shape
    n = xkv.shape[0]

    xq_mm = xq.astype(mm_dtype)
    xkv_mm = xkv.astype(mm_dtype)

    # Head-batched projections.  Weight refs are head-major [H, D, d_k]; the
    # 1/sqrt(d_k) scale is already folded into wq/bq by the wrapper.
    proj_dims = (((2,), (1,)), ((0,), (0,)))
    xq_b = jnp.broadcast_to(xq_mm[None], (H, tq, D))
    xkv_b = jnp.broadcast_to(xkv_mm[None], (H, n, D))
    qh = lax.dot_general(xq_b, wq_ref[...], proj_dims,
                         preferred_element_type=jnp.float32) + bq_ref[...]
    kh = lax.dot_general(xkv_b, wk_ref[...], proj_dims,
                         preferred_element_type=jnp.float32) + bk_ref[...]
    vh = lax.dot_general(xkv_b, wv_ref[...], proj_dims,
                         preferred_element_type=jnp.float32) + bv_ref[...]

    # scores[h, q, k]; additive bias already carries the kNN mask (-1e12).
    s = lax.dot_general(qh.astype(mm_dtype), kh.astype(mm_dtype),
                        (((2,), (2,)), ((0,), (0,))),
                        preferred_element_type=jnp.float32)          # [H, Tq, N]
    s = s + bias_ref[0]          # [Hb, Tq, N]; broadcasts over heads if Hb == 1

    # softmax over keys (attn_dropout is identity in eval mode)
    s = s - jnp.max(s, axis=-1, keepdims=True)
    e = jnp.exp(s)
    probs = e * pl.reciprocal(jnp.sum(e, axis=-1, keepdims=True), approx=True)

    ctx = lax.dot_general(probs.astype(mm_dtype), vh.astype(mm_dtype),
                          (((2,), (1,)), ((0,), (0,))),
                          preferred_element_type=jnp.float32)        # [H, Tq, d_k]

    # scale_linear: first Linear folded over heads (msg @ Ws1 == sum_h ctx_h @ Ws1_h)
    h1 = lax.dot_general(ctx.astype(mm_dtype), ws1_ref[...],
                         (((2,), (1,)), ((0,), (0,))),
                         preferred_element_type=jnp.float32)         # [H, Tq, D]
    h1 = jnp.sum(h1, axis=0) + bs1_ref[...]
    h1 = _silu(h1)
    attn_out = jnp.dot(h1.astype(mm_dtype), ws2_ref[...],
                       preferred_element_type=jnp.float32) + bs2_ref[...]
    y = _layer_norm(attn_out + xq, g1_ref[...], be1_ref[...])

    # PositionWiseFeedForward: fc1 -> exact GELU -> fc2, residual, LN
    f = jnp.dot(y.astype(mm_dtype), wf1_ref[...],
                preferred_element_type=jnp.float32) + bf1_ref[...]
    f = _gelu_exact(f)
    f = jnp.dot(f.astype(mm_dtype), wf2_ref[...],
                preferred_element_type=jnp.float32) + bf2_ref[...]
    o_ref[0] = _layer_norm(f + y, g2_ref[...], be2_ref[...]).astype(o_ref.dtype)


# ------------------------------- JAX glue ------------------------------------

def build_knn_mask(dist, n_full, knn_ratio=0.3):
    """kNN mask construction of MultiScaleAttention (use_super_node=True)."""
    B = dist.shape[0]
    n = dist.shape[-1] + 1
    assert n == n_full
    d2 = jnp.ones((B, n, n), dist.dtype)
    d2 = d2.at[:, 1:, 1:].set(dist)
    d2 = d2.at[:, 0, :].set(0.0)
    d2 = d2.at[:, :, 0].set(0.0)
    k_nn = max(1, int(knn_ratio * n_full))
    # NOTE: tie-breaking on exactly-equal distances may differ from torch.topk.
    _, idx = jax.lax.top_k(-d2, k_nn)                      # smallest-k distances
    one_hot = jax.nn.one_hot(idx, n, dtype=jnp.float32)    # [B, n, k_nn, n]
    mask = jnp.max(one_hot, axis=-2) > 0.0
    mask = mask.at[:, 0, :].set(True)
    mask = mask.at[:, :, 0].set(True)
    return mask.astype(jnp.float32)


def _head_major(w, b, H, d_k, scale, dtype):
    """[D, H*d_k] weight / [1, H*d_k] bias -> head-major [H, D, d_k] / [H, 1, d_k]."""
    D = w.shape[0]
    wh = (w * scale).reshape(D, H, d_k).transpose(1, 0, 2).astype(dtype)
    bh = (b * scale).reshape(1, H, d_k).transpose(1, 0, 2).astype(jnp.float32)
    return wh, bh


def _choose_tq(N, max_tq=256):
    if N <= max_tq:
        return N
    for tq in range(max_tq, 7, -8):        # multiples of 8, descending
        if N % tq == 0:
            return tq
    return N                               # fallback: untiled queries


def encoder_atom_layer(x, dist, params, attn_bias=None, attn_mask=None,
                       num_heads=4, knn_ratio=0.3, matmul_dtype=jnp.float32,
                       tq_max=256, single_buffer_weights=True):
    """Forward of the fused block. `attn_mask` is accepted but unused (as in PyTorch)."""
    del attn_mask
    B, N, D = x.shape
    assert D % num_heads == 0
    d_k = D // num_heads
    F = params['wf1'].shape[1]
    mm_dtype = jnp.dtype(matmul_dtype)

    # kNN mask -> additive bias (0 keep / -1e12 drop), pre-merged with attn_bias.
    # With no attn_bias the head dim stays 1 (no B*H*N*N zeros materialized).
    mask = build_knn_mask(dist, N, knn_ratio)                           # [B, N, N]
    mask_add = jnp.where(mask > 0.5, 0.0, _MASK_NEG).astype(jnp.float32)
    if attn_bias is None:
        bias = mask_add[:, None]                                        # [B, 1, N, N]
    else:
        bias = attn_bias.astype(jnp.float32) + mask_add[:, None]        # [B, H, N, N]
    Hb = bias.shape[1]

    inv_sqrt_dk = 1.0 / math.sqrt(d_k)
    wq, bq = _head_major(params['wq'], params['bq'], num_heads, d_k, inv_sqrt_dk, mm_dtype)
    wk, bk = _head_major(params['wk'], params['bk'], num_heads, d_k, 1.0, mm_dtype)
    wv, bv = _head_major(params['wv'], params['bv'], num_heads, d_k, 1.0, mm_dtype)
    ws1 = params['ws1'].reshape(num_heads, d_k, D).astype(mm_dtype)     # [H, d_k, D]
    weights = [wq, bq, wk, bk, wv, bv,
               ws1, params['bs1'], params['ws2'].astype(mm_dtype), params['bs2'],
               params['g1'], params['be1'],
               params['wf1'].astype(mm_dtype), params['bf1'],
               params['wf2'].astype(mm_dtype), params['bf2'],
               params['g2'], params['be2']]

    tq = _choose_tq(N, tq_max)
    grid = (B, N // tq)

    kernel = functools.partial(encoder_atom_kernel, num_heads=num_heads, mm_dtype=mm_dtype)

    flops = 2 * B * N * D * (5 * D + 2 * N + 2 * F)
    transcendentals = B * N * (num_heads * N + D + F)
    w_bytes = sum(int(np.prod(w.shape)) * jnp.dtype(w.dtype).itemsize for w in weights)
    bytes_accessed = int(3 * x.size * x.dtype.itemsize + bias.size * 4 + B * w_bytes)
    cost = pl.CostEstimate(flops=int(flops), transcendentals=int(transcendentals),
                           bytes_accessed=bytes_accessed)

    def _weight_spec(w, single_buffer):
        idx = lambda b, q, nd=w.ndim: (0,) * nd
        if single_buffer:
            # grid-invariant blocks: a second pipeline buffer is dead VMEM
            return pl.BlockSpec(w.shape, idx, pipeline_mode=pl.Buffered(1))
        return pl.BlockSpec(w.shape, idx)

    def _build(single_buffer):
        in_specs = [
            pl.BlockSpec((1, tq, D), lambda b, q: (b, q, 0)),            # x (query rows)
            pl.BlockSpec((1, N, D), lambda b, q: (b, 0, 0)),             # x (keys/values)
            pl.BlockSpec((1, Hb, tq, N), lambda b, q: (b, 0, q, 0)),     # additive bias
        ] + [_weight_spec(w, single_buffer) for w in weights]
        return pl.pallas_call(
            kernel,
            out_shape=jax.ShapeDtypeStruct((B, N, D), x.dtype),
            grid_spec=pltpu.PrefetchScalarGridSpec(
                num_scalar_prefetch=0,
                grid=grid,
                in_specs=in_specs,
                out_specs=pl.BlockSpec((1, tq, D), lambda b, q: (b, q, 0)),
            ),
            compiler_params=pltpu.CompilerParams(
                dimension_semantics=("parallel", "parallel"),
                vmem_limit_bytes=64 * 1024 * 1024,
            ),
            cost_estimate=cost,
        )(x, x, bias, *weights)

    if single_buffer_weights:
        try:
            return _build(True)
        except Exception:
            # Fallback if this runtime rejects single-buffered (Buffered(1)) blocks.
            return _build(False)
    return _build(False)


# ------------------------- params / reference / main -------------------------

def init_params(key, D, F):
    ks = jax.random.split(key, 16)
    n = lambda k, s, sc=0.1: jax.random.normal(k, s, jnp.float32) * sc
    return dict(
        wq=n(ks[0], (D, D)),  bq=n(ks[1], (1, D), 0.02),
        wk=n(ks[2], (D, D)),  bk=n(ks[3], (1, D), 0.02),
        wv=n(ks[4], (D, D)),  bv=n(ks[5], (1, D), 0.02),
        ws1=n(ks[6], (D, D)), bs1=n(ks[7], (1, D), 0.02),
        ws2=n(ks[8], (D, D)), bs2=n(ks[9], (1, D), 0.02),
        g1=jnp.ones((1, D), jnp.float32),  be1=jnp.zeros((1, D), jnp.float32),
        wf1=n(ks[10], (D, F)), bf1=n(ks[11], (1, F), 0.02),
        wf2=n(ks[12], (F, D)), bf2=n(ks[13], (1, D), 0.02),
        g2=jnp.ones((1, D), jnp.float32),  be2=jnp.zeros((1, D), jnp.float32),
    )


def reference_forward(x, mask, bias, p, num_heads):
    """Pure-JAX reference mirroring the PyTorch math (dropout = identity)."""
    B, N, D = x.shape
    d_k = D // num_heads
    lin = lambda v, w, b: jnp.einsum('bnd,de->bne', v, w) + b
    q = lin(x, p['wq'], p['bq']).reshape(B, N, num_heads, d_k).transpose(0, 2, 1, 3)
    k = lin(x, p['wk'], p['bk']).reshape(B, N, num_heads, d_k).transpose(0, 2, 1, 3)
    v = lin(x, p['wv'], p['bv']).reshape(B, N, num_heads, d_k).transpose(0, 2, 1, 3)
    s = jnp.einsum('bhnd,bhmd->bhnm', q, k) / math.sqrt(d_k)
    if bias is not None:
        s = s + bias
    s = jnp.where(mask[:, None] > 0.5, s, _MASK_NEG)
    a = jax.nn.softmax(s, axis=-1)
    msg = jnp.einsum('bhnm,bhmd->bhnd', a, v).transpose(0, 2, 1, 3).reshape(B, N, D)
    h1 = msg @ p['ws1'] + p['bs1']
    h1 = h1 * jax.nn.sigmoid(h1)
    y = _layer_norm(h1 @ p['ws2'] + p['bs2'] + x, p['g1'], p['be1'])
    f = jax.nn.gelu(y @ p['wf1'] + p['bf1'], approximate=False)      # exact erf GELU
    return _layer_norm(f @ p['wf2'] + p['bf2'] + y, p['g2'], p['be2'])


if __name__ == "__main__":
    B, N, D, F, H = 2, 8, 32, 64, 4     # N includes the super node; dist is (N-1)x(N-1)
    key = jax.random.PRNGKey(0)
    kx, kd, kb, kp = jax.random.split(key, 4)
    x = jax.random.normal(kx, (B, N, D), jnp.float32)
    dist = jax.random.uniform(kd, (B, N - 1, N - 1), jnp.float32, minval=0.1, maxval=5.0)
    attn_bias = jax.random.normal(kb, (B, H, N, N), jnp.float32) * 0.1
    params = init_params(kp, D, F)

    mask = build_knn_mask(dist, N)

    # f32 path, with attention bias
    out = jax.block_until_ready(
        encoder_atom_layer(x, dist, params, attn_bias=attn_bias, num_heads=H))
    ref = reference_forward(x, mask, attn_bias, params, H)
    err = float(np.max(np.abs(np.asarray(out) - np.asarray(ref))))
    assert np.allclose(np.asarray(out), np.asarray(ref), atol=5e-3, rtol=5e-3), err

    # f32 path, bias=None (exercises the head-broadcast bias block)
    out_nb = jax.block_until_ready(
        encoder_atom_layer(x, dist, params, attn_bias=None, num_heads=H))
    ref_nb = reference_forward(x, mask, None, params, H)
    err_nb = float(np.max(np.abs(np.asarray(out_nb) - np.asarray(ref_nb))))
    assert np.allclose(np.asarray(out_nb), np.asarray(ref_nb), atol=5e-3, rtol=5e-3), err_nb

    # bf16-operand path (f32 accumulation / f32 elementwise) — loose sanity check
    out_bf = jax.block_until_ready(
        encoder_atom_layer(x, dist, params, attn_bias=attn_bias, num_heads=H,
                           matmul_dtype=jnp.bfloat16))
    err_bf = float(np.max(np.abs(np.asarray(out_bf) - np.asarray(ref))))
    assert np.allclose(np.asarray(out_bf), np.asarray(ref), atol=1e-1, rtol=1e-1), err_bf

    print("KERNEL_OK")
</pallas_src>

<mosaic_0001>
module attributes {stable_mosaic.version = 11 : i64} {
  func.func @encoder_atom_kernel(%arg0: i32, %arg1: i32, %arg2: memref<1x8x32xf32, #tpu.memory_space<vmem>>, %arg3: memref<1x8x32xf32, #tpu.memory_space<vmem>>, %arg4: memref<1x4x8x8xf32, #tpu.memory_space<vmem>>, %arg5: memref<4x32x8xf32, #tpu.memory_space<vmem>>, %arg6: memref<4x1x8xf32, #tpu.memory_space<vmem>>, %arg7: memref<4x32x8xf32, #tpu.memory_space<vmem>>, %arg8: memref<4x1x8xf32, #tpu.memory_space<vmem>>, %arg9: memref<4x32x8xf32, #tpu.memory_space<vmem>>, %arg10: memref<4x1x8xf32, #tpu.memory_space<vmem>>, %arg11: memref<4x8x32xf32, #tpu.memory_space<vmem>>, %arg12: memref<1x32xf32, #tpu.memory_space<vmem>>, %arg13: memref<32x32xf32, #tpu.memory_space<vmem>>, %arg14: memref<1x32xf32, #tpu.memory_space<vmem>>, %arg15: memref<1x32xf32, #tpu.memory_space<vmem>>, %arg16: memref<1x32xf32, #tpu.memory_space<vmem>>, %arg17: memref<32x64xf32, #tpu.memory_space<vmem>>, %arg18: memref<1x64xf32, #tpu.memory_space<vmem>>, %arg19: memref<64x32xf32, #tpu.memory_space<vmem>>, %arg20: memref<1x32xf32, #tpu.memory_space<vmem>>, %arg21: memref<1x32xf32, #tpu.memory_space<vmem>>, %arg22: memref<1x32xf32, #tpu.memory_space<vmem>>, %arg23: memref<1x8x32xf32, #tpu.memory_space<vmem>>) attributes {dimension_semantics = [#tpu.dimension_semantics<parallel>, #tpu.dimension_semantics<parallel>], iteration_bounds = array<i64: 2, 1>, scalar_prefetch = 0 : i64, scratch_operands = 0 : i64, tpu.core_type = #tpu.core_type<tc>, window_params = [{transform_indices = @transform_0, window_bounds = array<i64: 1, 8, 32>}, {transform_indices = @transform_1, window_bounds = array<i64: 1, 8, 32>}, {transform_indices = @transform_2, window_bounds = array<i64: 1, 4, 8, 8>}, {pipeline_mode = #tpu.pipeline_mode<synchronous>, transform_indices = @transform_3, window_bounds = array<i64: 4, 32, 8>}, {pipeline_mode = #tpu.pipeline_mode<synchronous>, transform_indices = @transform_4, window_bounds = array<i64: 4, 1, 8>}, {pipeline_mode = #tpu.pipeline_mode<synchronous>, transform_indices = @transform_5, window_bounds = array<i64: 4, 32, 8>}, {pipeline_mode = #tpu.pipeline_mode<synchronous>, transform_indices = @transform_6, window_bounds = array<i64: 4, 1, 8>}, {pipeline_mode = #tpu.pipeline_mode<synchronous>, transform_indices = @transform_7, window_bounds = array<i64: 4, 32, 8>}, {pipeline_mode = #tpu.pipeline_mode<synchronous>, transform_indices = @transform_8, window_bounds = array<i64: 4, 1, 8>}, {pipeline_mode = #tpu.pipeline_mode<synchronous>, transform_indices = @transform_9, window_bounds = array<i64: 4, 8, 32>}, {pipeline_mode = #tpu.pipeline_mode<synchronous>, transform_indices = @transform_10, window_bounds = array<i64: 1, 32>}, {pipeline_mode = #tpu.pipeline_mode<synchronous>, transform_indices = @transform_11, window_bounds = array<i64: 32, 32>}, {pipeline_mode = #tpu.pipeline_mode<synchronous>, transform_indices = @transform_12, window_bounds = array<i64: 1, 32>}, {pipeline_mode = #tpu.pipeline_mode<synchronous>, transform_indices = @transform_13, window_bounds = array<i64: 1, 32>}, {pipeline_mode = #tpu.pipeline_mode<synchronous>, transform_indices = @transform_14, window_bounds = array<i64: 1, 32>}, {pipeline_mode = #tpu.pipeline_mode<synchronous>, transform_indices = @transform_15, window_bounds = array<i64: 32, 64>}, {pipeline_mode = #tpu.pipeline_mode<synchronous>, transform_indices = @transform_16, window_bounds = array<i64: 1, 64>}, {pipeline_mode = #tpu.pipeline_mode<synchronous>, transform_indices = @transform_17, window_bounds = array<i64: 64, 32>}, {pipeline_mode = #tpu.pipeline_mode<synchronous>, transform_indices = @transform_18, window_bounds = array<i64: 1, 32>}, {pipeline_mode = #tpu.pipeline_mode<synchronous>, transform_indices = @transform_19, window_bounds = array<i64: 1, 32>}, {pipeline_mode = #tpu.pipeline_mode<synchronous>, transform_indices = @transform_20, window_bounds = array<i64: 1, 32>}, {transform_indices = @transform_21, window_bounds = array<i64: 1, 8, 32>}]} {
    %c0 = arith.constant 0 : index
    %c0_0 = arith.constant 0 : index
    %c0_1 = arith.constant 0 : index
    %0 = vector.load %arg2[%c0, %c0_0, %c0_1] : memref<1x8x32xf32, #tpu.memory_space<vmem>>, vector<1x8x32xf32>
    %1 = vector.shape_cast %0 : vector<1x8x32xf32> to vector<8x32xf32>
    %c0_2 = arith.constant 0 : index
    %c0_3 = arith.constant 0 : index
    %c0_4 = arith.constant 0 : index
    %2 = vector.load %arg3[%c0_2, %c0_3, %c0_4] : memref<1x8x32xf32, #tpu.memory_space<vmem>>, vector<1x8x32xf32>
    %3 = vector.shape_cast %2 : vector<1x8x32xf32> to vector<8x32xf32>
    %4 = vector.shape_cast %1 : vector<8x32xf32> to vector<1x8x32xf32>
    %5 = vector.shape_cast %4 : vector<1x8x32xf32> to vector<1x8x32xf32>
    %6 = vector.broadcast %5 : vector<1x8x32xf32> to vector<4x8x32xf32>
    %7 = vector.shape_cast %3 : vector<8x32xf32> to vector<1x8x32xf32>
    %8 = vector.shape_cast %7 : vector<1x8x32xf32> to vector<1x8x32xf32>
    %9 = vector.broadcast %8 : vector<1x8x32xf32> to vector<4x8x32xf32>
    %c0_5 = arith.constant 0 : index
    %c0_6 = arith.constant 0 : index
    %c0_7 = arith.constant 0 : index
    %10 = vector.load %arg5[%c0_5, %c0_6, %c0_7] : memref<4x32x8xf32, #tpu.memory_space<vmem>>, vector<4x32x8xf32>
    %cst = arith.constant dense<0.000000e+00> : vector<4x8x8xf32>
    %11 = tpu.matmul %6, %10, %cst {dimension_numbers = #tpu.dot_dimension_numbers<[2], [1], [1], [2], [0, 0, 0, 1, 1, 2], [0], [0]>} : vector<4x8x32xf32>, vector<4x32x8xf32>, vector<4x8x8xf32> -> vector<4x8x8xf32>
    %c0_8 = arith.constant 0 : index
    %c0_9 = arith.constant 0 : index
    %c0_10 = arith.constant 0 : index
    %12 = vector.load %arg6[%c0_8, %c0_9, %c0_10] : memref<4x1x8xf32, #tpu.memory_space<vmem>>, vector<4x1x8xf32>
    %13 = vector.broadcast %12 : vector<4x1x8xf32> to vector<4x8x8xf32>
    %14 = arith.addf %11, %13 : vector<4x8x8xf32>
    %c0_11 = arith.constant 0 : index
    %c0_12 = arith.constant 0 : index
    %c0_13 = arith.constant 0 : index
    %15 = vector.load %arg7[%c0_11, %c0_12, %c0_13] : memref<4x32x8xf32, #tpu.memory_space<vmem>>, vector<4x32x8xf32>
    %cst_14 = arith.constant dense<0.000000e+00> : vector<4x8x8xf32>
    %16 = tpu.matmul %9, %15, %cst_14 {dimension_numbers = #tpu.dot_dimension_numbers<[2], [1], [1], [2], [0, 0, 0, 1, 1, 2], [0], [0]>} : vector<4x8x32xf32>, vector<4x32x8xf32>, vector<4x8x8xf32> -> vector<4x8x8xf32>
    %c0_15 = arith.constant 0 : index
    %c0_16 = arith.constant 0 : index
    %c0_17 = arith.constant 0 : index
    %17 = vector.load %arg8[%c0_15, %c0_16, %c0_17] : memref<4x1x8xf32, #tpu.memory_space<vmem>>, vector<4x1x8xf32>
    %18 = vector.broadcast %17 : vector<4x1x8xf32> to vector<4x8x8xf32>
    %19 = arith.addf %16, %18 : vector<4x8x8xf32>
    %c0_18 = arith.constant 0 : index
    %c0_19 = arith.constant 0 : index
    %c0_20 = arith.constant 0 : index
    %20 = vector.load %arg9[%c0_18, %c0_19, %c0_20] : memref<4x32x8xf32, #tpu.memory_space<vmem>>, vector<4x32x8xf32>
    %cst_21 = arith.constant dense<0.000000e+00> : vector<4x8x8xf32>
    %21 = tpu.matmul %9, %20, %cst_21 {dimension_numbers = #tpu.dot_dimension_numbers<[2], [1], [1], [2], [0, 0, 0, 1, 1, 2], [0], [0]>} : vector<4x8x32xf32>, vector<4x32x8xf32>, vector<4x8x8xf32> -> vector<4x8x8xf32>
    %c0_22 = arith.constant 0 : index
    %c0_23 = arith.constant 0 : index
    %c0_24 = arith.constant 0 : index
    %22 = vector.load %arg10[%c0_22, %c0_23, %c0_24] : memref<4x1x8xf32, #tpu.memory_space<vmem>>, vector<4x1x8xf32>
    %23 = vector.broadcast %22 : vector<4x1x8xf32> to vector<4x8x8xf32>
    %24 = arith.addf %21, %23 : vector<4x8x8xf32>
    %cst_25 = arith.constant dense<0.000000e+00> : vector<4x8x8xf32>
    %25 = tpu.matmul %14, %19, %cst_25 {dimension_numbers = #tpu.dot_dimension_numbers<[2], [2], [1], [1], [0, 0, 0, 1, 1, 1], [0], [0]>} : vector<4x8x8xf32>, vector<4x8x8xf32>, vector<4x8x8xf32> -> vector<4x8x8xf32>
    %c0_26 = arith.constant 0 : index
    %c0_27 = arith.constant 0 : index
    %c0_28 = arith.constant 0 : index
    %c0_29 = arith.constant 0 : index
    %26 = vector.load %arg4[%c0_26, %c0_27, %c0_28, %c0_29] : memref<1x4x8x8xf32, #tpu.memory_space<vmem>>, vector<1x4x8x8xf32>
    %27 = vector.shape_cast %26 : vector<1x4x8x8xf32> to vector<4x8x8xf32>
    %28 = arith.addf %25, %27 : vector<4x8x8xf32>
    %cst_30 = arith.constant dense<0xFF800000> : vector<4x8xf32>
    %29 = vector.multi_reduction <maximumf>, %28, %cst_30 [2] : vector<4x8x8xf32> to vector<4x8xf32>
    %30 = vector.shape_cast %29 : vector<4x8xf32> to vector<4x8x1xf32>
    %31 = vector.broadcast %30 : vector<4x8x1xf32> to vector<4x8x8xf32>
    %32 = arith.subf %28, %31 : vector<4x8x8xf32>
    %33 = math.exp %32 : vector<4x8x8xf32>
    %cst_31 = arith.constant dense<0.000000e+00> : vector<4x8xf32>
    %34 = vector.multi_reduction <add>, %33, %cst_31 [2] : vector<4x8x8xf32> to vector<4x8xf32>
    %35 = vector.shape_cast %34 : vector<4x8xf32> to vector<4x8x1xf32>
    %36 = tpu.reciprocal %35 {approx = true} : vector<4x8x1xf32> -> vector<4x8x1xf32>
    %37 = vector.broadcast %36 : vector<4x8x1xf32> to vector<4x8x8xf32>
    %38 = arith.mulf %33, %37 : vector<4x8x8xf32>
    %cst_32 = arith.constant dense<0.000000e+00> : vector<4x8x8xf32>
    %39 = tpu.matmul %38, %24, %cst_32 {dimension_numbers = #tpu.dot_dimension_numbers<[2], [1], [1], [2], [0, 0, 0, 1, 1, 2], [0], [0]>} : vector<4x8x8xf32>, vector<4x8x8xf32>, vector<4x8x8xf32> -> vector<4x8x8xf32>
    %c0_33 = arith.constant 0 : index
    %c0_34 = arith.constant 0 : index
    %c0_35 = arith.constant 0 : index
    %40 = vector.load %arg11[%c0_33, %c0_34, %c0_35] : memref<4x8x32xf32, #tpu.memory_space<vmem>>, vector<4x8x32xf32>
    %cst_36 = arith.constant dense<0.000000e+00> : vector<4x8x32xf32>
    %41 = tpu.matmul %39, %40, %cst_36 {dimension_numbers = #tpu.dot_dimension_numbers<[2], [1], [1], [2], [0, 0, 0, 1, 1, 2], [0], [0]>} : vector<4x8x8xf32>, vector<4x8x32xf32>, vector<4x8x32xf32> -> vector<4x8x32xf32>
    %cst_37 = arith.constant dense<0.000000e+00> : vector<8x32xf32>
    %42 = vector.multi_reduction <add>, %41, %cst_37 [0] : vector<4x8x32xf32> to vector<8x32xf32>
    %c0_38 = arith.constant 0 : index
    %c0_39 = arith.constant 0 : index
    %43 = vector.load %arg12[%c0_38, %c0_39] : memref<1x32xf32, #tpu.memory_space<vmem>>, vector<1x32xf32>
    %44 = vector.broadcast %43 : vector<1x32xf32> to vector<8x32xf32>
    %45 = arith.addf %42, %44 : vector<8x32xf32>
    %cst_40 = arith.constant 0.000000e+00 : f32
    %46 = vector.broadcast %cst_40 : f32 to vector<8x32xf32>
    %47 = arith.subf %46, %45 : vector<8x32xf32>
    %48 = math.exp %47 : vector<8x32xf32>
    %cst_41 = arith.constant 1.000000e+00 : f32
    %49 = vector.broadcast %cst_41 : f32 to vector<8x32xf32>
    %50 = arith.addf %49, %48 : vector<8x32xf32>
    %51 = tpu.reciprocal %50 {approx = true} : vector<8x32xf32> -> vector<8x32xf32>
    %52 = arith.mulf %45, %51 : vector<8x32xf32>
    %c0_42 = arith.constant 0 : index
    %c0_43 = arith.constant 0 : index
    %53 = vector.load %arg13[%c0_42, %c0_43] : memref<32x32xf32, #tpu.memory_space<vmem>>, vector<32x32xf32>
    %cst_44 = arith.constant dense<0.000000e+00> : vector<8x32xf32>
    %54 = tpu.matmul %52, %53, %cst_44 {dimension_numbers = #tpu.dot_dimension_numbers<[1], [0], [0], [1], [0, 0, 1, 1], [], []>} : vector<8x32xf32>, vector<32x32xf32>, vector<8x32xf32> -> vector<8x32xf32>
    %c0_45 = arith.constant 0 : index
    %c0_46 = arith.constant 0 : index
    %55 = vector.load %arg14[%c0_45, %c0_46] : memref<1x32xf32, #tpu.memory_space<vmem>>, vector<1x32xf32>
    %56 = vector.broadcast %55 : vector<1x32xf32> to vector<8x32xf32>
    %57 = arith.addf %54, %56 : vector<8x32xf32>
    %58 = arith.addf %57, %1 : vector<8x32xf32>
    %c0_47 = arith.constant 0 : index
    %c0_48 = arith.constant 0 : index
    %59 = vector.load %arg15[%c0_47, %c0_48] : memref<1x32xf32, #tpu.memory_space<vmem>>, vector<1x32xf32>
    %c0_49 = arith.constant 0 : index
    %c0_50 = arith.constant 0 : index
    %60 = vector.load %arg16[%c0_49, %c0_50] : memref<1x32xf32, #tpu.memory_space<vmem>>, vector<1x32xf32>
    %cst_51 = arith.constant dense<0.000000e+00> : vector<8xf32>
    %61 = vector.multi_reduction <add>, %58, %cst_51 [1] : vector<8x32xf32> to vector<8xf32>
    %62 = vector.shape_cast %61 : vector<8xf32> to vector<8x1xf32>
    %cst_52 = arith.constant 3.200000e+01 : f32
    %63 = vector.broadcast %cst_52 : f32 to vector<8x1xf32>
    %64 = arith.divf %62, %63 : vector<8x1xf32>
    %65 = vector.broadcast %64 : vector<8x1xf32> to vector<8x32xf32>
    %66 = arith.subf %58, %65 : vector<8x32xf32>
    %67 = arith.mulf %66, %66 : vector<8x32xf32>
    %cst_53 = arith.constant dense<0.000000e+00> : vector<8xf32>
    %68 = vector.multi_reduction <add>, %67, %cst_53 [1] : vector<8x32xf32> to vector<8xf32>
    %69 = vector.shape_cast %68 : vector<8xf32> to vector<8x1xf32>
    %cst_54 = arith.constant 3.200000e+01 : f32
    %70 = vector.broadcast %cst_54 : f32 to vector<8x1xf32>
    %71 = arith.divf %69, %70 : vector<8x1xf32>
    %72 = vector.broadcast %64 : vector<8x1xf32> to vector<8x32xf32>
    %73 = arith.subf %58, %72 : vector<8x32xf32>
    %cst_55 = arith.constant 9.99999997E-7 : f32
    %74 = vector.broadcast %cst_55 : f32 to vector<8x1xf32>
    %75 = arith.addf %71, %74 : vector<8x1xf32>
    %76 = math.rsqrt %75 : vector<8x1xf32>
    %77 = vector.broadcast %76 : vector<8x1xf32> to vector<8x32xf32>
    %78 = arith.mulf %73, %77 : vector<8x32xf32>
    %79 = vector.broadcast %59 : vector<1x32xf32> to vector<8x32xf32>
    %80 = arith.mulf %78, %79 : vector<8x32xf32>
    %81 = vector.broadcast %60 : vector<1x32xf32> to vector<8x32xf32>
    %82 = arith.addf %80, %81 : vector<8x32xf32>
    %c0_56 = arith.constant 0 : index
    %c0_57 = arith.constant 0 : index
    %83 = vector.load %arg17[%c0_56, %c0_57] : memref<32x64xf32, #tpu.memory_space<vmem>>, vector<32x64xf32>
    %cst_58 = arith.constant dense<0.000000e+00> : vector<8x64xf32>
    %84 = tpu.matmul %82, %83, %cst_58 {dimension_numbers = #tpu.dot_dimension_numbers<[1], [0], [0], [1], [0, 0, 1, 1], [], []>} : vector<8x32xf32>, vector<32x64xf32>, vector<8x64xf32> -> vector<8x64xf32>
    %c0_59 = arith.constant 0 : index
    %c0_60 = arith.constant 0 : index
    %85 = vector.load %arg18[%c0_59, %c0_60] : memref<1x64xf32, #tpu.memory_space<vmem>>, vector<1x64xf32>
    %86 = vector.broadcast %85 : vector<1x64xf32> to vector<8x64xf32>
    %87 = arith.addf %84, %86 : vector<8x64xf32>
    %cst_61 = arith.constant 5.000000e-01 : f32
    %88 = vector.broadcast %cst_61 : f32 to vector<8x64xf32>
    %89 = arith.mulf %88, %87 : vector<8x64xf32>
    %cst_62 = arith.constant 0.707106769 : f32
    %90 = vector.broadcast %cst_62 : f32 to vector<8x64xf32>
    %91 = arith.mulf %87, %90 : vector<8x64xf32>
    %92 = math.absf %91 : vector<8x64xf32>
    %cst_63 = arith.constant 0.327591091 : f32
    %93 = vector.broadcast %cst_63 : f32 to vector<8x64xf32>
    %94 = arith.mulf %93, %92 : vector<8x64xf32>
    %cst_64 = arith.constant 1.000000e+00 : f32
    %95 = vector.broadcast %cst_64 : f32 to vector<8x64xf32>
    %96 = arith.addf %95, %94 : vector<8x64xf32>
    %97 = tpu.reciprocal %96 {approx = true} : vector<8x64xf32> -> vector<8x64xf32>
    %cst_65 = arith.constant 1.06140542 : f32
    %98 = vector.broadcast %cst_65 : f32 to vector<8x64xf32>
    %99 = arith.mulf %97, %98 : vector<8x64xf32>
    %cst_66 = arith.constant -1.45315206 : f32
    %100 = vector.broadcast %cst_66 : f32 to vector<8x64xf32>
    %101 = arith.addf %100, %99 : vector<8x64xf32>
    %102 = arith.mulf %97, %101 : vector<8x64xf32>
    %cst_67 = arith.constant 1.42141378 : f32
    %103 = vector.broadcast %cst_67 : f32 to vector<8x64xf32>
    %104 = arith.addf %103, %102 : vector<8x64xf32>
    %105 = arith.mulf %97, %104 : vector<8x64xf32>
    %cst_68 = arith.constant -0.284496725 : f32
    %106 = vector.broadcast %cst_68 : f32 to vector<8x64xf32>
    %107 = arith.addf %106, %105 : vector<8x64xf32>
    %108 = arith.mulf %97, %107 : vector<8x64xf32>
    %cst_69 = arith.constant 0.254829586 : f32
    %109 = vector.broadcast %cst_69 : f32 to vector<8x64xf32>
    %110 = arith.addf %109, %108 : vector<8x64xf32>
    %111 = arith.mulf %97, %110 : vector<8x64xf32>
    %cst_70 = arith.constant 0.000000e+00 : f32
    %112 = vector.broadcast %cst_70 : f32 to vector<8x64xf32>
    %113 = arith.subf %112, %92 : vector<8x64xf32>
    %114 = arith.mulf %113, %92 : vector<8x64xf32>
    %115 = math.exp %114 : vector<8x64xf32>
    %116 = arith.mulf %111, %115 : vector<8x64xf32>
    %cst_71 = arith.constant 1.000000e+00 : f32
    %117 = vector.broadcast %cst_71 : f32 to vector<8x64xf32>
    %118 = arith.subf %117, %116 : vector<8x64xf32>
    %cst_72 = arith.constant 0.000000e+00 : f32
    %119 = vector.broadcast %cst_72 : f32 to vector<8x64xf32>
    %120 = arith.cmpf oge, %91, %119 : vector<8x64xf32>
    %cst_73 = arith.constant 0.000000e+00 : f32
    %121 = vector.broadcast %cst_73 : f32 to vector<8x64xf32>
    %122 = arith.subf %121, %118 : vector<8x64xf32>
    %123 = arith.select %120, %118, %122 : vector<8x64xi1>, vector<8x64xf32>
    %cst_74 = arith.constant 1.000000e+00 : f32
    %124 = vector.broadcast %cst_74 : f32 to vector<8x64xf32>
    %125 = arith.addf %124, %123 : vector<8x64xf32>
    %126 = arith.mulf %89, %125 : vector<8x64xf32>
    %c0_75 = arith.constant 0 : index
    %c0_76 = arith.constant 0 : index
    %127 = vector.load %arg19[%c0_75, %c0_76] : memref<64x32xf32, #tpu.memory_space<vmem>>, vector<64x32xf32>
    %cst_77 = arith.constant dense<0.000000e+00> : vector<8x32xf32>
    %128 = tpu.matmul %126, %127, %cst_77 {dimension_numbers = #tpu.dot_dimension_numbers<[1], [0], [0], [1], [0, 0, 1, 1], [], []>} : vector<8x64xf32>, vector<64x32xf32>, vector<8x32xf32> -> vector<8x32xf32>
    %c0_78 = arith.constant 0 : index
    %c0_79 = arith.constant 0 : index
    %129 = vector.load %arg20[%c0_78, %c0_79] : memref<1x32xf32, #tpu.memory_space<vmem>>, vector<1x32xf32>
    %130 = vector.broadcast %129 : vector<1x32xf32> to vector<8x32xf32>
    %131 = arith.addf %128, %130 : vector<8x32xf32>
    %132 = arith.addf %131, %82 : vector<8x32xf32>
    %c0_80 = arith.constant 0 : index
    %c0_81 = arith.constant 0 : index
    %133 = vector.load %arg21[%c0_80, %c0_81] : memref<1x32xf32, #tpu.memory_space<vmem>>, vector<1x32xf32>
    %c0_82 = arith.constant 0 : index
    %c0_83 = arith.constant 0 : index
    %134 = vector.load %arg22[%c0_82, %c0_83] : memref<1x32xf32, #tpu.memory_space<vmem>>, vector<1x32xf32>
    %cst_84 = arith.constant dense<0.000000e+00> : vector<8xf32>
    %135 = vector.multi_reduction <add>, %132, %cst_84 [1] : vector<8x32xf32> to vector<8xf32>
    %136 = vector.shape_cast %135 : vector<8xf32> to vector<8x1xf32>
    %cst_85 = arith.constant 3.200000e+01 : f32
    %137 = vector.broadcast %cst_85 : f32 to vector<8x1xf32>
    %138 = arith.divf %136, %137 : vector<8x1xf32>
    %139 = vector.broadcast %138 : vector<8x1xf32> to vector<8x32xf32>
    %140 = arith.subf %132, %139 : vector<8x32xf32>
    %141 = arith.mulf %140, %140 : vector<8x32xf32>
    %cst_86 = arith.constant dense<0.000000e+00> : vector<8xf32>
    %142 = vector.multi_reduction <add>, %141, %cst_86 [1] : vector<8x32xf32> to vector<8xf32>
    %143 = vector.shape_cast %142 : vector<8xf32> to vector<8x1xf32>
    %cst_87 = arith.constant 3.200000e+01 : f32
    %144 = vector.broadcast %cst_87 : f32 to vector<8x1xf32>
    %145 = arith.divf %143, %144 : vector<8x1xf32>
    %146 = vector.broadcast %138 : vector<8x1xf32> to vector<8x32xf32>
    %147 = arith.subf %132, %146 : vector<8x32xf32>
    %cst_88 = arith.constant 9.99999997E-7 : f32
    %148 = vector.broadcast %cst_88 : f32 to vector<8x1xf32>
    %149 = arith.addf %145, %148 : vector<8x1xf32>
    %150 = math.rsqrt %149 : vector<8x1xf32>
    %151 = vector.broadcast %150 : vector<8x1xf32> to vector<8x32xf32>
    %152 = arith.mulf %147, %151 : vector<8x32xf32>
    %153 = vector.broadcast %133 : vector<1x32xf32> to vector<8x32xf32>
    %154 = arith.mulf %152, %153 : vector<8x32xf32>
    %155 = vector.broadcast %134 : vector<1x32xf32> to vector<8x32xf32>
    %156 = arith.addf %154, %155 : vector<8x32xf32>
    %c0_89 = arith.constant 0 : index
    %c0_90 = arith.constant 0 : index
    %c0_91 = arith.constant 0 : index
    %157 = vector.load %arg23[%c0_89, %c0_90, %c0_91] : memref<1x8x32xf32, #tpu.memory_space<vmem>>, vector<1x8x32xf32>
    %158 = vector.shape_cast %157 : vector<1x8x32xf32> to vector<8x32xf32>
    %159 = vector.shape_cast %156 : vector<8x32xf32> to vector<1x8x32xf32>
    tpu.vector_store %arg23[%c0_89, %c0_90, %c0_91], %159 {strides = array<i32>} : memref<1x8x32xf32, #tpu.memory_space<vmem>>, vector<1x8x32xf32>,
    return
  }
  func.func @transform_0(%arg0: i32, %arg1: i32) -> (i32, i32, i32) {
    %c0_i32 = arith.constant 0 : i32
    %c0_i32_0 = arith.constant 0 : i32
    return %arg0, %arg1, %c0_i32 : i32, i32, i32
  }
  func.func @transform_1(%arg0: i32, %arg1: i32) -> (i32, i32, i32) {
    %c0_i32 = arith.constant 0 : i32
    %c0_i32_0 = arith.constant 0 : i32
    %c0_i32_1 = arith.constant 0 : i32
    return %arg0, %c0_i32, %c0_i32_0 : i32, i32, i32
  }
  func.func @transform_2(%arg0: i32, %arg1: i32) -> (i32, i32, i32, i32) {
    %c0_i32 = arith.constant 0 : i32
    %c0_i32_0 = arith.constant 0 : i32
    %c0_i32_1 = arith.constant 0 : i32
    return %arg0, %c0_i32, %arg1, %c0_i32_0 : i32, i32, i32, i32
  }
  func.func @transform_3(%arg0: i32, %arg1: i32) -> (i32, i32, i32) {
    %c0_i32 = arith.constant 0 : i32
    %c0_i32_0 = arith.constant 0 : i32
    %c0_i32_1 = arith.constant 0 : i32
    %c0_i32_2 = arith.constant 0 : i32
    return %c0_i32, %c0_i32_0, %c0_i32_1 : i32, i32, i32
  }
  func.func @transform_4(%arg0: i32, %arg1: i32) -> (i32, i32, i32) {
    %c0_i32 = arith.constant 0 : i32
    %c0_i32_0 = arith.constant 0 : i32
    %c0_i32_1 = arith.constant 0 : i32
    %c0_i32_2 = arith.constant 0 : i32
    return %c0_i32, %c0_i32_0, %c0_i32_1 : i32, i32, i32
  }
  func.func @transform_5(%arg0: i32, %arg1: i32) -> (i32, i32, i32) {
    %c0_i32 = arith.constant 0 : i32
    %c0_i32_0 = arith.constant 0 : i32
    %c0_i32_1 = arith.constant 0 : i32
    %c0_i32_2 = arith.constant 0 : i32
    return %c0_i32, %c0_i32_0, %c0_i32_1 : i32, i32, i32
  }
  func.func @transform_6(%arg0: i32, %arg1: i32) -> (i32, i32, i32) {
    %c0_i32 = arith.constant 0 : i32
    %c0_i32_0 = arith.constant 0 : i32
    %c0_i32_1 = arith.constant 0 : i32
    %c0_i32_2 = arith.constant 0 : i32
    return %c0_i32, %c0_i32_0, %c0_i32_1 : i32, i32, i32
  }
  func.func @transform_7(%arg0: i32, %arg1: i32) -> (i32, i32, i32) {
    %c0_i32 = arith.constant 0 : i32
    %c0_i32_0 = arith.constant 0 : i32
    %c0_i32_1 = arith.constant 0 : i32
    %c0_i32_2 = arith.constant 0 : i32
    return %c0_i32, %c0_i32_0, %c0_i32_1 : i32, i32, i32
  }
  func.func @transform_8(%arg0: i32, %arg1: i32) -> (i32, i32, i32) {
    %c0_i32 = arith.constant 0 : i32
    %c0_i32_0 = arith.constant 0 : i32
    %c0_i32_1 = arith.constant 0 : i32
    %c0_i32_2 = arith.constant 0 : i32
    return %c0_i32, %c0_i32_0, %c0_i32_1 : i32, i32, i32
  }
  func.func @transform_9(%arg0: i32, %arg1: i32) -> (i32, i32, i32) {
    %c0_i32 = arith.constant 0 : i32
    %c0_i32_0 = arith.constant 0 : i32
    %c0_i32_1 = arith.constant 0 : i32
    %c0_i32_2 = arith.constant 0 : i32
    return %c0_i32, %c0_i32_0, %c0_i32_1 : i32, i32, i32
  }
  func.func @transform_10(%arg0: i32, %arg1: i32) -> (i32, i32) {
    %c0_i32 = arith.constant 0 : i32
    %c0_i32_0 = arith.constant 0 : i32
    %c0_i32_1 = arith.constant 0 : i32
    return %c0_i32, %c0_i32_0 : i32, i32
  }
  func.func @transform_11(%arg0: i32, %arg1: i32) -> (i32, i32) {
    %c0_i32 = arith.constant 0 : i32
    %c0_i32_0 = arith.constant 0 : i32
    %c0_i32_1 = arith.constant 0 : i32
    return %c0_i32, %c0_i32_0 : i32, i32
  }
  func.func @transform_12(%arg0: i32, %arg1: i32) -> (i32, i32) {
    %c0_i32 = arith.constant 0 : i32
    %c0_i32_0 = arith.constant 0 : i32
    %c0_i32_1 = arith.constant 0 : i32
    return %c0_i32, %c0_i32_0 : i32, i32
  }
  func.func @transform_13(%arg0: i32, %arg1: i32) -> (i32, i32) {
    %c0_i32 = arith.constant 0 : i32
    %c0_i32_0 = arith.constant 0 : i32
    %c0_i32_1 = arith.constant 0 : i32
    return %c0_i32, %c0_i32_0 : i32, i32
  }
  func.func @transform_14(%arg0: i32, %arg1: i32) -> (i32, i32) {
    %c0_i32 = arith.constant 0 : i32
    %c0_i32_0 = arith.constant 0 : i32
    %c0_i32_1 = arith.constant 0 : i32
    return %c0_i32, %c0_i32_0 : i32, i32
  }
  func.func @transform_15(%arg0: i32, %arg1: i32) -> (i32, i32) {
    %c0_i32 = arith.constant 0 : i32
    %c0_i32_0 = arith.constant 0 : i32
    %c0_i32_1 = arith.constant 0 : i32
    return %c0_i32, %c0_i32_0 : i32, i32
  }
  func.func @transform_16(%arg0: i32, %arg1: i32) -> (i32, i32) {
    %c0_i32 = arith.constant 0 : i32
    %c0_i32_0 = arith.constant 0 : i32
    %c0_i32_1 = arith.constant 0 : i32
    return %c0_i32, %c0_i32_0 : i32, i32
  }
  func.func @transform_17(%arg0: i32, %arg1: i32) -> (i32, i32) {
    %c0_i32 = arith.constant 0 : i32
    %c0_i32_0 = arith.constant 0 : i32
    %c0_i32_1 = arith.constant 0 : i32
    return %c0_i32, %c0_i32_0 : i32, i32
  }
  func.func @transform_18(%arg0: i32, %arg1: i32) -> (i32, i32) {
    %c0_i32 = arith.constant 0 : i32
    %c0_i32_0 = arith.constant 0 : i32
    %c0_i32_1 = arith.constant 0 : i32
    return %c0_i32, %c0_i32_0 : i32, i32
  }
  func.func @transform_19(%arg0: i32, %arg1: i32) -> (i32, i32) {
    %c0_i32 = arith.constant 0 : i32
    %c0_i32_0 = arith.constant 0 : i32
    %c0_i32_1 = arith.constant 0 : i32
    return %c0_i32, %c0_i32_0 : i32, i32
  }
  func.func @transform_20(%arg0: i32, %arg1: i32) -> (i32, i32) {
    %c0_i32 = arith.constant 0 : i32
    %c0_i32_0 = arith.constant 0 : i32
    %c0_i32_1 = arith.constant 0 : i32
    return %c0_i32, %c0_i32_0 : i32, i32
  }
  func.func @transform_21(%arg0: i32, %arg1: i32) -> (i32, i32, i32) {
    %c0_i32 = arith.constant 0 : i32
    %c0_i32_0 = arith.constant 0 : i32
    return %arg0, %arg1, %c0_i32 : i32, i32, i32
  }
}

module attributes {stable_mosaic.version = 11 : i64} {
  func.func @encoder_atom_kernel(%arg0: i32, %arg1: i32, %arg2: memref<1x8x32xf32, #tpu.memory_space<vmem>>, %arg3: memref<1x8x32xf32, #tpu.memory_space<vmem>>, %arg4: memref<1x4x8x8xf32, #tpu.memory_space<vmem>>, %arg5: memref<4x32x8xf32, #tpu.memory_space<vmem>>, %arg6: memref<4x1x8xf32, #tpu.memory_space<vmem>>, %arg7: memref<4x32x8xf32, #tpu.memory_space<vmem>>, %arg8: memref<4x1x8xf32, #tpu.memory_space<vmem>>, %arg9: memref<4x32x8xf32, #tpu.memory_space<vmem>>, %arg10: memref<4x1x8xf32, #tpu.memory_space<vmem>>, %arg11: memref<4x8x32xf32, #tpu.memory_space<vmem>>, %arg12: memref<1x32xf32, #tpu.memory_space<vmem>>, %arg13: memref<32x32xf32, #tpu.memory_space<vmem>>, %arg14: memref<1x32xf32, #tpu.memory_space<vmem>>, %arg15: memref<1x32xf32, #tpu.memory_space<vmem>>, %arg16: memref<1x32xf32, #tpu.memory_space<vmem>>, %arg17: memref<32x64xf32, #tpu.memory_space<vmem>>, %arg18: memref<1x64xf32, #tpu.memory_space<vmem>>, %arg19: memref<64x32xf32, #tpu.memory_space<vmem>>, %arg20: memref<1x32xf32, #tpu.memory_space<vmem>>, %arg21: memref<1x32xf32, #tpu.memory_space<vmem>>, %arg22: memref<1x32xf32, #tpu.memory_space<vmem>>, %arg23: memref<1x8x32xf32, #tpu.memory_space<vmem>>) attributes {dimension_semantics = [#tpu.dimension_semantics<parallel>, #tpu.dimension_semantics<parallel>], iteration_bounds = array<i64: 2, 1>, scalar_prefetch = 0 : i64, scratch_operands = 0 : i64, tpu.core_type = #tpu.core_type<tc>, window_params = [{transform_indices = @transform_0, window_bounds = array<i64: 1, 8, 32>}, {transform_indices = @transform_1, window_bounds = array<i64: 1, 8, 32>}, {transform_indices = @transform_2, window_bounds = array<i64: 1, 4, 8, 8>}, {pipeline_mode = #tpu.pipeline_mode<synchronous>, transform_indices = @transform_3, window_bounds = array<i64: 4, 32, 8>}, {pipeline_mode = #tpu.pipeline_mode<synchronous>, transform_indices = @transform_4, window_bounds = array<i64: 4, 1, 8>}, {pipeline_mode = #tpu.pipeline_mode<synchronous>, transform_indices = @transform_5, window_bounds = array<i64: 4, 32, 8>}, {pipeline_mode = #tpu.pipeline_mode<synchronous>, transform_indices = @transform_6, window_bounds = array<i64: 4, 1, 8>}, {pipeline_mode = #tpu.pipeline_mode<synchronous>, transform_indices = @transform_7, window_bounds = array<i64: 4, 32, 8>}, {pipeline_mode = #tpu.pipeline_mode<synchronous>, transform_indices = @transform_8, window_bounds = array<i64: 4, 1, 8>}, {pipeline_mode = #tpu.pipeline_mode<synchronous>, transform_indices = @transform_9, window_bounds = array<i64: 4, 8, 32>}, {pipeline_mode = #tpu.pipeline_mode<synchronous>, transform_indices = @transform_10, window_bounds = array<i64: 1, 32>}, {pipeline_mode = #tpu.pipeline_mode<synchronous>, transform_indices = @transform_11, window_bounds = array<i64: 32, 32>}, {pipeline_mode = #tpu.pipeline_mode<synchronous>, transform_indices = @transform_12, window_bounds = array<i64: 1, 32>}, {pipeline_mode = #tpu.pipeline_mode<synchronous>, transform_indices = @transform_13, window_bounds = array<i64: 1, 32>}, {pipeline_mode = #tpu.pipeline_mode<synchronous>, transform_indices = @transform_14, window_bounds = array<i64: 1, 32>}, {pipeline_mode = #tpu.pipeline_mode<synchronous>, transform_indices = @transform_15, window_bounds = array<i64: 32, 64>}, {pipeline_mode = #tpu.pipeline_mode<synchronous>, transform_indices = @transform_16, window_bounds = array<i64: 1, 64>}, {pipeline_mode = #tpu.pipeline_mode<synchronous>, transform_indices = @transform_17, window_bounds = array<i64: 64, 32>}, {pipeline_mode = #tpu.pipeline_mode<synchronous>, transform_indices = @transform_18, window_bounds = array<i64: 1, 32>}, {pipeline_mode = #tpu.pipeline_mode<synchronous>, transform_indices = @transform_19, window_bounds = array<i64: 1, 32>}, {pipeline_mode = #tpu.pipeline_mode<synchronous>, transform_indices = @transform_20, window_bounds = array<i64: 1, 32>}, {transform_indices = @transform_21, window_bounds = array<i64: 1, 8, 32>}]} {
    %c0 = arith.constant 0 : index
    %c0_0 = arith.constant 0 : index
    %c0_1 = arith.constant 0 : index
    %0 = vector.load %arg2[%c0, %c0_0, %c0_1] : memref<1x8x32xf32, #tpu.memory_space<vmem>>, vector<1x8x32xf32>
    %1 = vector.shape_cast %0 : vector<1x8x32xf32> to vector<8x32xf32>
    %c0_2 = arith.constant 0 : index
    %c0_3 = arith.constant 0 : index
    %c0_4 = arith.constant 0 : index
    %2 = vector.load %arg3[%c0_2, %c0_3, %c0_4] : memref<1x8x32xf32, #tpu.memory_space<vmem>>, vector<1x8x32xf32>
    %3 = vector.shape_cast %2 : vector<1x8x32xf32> to vector<8x32xf32>
    %4 = vector.shape_cast %1 : vector<8x32xf32> to vector<1x8x32xf32>
    %5 = vector.shape_cast %4 : vector<1x8x32xf32> to vector<1x8x32xf32>
    %6 = vector.broadcast %5 : vector<1x8x32xf32> to vector<4x8x32xf32>
    %7 = vector.shape_cast %3 : vector<8x32xf32> to vector<1x8x32xf32>
    %8 = vector.shape_cast %7 : vector<1x8x32xf32> to vector<1x8x32xf32>
    %9 = vector.broadcast %8 : vector<1x8x32xf32> to vector<4x8x32xf32>
    %c0_5 = arith.constant 0 : index
    %c0_6 = arith.constant 0 : index
    %c0_7 = arith.constant 0 : index
    %10 = vector.load %arg5[%c0_5, %c0_6, %c0_7] : memref<4x32x8xf32, #tpu.memory_space<vmem>>, vector<4x32x8xf32>
    %cst = arith.constant dense<0.000000e+00> : vector<4x8x8xf32>
    %11 = tpu.matmul %6, %10, %cst {dimension_numbers = #tpu.dot_dimension_numbers<[2], [1], [1], [2], [0, 0, 0, 1, 1, 2], [0], [0]>} : vector<4x8x32xf32>, vector<4x32x8xf32>, vector<4x8x8xf32> -> vector<4x8x8xf32>
    %c0_8 = arith.constant 0 : index
    %c0_9 = arith.constant 0 : index
    %c0_10 = arith.constant 0 : index
    %12 = vector.load %arg6[%c0_8, %c0_9, %c0_10] : memref<4x1x8xf32, #tpu.memory_space<vmem>>, vector<4x1x8xf32>
    %13 = vector.broadcast %12 : vector<4x1x8xf32> to vector<4x8x8xf32>
    %14 = arith.addf %11, %13 : vector<4x8x8xf32>
    %c0_11 = arith.constant 0 : index
    %c0_12 = arith.constant 0 : index
    %c0_13 = arith.constant 0 : index
    %15 = vector.load %arg7[%c0_11, %c0_12, %c0_13] : memref<4x32x8xf32, #tpu.memory_space<vmem>>, vector<4x32x8xf32>
    %cst_14 = arith.constant dense<0.000000e+00> : vector<4x8x8xf32>
    %16 = tpu.matmul %9, %15, %cst_14 {dimension_numbers = #tpu.dot_dimension_numbers<[2], [1], [1], [2], [0, 0, 0, 1, 1, 2], [0], [0]>} : vector<4x8x32xf32>, vector<4x32x8xf32>, vector<4x8x8xf32> -> vector<4x8x8xf32>
    %c0_15 = arith.constant 0 : index
    %c0_16 = arith.constant 0 : index
    %c0_17 = arith.constant 0 : index
    %17 = vector.load %arg8[%c0_15, %c0_16, %c0_17] : memref<4x1x8xf32, #tpu.memory_space<vmem>>, vector<4x1x8xf32>
    %18 = vector.broadcast %17 : vector<4x1x8xf32> to vector<4x8x8xf32>
    %19 = arith.addf %16, %18 : vector<4x8x8xf32>
    %c0_18 = arith.constant 0 : index
    %c0_19 = arith.constant 0 : index
    %c0_20 = arith.constant 0 : index
    %20 = vector.load %arg9[%c0_18, %c0_19, %c0_20] : memref<4x32x8xf32, #tpu.memory_space<vmem>>, vector<4x32x8xf32>
    %cst_21 = arith.constant dense<0.000000e+00> : vector<4x8x8xf32>
    %21 = tpu.matmul %9, %20, %cst_21 {dimension_numbers = #tpu.dot_dimension_numbers<[2], [1], [1], [2], [0, 0, 0, 1, 1, 2], [0], [0]>} : vector<4x8x32xf32>, vector<4x32x8xf32>, vector<4x8x8xf32> -> vector<4x8x8xf32>
    %c0_22 = arith.constant 0 : index
    %c0_23 = arith.constant 0 : index
    %c0_24 = arith.constant 0 : index
    %22 = vector.load %arg10[%c0_22, %c0_23, %c0_24] : memref<4x1x8xf32, #tpu.memory_space<vmem>>, vector<4x1x8xf32>
    %23 = vector.broadcast %22 : vector<4x1x8xf32> to vector<4x8x8xf32>
    %24 = arith.addf %21, %23 : vector<4x8x8xf32>
    %cst_25 = arith.constant dense<0.000000e+00> : vector<4x8x8xf32>
    %25 = tpu.matmul %14, %19, %cst_25 {dimension_numbers = #tpu.dot_dimension_numbers<[2], [2], [1], [1], [0, 0, 0, 1, 1, 1], [0], [0]>} : vector<4x8x8xf32>, vector<4x8x8xf32>, vector<4x8x8xf32> -> vector<4x8x8xf32>
    %c0_26 = arith.constant 0 : index
    %c0_27 = arith.constant 0 : index
    %c0_28 = arith.constant 0 : index
    %c0_29 = arith.constant 0 : index
    %26 = vector.load %arg4[%c0_26, %c0_27, %c0_28, %c0_29] : memref<1x4x8x8xf32, #tpu.memory_space<vmem>>, vector<1x4x8x8xf32>
    %27 = vector.shape_cast %26 : vector<1x4x8x8xf32> to vector<4x8x8xf32>
    %28 = arith.addf %25, %27 : vector<4x8x8xf32>
    %cst_30 = arith.constant dense<0xFF800000> : vector<4x8xf32>
    %29 = vector.multi_reduction <maximumf>, %28, %cst_30 [2] : vector<4x8x8xf32> to vector<4x8xf32>
    %30 = vector.shape_cast %29 : vector<4x8xf32> to vector<4x8x1xf32>
    %31 = vector.broadcast %30 : vector<4x8x1xf32> to vector<4x8x8xf32>
    %32 = arith.subf %28, %31 : vector<4x8x8xf32>
    %33 = math.exp %32 : vector<4x8x8xf32>
    %cst_31 = arith.constant dense<0.000000e+00> : vector<4x8xf32>
    %34 = vector.multi_reduction <add>, %33, %cst_31 [2] : vector<4x8x8xf32> to vector<4x8xf32>
    %35 = vector.shape_cast %34 : vector<4x8xf32> to vector<4x8x1xf32>
    %36 = tpu.reciprocal %35 {approx = true} : vector<4x8x1xf32> -> vector<4x8x1xf32>
    %37 = vector.broadcast %36 : vector<4x8x1xf32> to vector<4x8x8xf32>
    %38 = arith.mulf %33, %37 : vector<4x8x8xf32>
    %cst_32 = arith.constant dense<0.000000e+00> : vector<4x8x8xf32>
    %39 = tpu.matmul %38, %24, %cst_32 {dimension_numbers = #tpu.dot_dimension_numbers<[2], [1], [1], [2], [0, 0, 0, 1, 1, 2], [0], [0]>} : vector<4x8x8xf32>, vector<4x8x8xf32>, vector<4x8x8xf32> -> vector<4x8x8xf32>
    %c0_33 = arith.constant 0 : index
    %c0_34 = arith.constant 0 : index
    %c0_35 = arith.constant 0 : index
    %40 = vector.load %arg11[%c0_33, %c0_34, %c0_35] : memref<4x8x32xf32, #tpu.memory_space<vmem>>, vector<4x8x32xf32>
    %cst_36 = arith.constant dense<0.000000e+00> : vector<4x8x32xf32>
    %41 = tpu.matmul %39, %40, %cst_36 {dimension_numbers = #tpu.dot_dimension_numbers<[2], [1], [1], [2], [0, 0, 0, 1, 1, 2], [0], [0]>} : vector<4x8x8xf32>, vector<4x8x32xf32>, vector<4x8x32xf32> -> vector<4x8x32xf32>
    %cst_37 = arith.constant dense<0.000000e+00> : vector<8x32xf32>
    %42 = vector.multi_reduction <add>, %41, %cst_37 [0] : vector<4x8x32xf32> to vector<8x32xf32>
    %c0_38 = arith.constant 0 : index
    %c0_39 = arith.constant 0 : index
    %43 = vector.load %arg12[%c0_38, %c0_39] : memref<1x32xf32, #tpu.memory_space<vmem>>, vector<1x32xf32>
    %44 = vector.broadcast %43 : vector<1x32xf32> to vector<8x32xf32>
    %45 = arith.addf %42, %44 : vector<8x32xf32>
    %cst_40 = arith.constant 0.000000e+00 : f32
    %46 = vector.broadcast %cst_40 : f32 to vector<8x32xf32>
    %47 = arith.subf %46, %45 : vector<8x32xf32>
    %48 = math.exp %47 : vector<8x32xf32>
    %cst_41 = arith.constant 1.000000e+00 : f32
    %49 = vector.broadcast %cst_41 : f32 to vector<8x32xf32>
    %50 = arith.addf %49, %48 : vector<8x32xf32>
    %51 = tpu.reciprocal %50 {approx = true} : vector<8x32xf32> -> vector<8x32xf32>
    %52 = arith.mulf %45, %51 : vector<8x32xf32>
    %c0_42 = arith.constant 0 : index
    %c0_43 = arith.constant 0 : index
    %53 = vector.load %arg13[%c0_42, %c0_43] : memref<32x32xf32, #tpu.memory_space<vmem>>, vector<32x32xf32>
    %cst_44 = arith.constant dense<0.000000e+00> : vector<8x32xf32>
    %54 = tpu.matmul %52, %53, %cst_44 {dimension_numbers = #tpu.dot_dimension_numbers<[1], [0], [0], [1], [0, 0, 1, 1], [], []>} : vector<8x32xf32>, vector<32x32xf32>, vector<8x32xf32> -> vector<8x32xf32>
    %c0_45 = arith.constant 0 : index
    %c0_46 = arith.constant 0 : index
    %55 = vector.load %arg14[%c0_45, %c0_46] : memref<1x32xf32, #tpu.memory_space<vmem>>, vector<1x32xf32>
    %56 = vector.broadcast %55 : vector<1x32xf32> to vector<8x32xf32>
    %57 = arith.addf %54, %56 : vector<8x32xf32>
    %58 = arith.addf %57, %1 : vector<8x32xf32>
    %c0_47 = arith.constant 0 : index
    %c0_48 = arith.constant 0 : index
    %59 = vector.load %arg15[%c0_47, %c0_48] : memref<1x32xf32, #tpu.memory_space<vmem>>, vector<1x32xf32>
    %c0_49 = arith.constant 0 : index
    %c0_50 = arith.constant 0 : index
    %60 = vector.load %arg16[%c0_49, %c0_50] : memref<1x32xf32, #tpu.memory_space<vmem>>, vector<1x32xf32>
    %cst_51 = arith.constant dense<0.000000e+00> : vector<8xf32>
    %61 = vector.multi_reduction <add>, %58, %cst_51 [1] : vector<8x32xf32> to vector<8xf32>
    %62 = vector.shape_cast %61 : vector<8xf32> to vector<8x1xf32>
    %cst_52 = arith.constant 3.200000e+01 : f32
    %63 = vector.broadcast %cst_52 : f32 to vector<8x1xf32>
    %64 = arith.divf %62, %63 : vector<8x1xf32>
    %65 = vector.broadcast %64 : vector<8x1xf32> to vector<8x32xf32>
    %66 = arith.subf %58, %65 : vector<8x32xf32>
    %67 = arith.mulf %66, %66 : vector<8x32xf32>
    %cst_53 = arith.constant dense<0.000000e+00> : vector<8xf32>
    %68 = vector.multi_reduction <add>, %67, %cst_53 [1] : vector<8x32xf32> to vector<8xf32>
    %69 = vector.shape_cast %68 : vector<8xf32> to vector<8x1xf32>
    %cst_54 = arith.constant 3.200000e+01 : f32
    %70 = vector.broadcast %cst_54 : f32 to vector<8x1xf32>
    %71 = arith.divf %69, %70 : vector<8x1xf32>
    %72 = vector.broadcast %64 : vector<8x1xf32> to vector<8x32xf32>
    %73 = arith.subf %58, %72 : vector<8x32xf32>
    %cst_55 = arith.constant 9.99999997E-7 : f32
    %74 = vector.broadcast %cst_55 : f32 to vector<8x1xf32>
    %75 = arith.addf %71, %74 : vector<8x1xf32>
    %76 = math.rsqrt %75 : vector<8x1xf32>
    %77 = vector.broadcast %76 : vector<8x1xf32> to vector<8x32xf32>
    %78 = arith.mulf %73, %77 : vector<8x32xf32>
    %79 = vector.broadcast %59 : vector<1x32xf32> to vector<8x32xf32>
    %80 = arith.mulf %78, %79 : vector<8x32xf32>
    %81 = vector.broadcast %60 : vector<1x32xf32> to vector<8x32xf32>
    %82 = arith.addf %80, %81 : vector<8x32xf32>
    %c0_56 = arith.constant 0 : index
    %c0_57 = arith.constant 0 : index
    %83 = vector.load %arg17[%c0_56, %c0_57] : memref<32x64xf32, #tpu.memory_space<vmem>>, vector<32x64xf32>
    %cst_58 = arith.constant dense<0.000000e+00> : vector<8x64xf32>
    %84 = tpu.matmul %82, %83, %cst_58 {dimension_numbers = #tpu.dot_dimension_numbers<[1], [0], [0], [1], [0, 0, 1, 1], [], []>} : vector<8x32xf32>, vector<32x64xf32>, vector<8x64xf32> -> vector<8x64xf32>
    %c0_59 = arith.constant 0 : index
    %c0_60 = arith.constant 0 : index
    %85 = vector.load %arg18[%c0_59, %c0_60] : memref<1x64xf32, #tpu.memory_space<vmem>>, vector<1x64xf32>
    %86 = vector.broadcast %85 : vector<1x64xf32> to vector<8x64xf32>
    %87 = arith.addf %84, %86 : vector<8x64xf32>
    %cst_61 = arith.constant 5.000000e-01 : f32
    %88 = vector.broadcast %cst_61 : f32 to vector<8x64xf32>
    %89 = arith.mulf %88, %87 : vector<8x64xf32>
    %cst_62 = arith.constant 0.707106769 : f32
    %90 = vector.broadcast %cst_62 : f32 to vector<8x64xf32>
    %91 = arith.mulf %87, %90 : vector<8x64xf32>
    %92 = math.absf %91 : vector<8x64xf32>
    %cst_63 = arith.constant 0.327591091 : f32
    %93 = vector.broadcast %cst_63 : f32 to vector<8x64xf32>
    %94 = arith.mulf %93, %92 : vector<8x64xf32>
    %cst_64 = arith.constant 1.000000e+00 : f32
    %95 = vector.broadcast %cst_64 : f32 to vector<8x64xf32>
    %96 = arith.addf %95, %94 : vector<8x64xf32>
    %97 = tpu.reciprocal %96 {approx = true} : vector<8x64xf32> -> vector<8x64xf32>
    %cst_65 = arith.constant 1.06140542 : f32
    %98 = vector.broadcast %cst_65 : f32 to vector<8x64xf32>
    %99 = arith.mulf %97, %98 : vector<8x64xf32>
    %cst_66 = arith.constant -1.45315206 : f32
    %100 = vector.broadcast %cst_66 : f32 to vector<8x64xf32>
    %101 = arith.addf %100, %99 : vector<8x64xf32>
    %102 = arith.mulf %97, %101 : vector<8x64xf32>
    %cst_67 = arith.constant 1.42141378 : f32
    %103 = vector.broadcast %cst_67 : f32 to vector<8x64xf32>
    %104 = arith.addf %103, %102 : vector<8x64xf32>
    %105 = arith.mulf %97, %104 : vector<8x64xf32>
    %cst_68 = arith.constant -0.284496725 : f32
    %106 = vector.broadcast %cst_68 : f32 to vector<8x64xf32>
    %107 = arith.addf %106, %105 : vector<8x64xf32>
    %108 = arith.mulf %97, %107 : vector<8x64xf32>
    %cst_69 = arith.constant 0.254829586 : f32
    %109 = vector.broadcast %cst_69 : f32 to vector<8x64xf32>
    %110 = arith.addf %109, %108 : vector<8x64xf32>
    %111 = arith.mulf %97, %110 : vector<8x64xf32>
    %cst_70 = arith.constant 0.000000e+00 : f32
    %112 = vector.broadcast %cst_70 : f32 to vector<8x64xf32>
    %113 = arith.subf %112, %92 : vector<8x64xf32>
    %114 = arith.mulf %113, %92 : vector<8x64xf32>
    %115 = math.exp %114 : vector<8x64xf32>
    %116 = arith.mulf %111, %115 : vector<8x64xf32>
    %cst_71 = arith.constant 1.000000e+00 : f32
    %117 = vector.broadcast %cst_71 : f32 to vector<8x64xf32>
    %118 = arith.subf %117, %116 : vector<8x64xf32>
    %cst_72 = arith.constant 0.000000e+00 : f32
    %119 = vector.broadcast %cst_72 : f32 to vector<8x64xf32>
    %120 = arith.cmpf oge, %91, %119 : vector<8x64xf32>
    %cst_73 = arith.constant 0.000000e+00 : f32
    %121 = vector.broadcast %cst_73 : f32 to vector<8x64xf32>
    %122 = arith.subf %121, %118 : vector<8x64xf32>
    %123 = arith.select %120, %118, %122 : vector<8x64xi1>, vector<8x64xf32>
    %cst_74 = arith.constant 1.000000e+00 : f32
    %124 = vector.broadcast %cst_74 : f32 to vector<8x64xf32>
    %125 = arith.addf %124, %123 : vector<8x64xf32>
    %126 = arith.mulf %89, %125 : vector<8x64xf32>
    %c0_75 = arith.constant 0 : index
    %c0_76 = arith.constant 0 : index
    %127 = vector.load %arg19[%c0_75, %c0_76] : memref<64x32xf32, #tpu.memory_space<vmem>>, vector<64x32xf32>
    %cst_77 = arith.constant dense<0.000000e+00> : vector<8x32xf32>
    %128 = tpu.matmul %126, %127, %cst_77 {dimension_numbers = #tpu.dot_dimension_numbers<[1], [0], [0], [1], [0, 0, 1, 1], [], []>} : vector<8x64xf32>, vector<64x32xf32>, vector<8x32xf32> -> vector<8x32xf32>
    %c0_78 = arith.constant 0 : index
    %c0_79 = arith.constant 0 : index
    %129 = vector.load %arg20[%c0_78, %c0_79] : memref<1x32xf32, #tpu.memory_space<vmem>>, vector<1x32xf32>
    %130 = vector.broadcast %129 : vector<1x32xf32> to vector<8x32xf32>
    %131 = arith.addf %128, %130 : vector<8x32xf32>
    %132 = arith.addf %131, %82 : vector<8x32xf32>
    %c0_80 = arith.constant 0 : index
    %c0_81 = arith.constant 0 : index
    %133 = vector.load %arg21[%c0_80, %c0_81] : memref<1x32xf32, #tpu.memory_space<vmem>>, vector<1x32xf32>
    %c0_82 = arith.constant 0 : index
    %c0_83 = arith.constant 0 : index
    %134 = vector.load %arg22[%c0_82, %c0_83] : memref<1x32xf32, #tpu.memory_space<vmem>>, vector<1x32xf32>
    %cst_84 = arith.constant dense<0.000000e+00> : vector<8xf32>
    %135 = vector.multi_reduction <add>, %132, %cst_84 [1] : vector<8x32xf32> to vector<8xf32>
    %136 = vector.shape_cast %135 : vector<8xf32> to vector<8x1xf32>
    %cst_85 = arith.constant 3.200000e+01 : f32
    %137 = vector.broadcast %cst_85 : f32 to vector<8x1xf32>
    %138 = arith.divf %136, %137 : vector<8x1xf32>
    %139 = vector.broadcast %138 : vector<8x1xf32> to vector<8x32xf32>
    %140 = arith.subf %132, %139 : vector<8x32xf32>
    %141 = arith.mulf %140, %140 : vector<8x32xf32>
    %cst_86 = arith.constant dense<0.000000e+00> : vector<8xf32>
    %142 = vector.multi_reduction <add>, %141, %cst_86 [1] : vector<8x32xf32> to vector<8xf32>
    %143 = vector.shape_cast %142 : vector<8xf32> to vector<8x1xf32>
    %cst_87 = arith.constant 3.200000e+01 : f32
    %144 = vector.broadcast %cst_87 : f32 to vector<8x1xf32>
    %145 = arith.divf %143, %144 : vector<8x1xf32>
    %146 = vector.broadcast %138 : vector<8x1xf32> to vector<8x32xf32>
    %147 = arith.subf %132, %146 : vector<8x32xf32>
    %cst_88 = arith.constant 9.99999997E-7 : f32
    %148 = vector.broadcast %cst_88 : f32 to vector<8x1xf32>
    %149 = arith.addf %145, %148 : vector<8x1xf32>
    %150 = math.rsqrt %149 : vector<8x1xf32>
    %151 = vector.broadcast %150 : vector<8x1xf32> to vector<8x32xf32>
    %152 = arith.mulf %147, %151 : vector<8x32xf32>
    %153 = vector.broadcast %133 : vector<1x32xf32> to vector<8x32xf32>
    %154 = arith.mulf %152, %153 : vector<8x32xf32>
    %155 = vector.broadcast %134 : vector<1x32xf32> to vector<8x32xf32>
    %156 = arith.addf %154, %155 : vector<8x32xf32>
    %c0_89 = arith.constant 0 : index
    %c0_90 = arith.constant 0 : index
    %c0_91 = arith.constant 0 : index
    %157 = vector.load %arg23[%c0_89, %c0_90, %c0_91] : memref<1x8x32xf32, #tpu.memory_space<vmem>>, vector<1x8x32xf32>
    %158 = vector.shape_cast %157 : vector<1x8x32xf32> to vector<8x32xf32>
    %159 = vector.shape_cast %156 : vector<8x32xf32> to vector<1x8x32xf32>
    tpu.vector_store %arg23[%c0_89, %c0_90, %c0_91], %159 {strides = array<i32>} : memref<1x8x32xf32, #tpu.memory_space<vmem>>, vector<1x8x32xf32>,
    return
  }
  func.func @transform_0(%arg0: i32, %arg1: i32) -> (i32, i32, i32) {
    %c0_i32 = arith.constant 0 : i32
    %c0_i32_0 = arith.constant 0 : i32
    return %arg0, %arg1, %c0_i32 : i32, i32, i32
  }
  func.func @transform_1(%arg0: i32, %arg1: i32) -> (i32, i32, i32) {
    %c0_i32 = arith.constant 0 : i32
    %c0_i32_0 = arith.constant 0 : i32
    %c0_i32_1 = arith.constant 0 : i32
    return %arg0, %c0_i32, %c0_i32_0 : i32, i32, i32
  }
  func.func @transform_2(%arg0: i32, %arg1: i32) -> (i32, i32, i32, i32) {
    %c0_i32 = arith.constant 0 : i32
    %c0_i32_0 = arith.constant 0 : i32
    %c0_i32_1 = arith.constant 0 : i32
    return %arg0, %c0_i32, %arg1, %c0_i32_0 : i32, i32, i32, i32
  }
  func.func @transform_3(%arg0: i32, %arg1: i32) -> (i32, i32, i32) {
    %c0_i32 = arith.constant 0 : i32
    %c0_i32_0 = arith.constant 0 : i32
    %c0_i32_1 = arith.constant 0 : i32
    %c0_i32_2 = arith.constant 0 : i32
    return %c0_i32, %c0_i32_0, %c0_i32_1 : i32, i32, i32
  }
  func.func @transform_4(%arg0: i32, %arg1: i32) -> (i32, i32, i32) {
    %c0_i32 = arith.constant 0 : i32
    %c0_i32_0 = arith.constant 0 : i32
    %c0_i32_1 = arith.constant 0 : i32
    %c0_i32_2 = arith.constant 0 : i32
    return %c0_i32, %c0_i32_0, %c0_i32_1 : i32, i32, i32
  }
  func.func @transform_5(%arg0: i32, %arg1: i32) -> (i32, i32, i32) {
    %c0_i32 = arith.constant 0 : i32
    %c0_i32_0 = arith.constant 0 : i32
    %c0_i32_1 = arith.constant 0 : i32
    %c0_i32_2 = arith.constant 0 : i32
    return %c0_i32, %c0_i32_0, %c0_i32_1 : i32, i32, i32
  }
  func.func @transform_6(%arg0: i32, %arg1: i32) -> (i32, i32, i32) {
    %c0_i32 = arith.constant 0 : i32
    %c0_i32_0 = arith.constant 0 : i32
    %c0_i32_1 = arith.constant 0 : i32
    %c0_i32_2 = arith.constant 0 : i32
    return %c0_i32, %c0_i32_0, %c0_i32_1 : i32, i32, i32
  }
  func.func @transform_7(%arg0: i32, %arg1: i32) -> (i32, i32, i32) {
    %c0_i32 = arith.constant 0 : i32
    %c0_i32_0 = arith.constant 0 : i32
    %c0_i32_1 = arith.constant 0 : i32
    %c0_i32_2 = arith.constant 0 : i32
    return %c0_i32, %c0_i32_0, %c0_i32_1 : i32, i32, i32
  }
  func.func @transform_8(%arg0: i32, %arg1: i32) -> (i32, i32, i32) {
    %c0_i32 = arith.constant 0 : i32
    %c0_i32_0 = arith.constant 0 : i32
    %c0_i32_1 = arith.constant 0 : i32
    %c0_i32_2 = arith.constant 0 : i32
    return %c0_i32, %c0_i32_0, %c0_i32_1 : i32, i32, i32
  }
  func.func @transform_9(%arg0: i32, %arg1: i32) -> (i32, i32, i32) {
    %c0_i32 = arith.constant 0 : i32
    %c0_i32_0 = arith.constant 0 : i32
    %c0_i32_1 = arith.constant 0 : i32
    %c0_i32_2 = arith.constant 0 : i32
    return %c0_i32, %c0_i32_0, %c0_i32_1 : i32, i32, i32
  }
  func.func @transform_10(%arg0: i32, %arg1: i32) -> (i32, i32) {
    %c0_i32 = arith.constant 0 : i32
    %c0_i32_0 = arith.constant 0 : i32
    %c0_i32_1 = arith.constant 0 : i32
    return %c0_i32, %c0_i32_0 : i32, i32
  }
  func.func @transform_11(%arg0: i32, %arg1: i32) -> (i32, i32) {
    %c0_i32 = arith.constant 0 : i32
    %c0_i32_0 = arith.constant 0 : i32
    %c0_i32_1 = arith.constant 0 : i32
    return %c0_i32, %c0_i32_0 : i32, i32
  }
  func.func @transform_12(%arg0: i32, %arg1: i32) -> (i32, i32) {
    %c0_i32 = arith.constant 0 : i32
    %c0_i32_0 = arith.constant 0 : i32
    %c0_i32_1 = arith.constant 0 : i32
    return %c0_i32, %c0_i32_0 : i32, i32
  }
  func.func @transform_13(%arg0: i32, %arg1: i32) -> (i32, i32) {
    %c0_i32 = arith.constant 0 : i32
    %c0_i32_0 = arith.constant 0 : i32
    %c0_i32_1 = arith.constant 0 : i32
    return %c0_i32, %c0_i32_0 : i32, i32
  }
  func.func @transform_14(%arg0: i32, %arg1: i32) -> (i32, i32) {
    %c0_i32 = arith.constant 0 : i32
    %c0_i32_0 = arith.constant 0 : i32
    %c0_i32_1 = arith.constant 0 : i32
    return %c0_i32, %c0_i32_0 : i32, i32
  }
  func.func @transform_15(%arg0: i32, %arg1: i32) -> (i32, i32) {
    %c0_i32 = arith.constant 0 : i32
    %c0_i32_0 = arith.constant 0 : i32
    %c0_i32_1 = arith.constant 0 : i32
    return %c0_i32, %c0_i32_0 : i32, i32
  }
  func.func @transform_16(%arg0: i32, %arg1: i32) -> (i32, i32) {
    %c0_i32 = arith.constant 0 : i32
    %c0_i32_0 = arith.constant 0 : i32
    %c0_i32_1 = arith.constant 0 : i32
    return %c0_i32, %c0_i32_0 : i32, i32
  }
  func.func @transform_17(%arg0: i32, %arg1: i32) -> (i32, i32) {
    %c0_i32 = arith.constant 0 : i32
    %c0_i32_0 = arith.constant 0 : i32
    %c0_i32_1 = arith.constant 0 : i32
    return %c0_i32, %c0_i32_0 : i32, i32
  }
  func.func @transform_18(%arg0: i32, %arg1: i32) -> (i32, i32) {
    %c0_i32 = arith.constant 0 : i32
    %c0_i32_0 = arith.constant 0 : i32
    %c0_i32_1 = arith.constant 0 : i32
    return %c0_i32, %c0_i32_0 : i32, i32
  }
  func.func @transform_19(%arg0: i32, %arg1: i32) -> (i32, i32) {
    %c0_i32 = arith.constant 0 : i32
    %c0_i32_0 = arith.constant 0 : i32
    %c0_i32_1 = arith.constant 0 : i32
    return %c0_i32, %c0_i32_0 : i32, i32
  }
  func.func @transform_20(%arg0: i32, %arg1: i32) -> (i32, i32) {
    %c0_i32 = arith.constant 0 : i32
    %c0_i32_0 = arith.constant 0 : i32
    %c0_i32_1 = arith.constant 0 : i32
    return %c0_i32, %c0_i32_0 : i32, i32
  }
  func.func @transform_21(%arg0: i32, %arg1: i32) -> (i32, i32, i32) {
    %c0_i32 = arith.constant 0 : i32
    %c0_i32_0 = arith.constant 0 : i32
    return %arg0, %arg1, %c0_i32 : i32, i32, i32
  }
}

</mosaic_0001>

<bundles_post_ra>
// kernel: tpu_custom_call.1
= control target key start
LH: loop header
LB: loop body
LE: loop exit
PB: predicated region body
PF: predicated region fallthrough
CT: control target
= control target key end

     0   :  { %s6167_s0 = inlined_call_operand.hbm [shape: f32[2,8,32], index: 0, kind: input, shape index: {}]   ;;  %s6168_s1 = inlined_call_operand.hbm [shape: f32[2,8,32], index: 1, kind: input, shape index: {}]   ;;  %s6169_s2 = inlined_call_operand.hbm [shape: f32[2,4,8,8], index: 2, kind: input, shape index: {}]   ;;  %s6170_s3 = inlined_call_operand.hbm [shape: f32[4,32,8], index: 3, kind: input, shape index: {}]   ;;  %s6171_s4 = inlined_call_operand.hbm [shape: f32[4,1,8], index: 4, kind: input, shape index: {}]   ;;  %s6172_s5 = inlined_call_operand.hbm [shape: f32[4,32,8], index: 5, kind: input, shape index: {}]   ;;  %s6173_s6 = inlined_call_operand.hbm [shape: f32[4,1,8], index: 6, kind: input, shape index: {}]   ;;  %s6174_s7 = inlined_call_operand.hbm [shape: f32[4,32,8], index: 7, kind: input, shape index: {}]   ;;  %s6175_s8 = inlined_call_operand.hbm [shape: f32[4,1,8], index: 8, kind: input, shape index: {}]   ;;  %s6176_s9 = inlined_call_operand.hbm [shape: f32[4,8,32], index: 9, kind: input, shape index: {}]   ;;  %s6177_s10 = inlined_call_operand.hbm [shape: f32[1,32], index: 10, kind: input, shape index: {}]   ;;  %s6178_s11 = inlined_call_operand.hbm [shape: f32[32,32], index: 11, kind: input, shape index: {}]   ;;  %s6179_s12 = inlined_call_operand.hbm [shape: f32[1,32], index: 12, kind: input, shape index: {}]   ;;  %s6180_s13 = inlined_call_operand.hbm [shape: f32[1,32], index: 13, kind: input, shape index: {}]   ;;  %s6181_s14 = inlined_call_operand.hbm [shape: f32[1,32], index: 14, kind: input, shape index: {}]   ;;  %s6182_s15 = inlined_call_operand.hbm [shape: f32[32,64], index: 15, kind: input, shape index: {}]   ;;  %s6183_s16 = inlined_call_operand.hbm [shape: f32[1,64], index: 16, kind: input, shape index: {}]   ;;  %s6184_s17 = inlined_call_operand.hbm [shape: f32[64,32], index: 17, kind: input, shape index: {}]   ;;  %s6185_s18 = inlined_call_operand.hbm [shape: f32[1,32], index: 18, kind: input, shape index: {}]   ;;  %s6186_s19 = inlined_call_operand.hbm [shape: f32[1,32], index: 19, kind: input, shape index: {}]   ;;  %s6187_s20 = inlined_call_operand.hbm [shape: f32[1,32], index: 20, kind: input, shape index: {}]   ;;  %s6188_s21 = inlined_call_operand.hbm [shape: f32[2,8,32], index: 21, kind: output, shape index: {}]  }
   0x1   :  { %6233 = sst [smem:[#allocation55_spill]] %s6167_s0 }
   0x2   :  { %6234 = sst [smem:[#allocation56_spill]] %s6168_s1 }
   0x3   :  { %6235 = sst [smem:[#allocation57_spill]] %s6169_s2 }
   0x4   :  { %6236 = sst [smem:[#allocation58_spill]] %s6170_s3 }
   0x5   :  { %6237 = sst [smem:[#allocation59_spill]] %s6171_s4 }
   0x6   :  { %6238 = sst [smem:[#allocation60_spill]] %s6172_s5 }
   0x7   :  { %6239 = sst [smem:[#allocation61_spill]] %s6173_s6 }
   0x8   :  { %6240 = sst [smem:[#allocation62_spill]] %s6174_s7 }
   0x9   :  { %6241 = sst [smem:[#allocation63_spill]] %s6175_s8 }
   0xa   :  { %6242 = sst [smem:[#allocation64_spill]] %s6176_s9 }
   0xb   :  { %6243 = sst [smem:[#allocation65_spill]] %s6177_s10 }
   0xc   :  { %6244 = sst [smem:[#allocation66_spill]] %s6178_s11 }
   0xd   :  { %6245 = sst [smem:[#allocation67_spill]] %s6179_s12 }
   0xe   :  { %6246 = sst [smem:[#allocation68_spill]] %s6180_s13 }
   0xf   :  { %6247 = sst [smem:[#allocation69_spill]] %s6181_s14 }
  0x10   :  { %6248 = sst [smem:[#allocation70_spill]] %s6182_s15 }
  0x11   :  { %6249 = sst [smem:[#allocation71_spill]] %s6183_s16 }
  0x12   :  { %6250 = sst [smem:[#allocation72_spill]] %s6184_s17 }
  0x13   :  { %6251 = sst [smem:[#allocation73_spill]] %s6185_s18 }
  0x14   :  { %6252 = sst [smem:[#allocation74_spill]] %s6186_s19 }
  0x15   :  { %6253 = sst [smem:[#allocation75_spill]] %s6187_s20 }
  0x16   :  { %6254 = sst [smem:[#allocation76_spill]] %s6188_s21 }
  0x17   :  { %26 = vsyncpa [#allocation3], 0 }
  0x18   :  { %28 = vsyncpa [#allocation3 + $0x1], 0 }
  0x19   :  { %29 = vsyncpa [#allocation6], 0 }
  0x1a   :  { %31 = vsyncpa [#allocation6 + $0x1], 0 }
  0x1b   :  { %32 = vsyncpa [#allocation9], 0 }
  0x1c   :  { %33 = vsyncpa [#allocation12], 0 }
  0x1d   :  { %34 = vsyncpa [#allocation15], 0 }
  0x1e   :  { %35 = vsyncpa [#allocation18], 0 }
  0x1f   :  { %36 = vsyncpa [#allocation21], 0 }
  0x20   :  { %37 = vsyncpa [#allocation24], 0 }
  0x21   :  { %38 = vsyncpa [#allocation27], 0 }
  0x22   :  { %39 = vsyncpa [#allocation30], 0 }
  0x23   :  { %40 = vsyncpa [#allocation33], 0 }
  0x24   :  { %41 = vsyncpa [#allocation4], 0 }
  0x25   :  { %43 = vsyncpa [#allocation4 + $0x1], 0  ;;  %s5295_s2 = smov 0   ;;  %s5297_s25 = smov 0  }
  0x26   :  { %s5299_s26 = smov 0   ;;  %s5301_s27 = smov 0  }
  0x27   :  { %s5303_s3 = smov 0   ;;  %s5305_s28 = smov 0  }
  0x28 LB: > { %6255 = sst [smem:[#allocation48_spill]] %s5142_s26  ;;  %s5326_s29 = sadd.s32 4294967295, %s5154_s28   ;;  %s5154_s28 = sphi %s5305_s28, %s49_s28   ;;  %s5150_s3 = sphi %s5303_s3, %s6338_s3   ;;  %s5146_s27 = sphi %s5301_s27, %s6337_s27   ;;  %s5142_s26 = sphi %s5299_s26, %s6333_s26   ;;  %s5138_s25 = sphi %s5297_s25, %s6336_s25   ;;  %s5134_s2 = sphi %s5295_s2, %s6335_s2  }
  0x29   : > { %6256 = sst [smem:[#allocation49_spill]] %s5146_s27  ;;  %p3612_p0 = scmp.ge.s32.totalorder %s5154_s28, 1 }
  0x2a   : > { %6257 = sst [smem:[#allocation50_spill]] %s5154_s28  ;;  %p6205_p1 = scmp.eq.s32.totalorder %s5326_s29, 0 }
  0x2b   : > { %p554_p2 = scmp.lt.s32.totalorder %s5154_s28, 3  ;;  %s5156_s4 = smov [#allocation8]  }
  0x2c   : > { %s566_s30 = sshll.u32 %s5156_s4, 4  ;;  %s5157_s22 = smov [#allocation11]   ;;  %s5335_s30 = int_to_ptr.vmem [resolvable:$true] %s566_s30 }
  0x2d   : > { %p5331_p3 = pnand %p3612_p0, %p554_p2  ;;  %s592_s23 = sshll.u32 %s5157_s22, 4  ;;  %s5346_s23 = int_to_ptr.vmem [resolvable:$true] %s592_s23 }
  0x2e   : > { %s5158_s1 = smov [#allocation14]   ;;  %s6261_s27 = sld [smem:[#allocation58_spill]] }
  0x2f   : > { %s6258_s0 = scalar_select %p5331_p3, 1, 0 }
  0x30   : > { %p4230_p4 = pneg %p5331_p3  ;;  %s5348_s24 = sshll.u32 %s5158_s1, 4  ;;  %s619_s24 = int_to_ptr.vmem [resolvable:$true] %s5348_s24 }
  0x31   : > { %6259 = sst [smem:[#allocation51_spill]] %s6258_s0 }
  0x32   : > { %p5342_p6 = pnand %p4230_p4, %p6205_p1 }
  0x34   : > { %s6260_s5 = scalar_select %p5342_p6, 1, 0 }
  0x35   : > { %s6262_s20 = smov %s6261_s27  ;;  %s4438_s18 = scalar_lea.hbm %s6261_s27, 2048 }
  0x36   : > { %p4439_p7 = scmp.ne.s32.totalorder %s6262_s20, %s4438_s18  ;;  %p5358_p8 = pneg %p5342_p6 }
  0x37   : > { %p4445_p11 = scmp.lt.u32.totalorder %s4438_s18, %s6262_s20 }
  0x38   : > { %s6263_s14 = scalar_select %p5358_p8, 1, 0 }
  0x39   : > { %p4441_p9 = pnand %p5358_p8, %p4439_p7 }
  0x3b   : > { %p4442_p10 = pneg %p4441_p9 }
  0x3d   : > { %p4447_p12 = pnand %p4445_p11, %p4442_p10 }
  0x3f   : > { %4450 = shalt.err (!%p4447_p12)
}
  0x40   : > { %s4451_s16 = scalar_lea.vmem %s5335_s30, 2048  ;;  %p4459_p4 = scmp.lt.s32.totalorder %s5335_s30, %s5335_s30 }
  0x41   : > { %p4452_p13 = scmp.ne.s32.totalorder %s5335_s30, %s4451_s16  ;;  %p4460_p5 = scmp.lt.s32.totalorder %s4451_s16, %s4451_s16 }
  0x43   : > { %p4454_p0 = pnand %p4452_p13, %p5358_p8  ;;  %p4461_p7 = por %p4460_p5, %p4459_p4 }
  0x45   : > { %p4455_p2 = pneg %p4454_p0 }
  0x47   : > { %p4462_p9 = pnand %p4461_p7, %p4455_p2 }
  0x49   : > { %4465 = shalt.err (!%p4462_p9)
}
  0x4a   : > { %s6208_s21 = smov 128   ;;  %s6209_s18 = smov 8  }
  0x4b   : > { %4233 = dma.hbm_to_vmem [thread:$0]  (!%p5342_p6), %s6262_s20, 2048, %s5335_s30, [#allocation9], %s6208_s21, %s6208_s21, %s6209_s18  }
  0x4c   : > { %s6264_s1 = sld [smem:[#allocation60_spill]] }
  0x52   : > { %s4466_s16 = scalar_lea.hbm %s6264_s1, 2048 }
  0x53   : > { %p4467_p5 = scmp.ne.s32.totalorder %s6264_s1, %s4466_s16  ;;  %p4473_p12 = scmp.lt.u32.totalorder %s4466_s16, %s6264_s1 }
  0x55   : > { %p4469_p10 = pnand %p4467_p5, %p5358_p8 }
  0x57   : > { %p4470_p11 = pneg %p4469_p10 }
  0x59   : > { %p4475_p13 = pnand %p4473_p12, %p4470_p11 }
  0x5b   : > { %4478 = shalt.err (!%p4475_p13)
}
  0x5c   : > { %s4479_s30 = scalar_lea.vmem %s5346_s23, 2048  ;;  %p4487_p7 = scmp.lt.s32.totalorder %s5346_s23, %s5346_s23 }
  0x5d   : > { %p4480_p0 = scmp.ne.s32.totalorder %s5346_s23, %s4479_s30  ;;  %p4488_p9 = scmp.lt.s32.totalorder %s4479_s30, %s4479_s30 }
  0x5f   : > { %p4482_p2 = pnand %p4480_p0, %p5358_p8  ;;  %p4489_p5 = por %p4488_p9, %p4487_p7 }
  0x61   : > { %p4483_p4 = pneg %p4482_p2 }
  0x63   : > { %p4490_p10 = pnand %p4489_p5, %p4483_p4 }
  0x65   : > { %4493 = shalt.err (!%p4490_p10)
}
  0x66   : > { %4239 = dma.hbm_to_vmem [thread:$0]  (!%p5342_p6), %s6264_s1, 2048, %s5346_s23, [#allocation12], %s6208_s21, %s6208_s21, %s6209_s18  }
  0x67   : > { %s6265_s7 = sld [smem:[#allocation62_spill]] }
  0x6d   : > { %s4494_s27 = scalar_lea.hbm %s6265_s7, 2048 }
  0x6e   : > { %p4495_p11 = scmp.ne.s32.totalorder %s6265_s7, %s4494_s27  ;;  %p4501_p0 = scmp.lt.u32.totalorder %s4494_s27, %s6265_s7 }
  0x70   : > { %p4497_p12 = pnand %p4495_p11, %p5358_p8 }
  0x72   : > { %p4498_p13 = pneg %p4497_p12 }
  0x74   : > { %p4503_p2 = pnand %p4501_p0, %p4498_p13 }
  0x76   : > { %4506 = shalt.err (!%p4503_p2)
}
  0x77   : > { %s4507_s30 = scalar_lea.vmem %s619_s24, 2048  ;;  %p4515_p5 = scmp.lt.s32.totalorder %s619_s24, %s619_s24 }
  0x78   : > { %p4508_p4 = scmp.ne.s32.totalorder %s619_s24, %s4507_s30  ;;  %p4516_p10 = scmp.lt.s32.totalorder %s4507_s30, %s4507_s30 }
  0x7a   : > { %p4510_p7 = pnand %p4508_p4, %p5358_p8  ;;  %p4517_p1 = por %p4516_p10, %p4515_p5 }
  0x7c   : > { %p4511_p9 = pneg %p4510_p7 }
  0x7e   : > { %p4518_p3 = pnand %p4517_p1, %p4511_p9 }
  0x80   : > { %4521 = shalt.err (!%p4518_p3)
}
  0x81   : > { %4245 = dma.hbm_to_vmem [thread:$0]  (!%p5342_p6), %s6265_s7, 2048, %s619_s24, [#allocation15], %s6208_s21, %s6208_s21, %s6209_s18  }
  0x82   : > { %s5161_s8 = smov [#allocation17]   ;;  %s5162_s12 = smov [#allocation20]  }
  0x83   : > { %s644_s10 = sshll.u32 %s5161_s8, 4  ;;  %s668_s27 = sshll.u32 %s5162_s12, 4  ;;  %s645_s10 = int_to_ptr.vmem [resolvable:$true] %s644_s10  ;;  %s669_s27 = int_to_ptr.vmem [resolvable:$true] %s668_s27 }
  0x84   : > { %s6266_s9 = sld [smem:[#allocation64_spill]] }
  0x8a   : > { %s4522_s22 = scalar_lea.hbm %s6266_s9, 512 }
  0x8b   : > { %p4523_p1 = scmp.ne.s32.totalorder %s6266_s9, %s4522_s22  ;;  %p4529_p12 = scmp.lt.u32.totalorder %s4522_s22, %s6266_s9 }
  0x8d   : > { %p4525_p3 = pnand %p4523_p1, %p5358_p8 }
  0x8f   : > { %p4526_p11 = pneg %p4525_p3 }
  0x91   : > { %p4531_p13 = pnand %p4529_p12, %p4526_p11 }
  0x93   : > { %4534 = shalt.err (!%p4531_p13)
}
  0x94   : > { %s4535_s24 = scalar_lea.vmem %s645_s10, 512  ;;  %p4543_p7 = scmp.lt.s32.totalorder %s645_s10, %s645_s10 }
  0x95   : > { %p4536_p0 = scmp.ne.s32.totalorder %s645_s10, %s4535_s24  ;;  %p4544_p9 = scmp.lt.s32.totalorder %s4535_s24, %s4535_s24 }
  0x97   : > { %p4538_p2 = pnand %p4536_p0, %p5358_p8  ;;  %p4545_p5 = por %p4544_p9, %p4543_p7 }
  0x99   : > { %p4539_p4 = pneg %p4538_p2 }
  0x9b   : > { %p4546_p10 = pnand %p4545_p5, %p4539_p4 }
  0x9d   : > { %4549 = shalt.err (!%p4546_p10)
}
  0x9e   : > { %4251 = dma.hbm_to_vmem [thread:$0]  (!%p5342_p6), %s6266_s9, 512, %s645_s10, [#allocation18], %s6208_s21, %s6208_s21, %s6209_s18  }
  0x9f   : > { %s6267_s11 = sld [smem:[#allocation66_spill]] }
  0xa5   : > { %s4550_s0 = scalar_lea.hbm %s6267_s11, 512 }
  0xa6   : > { %p4551_p1 = scmp.ne.s32.totalorder %s6267_s11, %s4550_s0  ;;  %p4557_p12 = scmp.lt.u32.totalorder %s4550_s0, %s6267_s11 }
  0xa8   : > { %p4553_p3 = pnand %p4551_p1, %p5358_p8 }
  0xaa   : > { %p4554_p11 = pneg %p4553_p3 }
  0xac   : > { %p4559_p13 = pnand %p4557_p12, %p4554_p11 }
  0xae   : > { %4562 = shalt.err (!%p4559_p13)
}
  0xaf   : > { %s4563_s23 = scalar_lea.vmem %s669_s27, 512  ;;  %p4571_p7 = scmp.lt.s32.totalorder %s669_s27, %s669_s27 }
  0xb0   : > { %p4564_p0 = scmp.ne.s32.totalorder %s669_s27, %s4563_s23  ;;  %p4572_p9 = scmp.lt.s32.totalorder %s4563_s23, %s4563_s23 }
  0xb2   : > { %p4566_p2 = pnand %p4564_p0, %p5358_p8  ;;  %p4573_p5 = por %p4572_p9, %p4571_p7 }
  0xb4   : > { %p4567_p4 = pneg %p4566_p2 }
  0xb6   : > { %p4574_p10 = pnand %p4573_p5, %p4567_p4 }
  0xb8   : > { %4577 = shalt.err (!%p4574_p10)
}
  0xb9   : > { %4257 = dma.hbm_to_vmem [thread:$0]  (!%p5342_p6), %s6267_s11, 512, %s669_s27, [#allocation21], %s6208_s21, %s6208_s21, %s6209_s18  }
  0xba   : > { %s5163_s1 = smov [#allocation23]   ;;  %s5164_s8 = smov [#allocation26]  }
  0xbb   : > { %s693_s6 = sshll.u32 %s5163_s1, 4  ;;  %s714_s12 = sshll.u32 %s5164_s8, 4  ;;  %s694_s6 = int_to_ptr.vmem [resolvable:$true] %s693_s6  ;;  %s715_s12 = int_to_ptr.vmem [resolvable:$true] %s714_s12 }
  0xbc   : > { %s6268_s13 = sld [smem:[#allocation68_spill]] }
  0xc2   : > { %s4578_s22 = scalar_lea.hbm %s6268_s13, 16 }
  0xc3   : > { %p4579_p1 = scmp.ne.s32.totalorder %s6268_s13, %s4578_s22  ;;  %p4585_p12 = scmp.lt.u32.totalorder %s4578_s22, %s6268_s13 }
  0xc5   : > { %p4581_p3 = pnand %p4579_p1, %p5358_p8 }
  0xc7   : > { %p4582_p11 = pneg %p4581_p3 }
  0xc9   : > { %p4587_p13 = pnand %p4585_p12, %p4582_p11 }
  0xcb   : > { %4590 = shalt.err (!%p4587_p13)
}
  0xcc   : > { %s4591_s27 = scalar_lea.vmem %s694_s6, 16  ;;  %s4598_s24 = scalar_lea.vmem %s694_s6, 32 }
  0xcd   : > { %p4592_p0 = scmp.ne.s32.totalorder %s694_s6, %s4591_s27  ;;  %p4599_p7 = scmp.lt.s32.totalorder %s694_s6, %s694_s6 }
  0xce   : > { %p4600_p9 = scmp.lt.s32.totalorder %s4598_s24, %s4591_s27 }
  0xcf   : > { %p4594_p2 = pnand %p4592_p0, %p5358_p8 }
  0xd0   : > { %p4601_p5 = por %p4600_p9, %p4599_p7 }
  0xd1   : > { %p4595_p4 = pneg %p4594_p2 }
  0xd3   : > { %p4602_p10 = pnand %p4601_p5, %p4595_p4 }
  0xd5   : > { %4605 = shalt.err (!%p4602_p10)
}
  0xd6   : > { %4263 = dma.hbm_to_vmem [thread:$0]  (!%p5342_p6), %s6268_s13, 16, %s694_s6, [#allocation24]  }
  0xd7   : > { %s6269_s15 = sld [smem:[#allocation70_spill]] }
  0xdd   : > { %s4606_s22 = scalar_lea.hbm %s6269_s15, 512 }
  0xde   : > { %p4607_p1 = scmp.ne.s32.totalorder %s6269_s15, %s4606_s22  ;;  %p4613_p12 = scmp.lt.u32.totalorder %s4606_s22, %s6269_s15 }
  0xe0   : > { %p4609_p3 = pnand %p4607_p1, %p5358_p8 }
  0xe2   : > { %p4610_p11 = pneg %p4609_p3 }
  0xe4   : > { %p4615_p13 = pnand %p4613_p12, %p4610_p11 }
  0xe6   : > { %4618 = shalt.err (!%p4615_p13)
}
  0xe7   : > { %s4619_s27 = scalar_lea.vmem %s715_s12, 512  ;;  %p4627_p7 = scmp.lt.s32.totalorder %s715_s12, %s715_s12 }
  0xe8   : > { %p4620_p0 = scmp.ne.s32.totalorder %s715_s12, %s4619_s27  ;;  %p4628_p9 = scmp.lt.s32.totalorder %s4619_s27, %s4619_s27 }
  0xea   : > { %p4622_p2 = pnand %p4620_p0, %p5358_p8  ;;  %p4629_p5 = por %p4628_p9, %p4627_p7 }
  0xec   : > { %p4623_p4 = pneg %p4622_p2 }
  0xee   : > { %p4630_p10 = pnand %p4629_p5, %p4623_p4 }
  0xf0   : > { %4633 = shalt.err (!%p4630_p10)
}
  0xf1   : > { %4269 = dma.hbm_to_vmem [thread:$0]  (!%p5342_p6), %s6269_s15, 512, %s715_s12, [#allocation27], %s6208_s21, %s6208_s21, %s6209_s18  }
  0xf2   : > { %s5165_s1 = smov [#allocation29]   ;;  %s5166_s0 = smov [#allocation32]  }
  0xf3   : > { %s738_s8 = sshll.u32 %s5165_s1, 4  ;;  %s763_s4 = sshll.u32 %s5166_s0, 4  ;;  %s739_s8 = int_to_ptr.vmem [resolvable:$true] %s738_s8  ;;  %s764_s4 = int_to_ptr.vmem [resolvable:$true] %s763_s4 }
  0xf4   : > { %s6270_s17 = sld [smem:[#allocation72_spill]] }
  0xfa   : > { %s4634_s30 = scalar_lea.hbm %s6270_s17, 1024 }
  0xfb   : > { %p4635_p1 = scmp.ne.s32.totalorder %s6270_s17, %s4634_s30  ;;  %p4641_p12 = scmp.lt.u32.totalorder %s4634_s30, %s6270_s17 }
  0xfd   : > { %p4637_p3 = pnand %p4635_p1, %p5358_p8 }
  0xff   : > { %p4638_p11 = pneg %p4637_p3 }
 0x101   : > { %p4643_p13 = pnand %p4641_p12, %p4638_p11 }
 0x103   : > { %4646 = shalt.err (!%p4643_p13)
}
 0x104   : > { %s4647_s12 = scalar_lea.vmem %s739_s8, 1024  ;;  %p4655_p7 = scmp.lt.s32.totalorder %s739_s8, %s739_s8 }
 0x105   : > { %p4648_p0 = scmp.ne.s32.totalorder %s739_s8, %s4647_s12  ;;  %p4656_p9 = scmp.lt.s32.totalorder %s4647_s12, %s4647_s12 }
 0x107   : > { %p4650_p2 = pnand %p4648_p0, %p5358_p8  ;;  %p4657_p5 = por %p4656_p9, %p4655_p7 }
 0x109   : > { %p4651_p4 = pneg %p4650_p2 }
 0x10b   : > { %p4658_p10 = pnand %p4657_p5, %p4651_p4 }
 0x10d   : > { %4661 = shalt.err (!%p4658_p10)
}
 0x10e   : > { %4275 = dma.hbm_to_vmem [thread:$0]  (!%p5342_p6), %s6270_s17, 1024, %s739_s8, [#allocation30], %s6208_s21, %s6208_s21, %s6209_s18  }
 0x10f   : > { %s6271_s19 = sld [smem:[#allocation74_spill]] }
 0x115   : > { %s4662_s16 = scalar_lea.hbm %s6271_s19, 16 }
 0x116   : > { %p4663_p1 = scmp.ne.s32.totalorder %s6271_s19, %s4662_s16  ;;  %p4669_p12 = scmp.lt.u32.totalorder %s4662_s16, %s6271_s19 }
 0x118   : > { %p4665_p3 = pnand %p4663_p1, %p5358_p8 }
 0x11a   : > { %p4666_p11 = pneg %p4665_p3 }
 0x11c   : > { %p4671_p13 = pnand %p4669_p12, %p4666_p11 }
 0x11e   : > { %4674 = shalt.err (!%p4671_p13)
}
 0x11f   : > { %s4675_s6 = scalar_lea.vmem %s764_s4, 16  ;;  %s4682_s8 = scalar_lea.vmem %s764_s4, 32 }
 0x120   : > { %p4676_p0 = scmp.ne.s32.totalorder %s764_s4, %s4675_s6  ;;  %p4683_p7 = scmp.lt.s32.totalorder %s764_s4, %s764_s4 }
 0x121   : > { %p4684_p9 = scmp.lt.s32.totalorder %s4682_s8, %s4675_s6 }
 0x122   : > { %p4678_p2 = pnand %p4676_p0, %p5358_p8 }
 0x123   : > { %p4685_p5 = por %p4684_p9, %p4683_p7 }
 0x124   : > { %p4679_p4 = pneg %p4678_p2 }
 0x126   : > { %p4686_p10 = pnand %p4685_p5, %p4679_p4 }
 0x128   : > { %4689 = shalt.err (!%p4686_p10)
}
 0x129   : > { %4281 = dma.hbm_to_vmem [thread:$0]  (!%p5342_p6), %s6271_s19, 16, %s764_s4, [#allocation33]  }
 0x12a   : > { %s3611_s1 = sadd.s32 4294967294, %s5154_s28   ;;  %s61_s0 = sadd.s32 1, %s5150_s3 }
 0x12b   : > { %s70_s22 = sadd.s32 1, %s5142_s26  ;;  %p63_p1 = scmp.ge.s32.totalorder %s61_s0, 2 }
 0x12c   : > { %p77_p3 = scmp.ne.s32.totalorder %s5142_s26, %s5138_s25  ;;  %p78_p11 = scmp.eq.s32.totalorder %s5154_s28, 0 }
 0x12d   : > { %p83_p12 = scmp.ne.s32.totalorder %s5138_s25, %s5134_s2  ;;  %s6340_s0 = smov (%p63_p1, %s61_s0), 0 }
 0x12e   : > { %6272 = sst [smem:[#allocation52_spill]] %s6340_s0  ;;  %p5560_p13 = por %p78_p11, %p77_p3 }
 0x12f   : > { %p6274_p0 = scmp.eq.s32.totalorder %s5326_s29, 0  ;;  %s65_s30 = ssub.s32 %s5150_s3, %s6340_s0 }
 0x130   : > { %p541_p4 = scmp.eq.s32.totalorder %s5326_s29, 1  ;;  %p68_p7 = scmp.eq.s32.totalorder %s65_s30, 0 }
 0x131   : > { %p5566_p2 = por %p6274_p0, %p83_p12  ;;  %p547_p9 = scmp.eq.s32.totalorder %s3611_s1, 1 }
 0x132   : > { %p5573_p5 = por %p541_p4, %p77_p3  ;;  %p4317_p10 = scmp.lt.s32.totalorder %s5154_s28, 2 }
 0x133   : > { %s6275_s4 = scalar_select %p5566_p2, 1, 0 }
 0x134   : > { %s6276_s23 = scalar_select %p5573_p5, 1, 0 }
 0x135   : > { %s5579_s10 = scalar_select %p68_p7, %s5142_s26, %s70_s22  }
 0x136   : > { %p5581_p1 = por %p547_p9, %p83_p12  ;;  %s5586_s6 = sand.u32 1, %s5142_s26  }
 0x137   : > { %6277 = sst [smem:[#allocation53_spill]] %s5579_s10  ;;  %s6210_s8 = sshll.u32 %s5586_s6, 3 }
 0x138   : > { %s6278_s27 = scalar_select %p5581_p1, 1, 0 }
 0x139   : > { %s6211_s12 = sshll.u32 %s5150_s3, 7  ;;  %p5592_p11 = pnand %p4317_p10, %p5560_p13 }
 0x13a   : > { %6279 = sst [smem:[#allocation54_spill]] %s6278_s27  ;;  %s804_s1 = sand.u32 1, %s5154_s28  }
 0x13b   : > { %s6280_s24 = scalar_select %p5592_p11, 1, 0 }
 0x13c   : > { %s6281_s21 = sld [smem:[#allocation56_spill]]  ;;  %s808_s7 = scalar_lea.vmem [#allocation5], %s6210_s8 }
 0x13d   : > { %s815_s9 = sshll.u32 %s808_s7, 4  ;;  %s3636_s16 = sshll.u32 %s5586_s6, 5  ;;  %s5607_s9 = int_to_ptr.vmem [resolvable:$true] %s815_s9 }
 0x13e   : > { %s5609_s11 = scalar_lea.sflag [#allocation6], %s804_s1  ;;  %p5615_p12 = pneg %p5592_p11 }
 0x140   : > { %s6282_s15 = scalar_select %p5615_p12, 1, 0 }
 0x142   : > { %s5602_s18 = scalar_lea.hbm %s6281_s21, %s6211_s12  ;;  %s4695_s7 = scalar_lea.hbm %s6281_s21, 256 }
 0x143   : > { %s4690_s13 = scalar_lea.hbm %s5602_s18, 128  ;;  %p4696_p4 = scmp.lt.u32.totalorder %s5602_s18, %s6281_s21 }
 0x144   : > { %p4691_p3 = scmp.ne.s32.totalorder %s5602_s18, %s4690_s13  ;;  %p4697_p7 = scmp.lt.u32.totalorder %s4695_s7, %s4690_s13 }
 0x145   : > { %p4699_p10 = scmp.lt.u32.totalorder %s4690_s13, %s5602_s18 }
 0x146   : > { %p4693_p13 = pnand %p5615_p12, %p4691_p3  ;;  %p4698_p9 = por %p4697_p7, %p4696_p4 }
 0x148   : > { %p4694_p0 = pneg %p4693_p13  ;;  %p4700_p1 = por %p4699_p10, %p4698_p9 }
 0x14a   : > { %p4701_p5 = pnand %p4700_p1, %p4694_p0 }
 0x14c   : > { %4704 = shalt.err (!%p4701_p5)
}
 0x14d   : > { %s4705_s1 = scalar_lea.vmem %s5607_s9, 128  ;;  %s5167_s22 = smov [#allocation5]  }
 0x14e   : > { %p4706_p3 = scmp.ne.s32.totalorder %s5607_s9, %s4705_s1  ;;  %s4710_s30 = sshll.u32 %s5167_s22, 4  ;;  %s4711_s30 = int_to_ptr.vmem [resolvable:$false] %s4710_s30 }
 0x14f   : > { %s4712_s8 = scalar_lea.vmem %s4711_s30, 256  ;;  %p4713_p6 = scmp.lt.s32.totalorder %s5607_s9, %s4711_s30 }
 0x150   : > { %p4708_p13 = pnand %p4706_p3, %p5615_p12  ;;  %p4714_p8 = scmp.lt.s32.totalorder %s4712_s8, %s4705_s1 }
 0x152   : > { %p4709_p2 = pneg %p4708_p13  ;;  %p4715_p4 = por %p4714_p8, %p4713_p6 }
 0x154   : > { %p4716_p7 = pnand %p4715_p4, %p4709_p2 }
 0x156   : > { %4719 = shalt.err (!%p4716_p7)
}
 0x157   : > { %4291 = dma.hbm_to_vmem [thread:$0]  (!%p5592_p11), %s5602_s18, 128, %s5607_s9, %s5609_s11  }
 0x158   : > { %s826_s13 = scalar_lea.vmem [#allocation7], %s3636_s16  ;;  %s5168_s7 = smov [#allocation10]  }
 0x159   : > { %s834_s12 = sshll.u32 %s826_s13, 4  ;;  %s579_s22 = sshll.u32 %s5168_s7, 4  ;;  %s5641_s12 = int_to_ptr.vmem [resolvable:$true] %s834_s12  ;;  %s580_s22 = int_to_ptr.vmem [resolvable:$true] %s579_s22 }
 0x15a   : > { %s6283_s8 = sld [smem:[#allocation59_spill]]  ;;  %p6284_p8 = scmp.ne.s32.totalorder %s6263_s14, 0 }
 0x160   : > { %s4720_s17 = scalar_lea.hbm %s6283_s8, 64 }
 0x161   : > { %p4721_p6 = scmp.ne.s32.totalorder %s6283_s8, %s4720_s17  ;;  %p4727_p1 = scmp.lt.u32.totalorder %s4720_s17, %s6283_s8 }
 0x163   : > { %p4723_p2 = pnand %p4721_p6, %p6284_p8 }
 0x165   : > { %p4724_p5 = pneg %p4723_p2 }
 0x167   : > { %p4729_p0 = pnand %p4727_p1, %p4724_p5 }
 0x169   : > { %4732 = shalt.err (!%p4729_p0)
}
 0x16a   : > { %s4733_s16 = scalar_lea.vmem %s580_s22, 64  ;;  %p4741_p13 = scmp.lt.s32.totalorder %s580_s22, %s580_s22 }
 0x16b   : > { %p4734_p9 = scmp.ne.s32.totalorder %s580_s22, %s4733_s16  ;;  %p4742_p4 = scmp.lt.s32.totalorder %s4733_s16, %s4733_s16 }
 0x16d   : > { %p4736_p10 = pnand %p4734_p9, %p6284_p8  ;;  %p4743_p7 = por %p4742_p4, %p4741_p13 }
 0x16f   : > { %p4737_p3 = pneg %p4736_p10 }
 0x171   : > { %p4744_p11 = pnand %p4743_p7, %p4737_p3 }
 0x173   : > { %4747 = shalt.err (!%p4744_p11)
}
 0x174   : > { %s5169_s19 = smov 16   ;;  %s5170_s20 = smov 1  }
 0x175   : > { %p6285_p6 = scmp.ne.s32.totalorder %s6260_s5, 0  ;;  %s5171_s7 = smov [#allocation13]  }
 0x176   : > { %s605_s1 = sshll.u32 %s5171_s7, 4  ;;  %s5172_s30 = smov [#allocation16]   ;;  %s606_s1 = int_to_ptr.vmem [resolvable:$true] %s605_s1 }
 0x177   : > { %4236 = dma.hbm_to_vmem [thread:$0]  (!%p6285_p6), %s6283_s8, 64, %s580_s22, [#allocation9], %s5169_s19, %s5169_s19, %s5170_s20  }
 0x178   : > { %s631_s9 = sshll.u32 %s5172_s30, 4  ;;  %s6286_s21 = sld [smem:[#allocation61_spill]]  ;;  %s632_s9 = int_to_ptr.vmem [resolvable:$true] %s631_s9 }
 0x17e   : > { %s4748_s0 = scalar_lea.hbm %s6286_s21, 64 }
 0x17f   : > { %p4749_p11 = scmp.ne.s32.totalorder %s6286_s21, %s4748_s0  ;;  %p4755_p1 = scmp.lt.u32.totalorder %s4748_s0, %s6286_s21 }
 0x181   : > { %p4751_p2 = pnand %p4749_p11, %p6284_p8 }
 0x183   : > { %p4752_p5 = pneg %p4751_p2 }
 0x185   : > { %p4757_p0 = pnand %p4755_p1, %p4752_p5 }
 0x187   : > { %4760 = shalt.err (!%p4757_p0)
}
 0x188   : > { %s4761_s22 = scalar_lea.vmem %s606_s1, 64  ;;  %p4769_p13 = scmp.lt.s32.totalorder %s606_s1, %s606_s1 }
 0x189   : > { %p4762_p9 = scmp.ne.s32.totalorder %s606_s1, %s4761_s22  ;;  %p4770_p4 = scmp.lt.s32.totalorder %s4761_s22, %s4761_s22 }
 0x18b   : > { %p4764_p10 = pnand %p4762_p9, %p6284_p8  ;;  %p4771_p7 = por %p4770_p4, %p4769_p13 }
 0x18d   : > { %p4765_p3 = pneg %p4764_p10 }
 0x18f   : > { %p4772_p12 = pnand %p4771_p7, %p4765_p3 }
 0x191   : > { %4775 = shalt.err (!%p4772_p12)
}
 0x192   : > { %4242 = dma.hbm_to_vmem [thread:$0]  (!%p6285_p6), %s6286_s21, 64, %s606_s1, [#allocation12], %s5169_s19, %s5169_s19, %s5170_s20  }
 0x193   : > { %s6287_s27 = sld [smem:[#allocation63_spill]] }
 0x199   : > { %s6288_s17 = smov %s6287_s27  ;;  %s4776_s13 = scalar_lea.hbm %s6287_s27, 64 }
 0x19a   : > { %p4777_p11 = scmp.ne.s32.totalorder %s6288_s17, %s4776_s13  ;;  %p4783_p5 = scmp.lt.u32.totalorder %s4776_s13, %s6288_s17 }
 0x19c   : > { %p4779_p12 = pnand %p4777_p11, %p6284_p8 }
 0x19e   : > { %p4780_p2 = pneg %p4779_p12 }
 0x1a0   : > { %p4785_p1 = pnand %p4783_p5, %p4780_p2 }
 0x1a2   : > { %4788 = shalt.err (!%p4785_p1)
}
 0x1a3   : > { %s4789_s22 = scalar_lea.vmem %s632_s9, 64  ;;  %p4797_p3 = scmp.lt.s32.totalorder %s632_s9, %s632_s9 }
 0x1a4   : > { %p4790_p0 = scmp.ne.s32.totalorder %s632_s9, %s4789_s22  ;;  %p4798_p13 = scmp.lt.s32.totalorder %s4789_s22, %s4789_s22 }
 0x1a6   : > { %p4792_p9 = pnand %p4790_p0, %p6284_p8  ;;  %p4799_p4 = por %p4798_p13, %p4797_p3 }
 0x1a8   : > { %p4793_p10 = pneg %p4792_p9 }
 0x1aa   : > { %p4800_p7 = pnand %p4799_p4, %p4793_p10 }
 0x1ac   : > { %4803 = shalt.err (!%p4800_p7)
}
 0x1ad   : > { %4248 = dma.hbm_to_vmem [thread:$0]  (!%p6285_p6), %s6288_s17, 64, %s632_s9, [#allocation15], %s5169_s19, %s5169_s19, %s5170_s20  }
 0x1ae   : > { %s5173_s28 = smov [#allocation19]   ;;  %s5174_s10 = smov [#allocation22]  }
 0x1af   : > { %s658_s0 = sshll.u32 %s5173_s28, 4  ;;  %s682_s27 = sshll.u32 %s5174_s10, 4  ;;  %s659_s0 = int_to_ptr.vmem [resolvable:$true] %s658_s0  ;;  %s683_s27 = int_to_ptr.vmem [resolvable:$true] %s682_s27 }
 0x1b0   : > { %s6289_s30 = sld [smem:[#allocation65_spill]] }
 0x1b6   : > { %s4804_s18 = scalar_lea.hbm %s6289_s30, 16 }
 0x1b7   : > { %p4805_p11 = scmp.ne.s32.totalorder %s6289_s30, %s4804_s18  ;;  %p4811_p5 = scmp.lt.u32.totalorder %s4804_s18, %s6289_s30 }
 0x1b9   : > { %p4807_p12 = pnand %p4805_p11, %p6284_p8 }
 0x1bb   : > { %p4808_p2 = pneg %p4807_p12 }
 0x1bd   : > { %p4813_p1 = pnand %p4811_p5, %p4808_p2 }
 0x1bf   : > { %4816 = shalt.err (!%p4813_p1)
}
 0x1c0   : > { %s4817_s19 = scalar_lea.vmem %s659_s0, 16  ;;  %s4824_s20 = scalar_lea.vmem %s659_s0, 32 }
 0x1c1   : > { %p4818_p0 = scmp.ne.s32.totalorder %s659_s0, %s4817_s19  ;;  %p4825_p3 = scmp.lt.s32.totalorder %s659_s0, %s659_s0 }
 0x1c2   : > { %p4826_p13 = scmp.lt.s32.totalorder %s4824_s20, %s4817_s19 }
 0x1c3   : > { %p4820_p9 = pnand %p4818_p0, %p6284_p8 }
 0x1c4   : > { %p4827_p4 = por %p4826_p13, %p4825_p3 }
 0x1c5   : > { %p4821_p10 = pneg %p4820_p9 }
 0x1c7   : > { %p4828_p7 = pnand %p4827_p4, %p4821_p10 }
 0x1c9   : > { %4831 = shalt.err (!%p4828_p7)
}
 0x1ca   : > { %4254 = dma.hbm_to_vmem [thread:$0]  (!%p6285_p6), %s6289_s30, 16, %s659_s0, [#allocation18]  }
 0x1cb   : > { %s6290_s10 = sld [smem:[#allocation67_spill]] }
 0x1d1   : > { %s4832_s13 = scalar_lea.hbm %s6290_s10, 16 }
 0x1d2   : > { %p4833_p11 = scmp.ne.s32.totalorder %s6290_s10, %s4832_s13  ;;  %p4839_p5 = scmp.lt.u32.totalorder %s4832_s13, %s6290_s10 }
 0x1d4   : > { %p4835_p12 = pnand %p4833_p11, %p6284_p8 }
 0x1d6   : > { %p4836_p2 = pneg %p4835_p12 }
 0x1d8   : > { %p4841_p1 = pnand %p4839_p5, %p4836_p2 }
 0x1da   : > { %4844 = shalt.err (!%p4841_p1)
}
 0x1db   : > { %s4845_s1 = scalar_lea.vmem %s683_s27, 16  ;;  %s4852_s0 = scalar_lea.vmem %s683_s27, 32 }
 0x1dc   : > { %p4846_p0 = scmp.ne.s32.totalorder %s683_s27, %s4845_s1  ;;  %p4853_p3 = scmp.lt.s32.totalorder %s683_s27, %s683_s27 }
 0x1dd   : > { %p4854_p13 = scmp.lt.s32.totalorder %s4852_s0, %s4845_s1 }
 0x1de   : > { %p4848_p9 = pnand %p4846_p0, %p6284_p8 }
 0x1df   : > { %p4855_p4 = por %p4854_p13, %p4853_p3 }
 0x1e0   : > { %p4849_p10 = pneg %p4848_p9 }
 0x1e2   : > { %p4856_p7 = pnand %p4855_p4, %p4849_p10 }
 0x1e4   : > { %4859 = shalt.err (!%p4856_p7)
}
 0x1e5   : > { %4260 = dma.hbm_to_vmem [thread:$0]  (!%p6285_p6), %s6290_s10, 16, %s683_s27, [#allocation21]  }
 0x1e6   : > { %s5175_s9 = smov [#allocation25]   ;;  %s5176_s8 = smov [#allocation28]  }
 0x1e7   : > { %s704_s26 = sshll.u32 %s5175_s9, 4  ;;  %s728_s28 = sshll.u32 %s5176_s8, 4  ;;  %s705_s26 = int_to_ptr.vmem [resolvable:$true] %s704_s26  ;;  %s729_s28 = int_to_ptr.vmem [resolvable:$true] %s728_s28 }
 0x1e8   : > { %s6291_s18 = sld [smem:[#allocation69_spill]] }
 0x1ee   : > { %s4860_s16 = scalar_lea.hbm %s6291_s18, 16 }
 0x1ef   : > { %p4861_p11 = scmp.ne.s32.totalorder %s6291_s18, %s4860_s16  ;;  %p4867_p5 = scmp.lt.u32.totalorder %s4860_s16, %s6291_s18 }
 0x1f1   : > { %p4863_p12 = pnand %p4861_p11, %p6284_p8 }
 0x1f3   : > { %p4864_p2 = pneg %p4863_p12 }
 0x1f5   : > { %p4869_p1 = pnand %p4867_p5, %p4864_p2 }
 0x1f7   : > { %4872 = shalt.err (!%p4869_p1)
}
 0x1f8   : > { %s4873_s27 = scalar_lea.vmem %s705_s26, 16  ;;  %s4880_s20 = scalar_lea.vmem %s705_s26, 32 }
 0x1f9   : > { %p4874_p0 = scmp.ne.s32.totalorder %s705_s26, %s4873_s27  ;;  %p4881_p3 = scmp.lt.s32.totalorder %s705_s26, %s705_s26 }
 0x1fa   : > { %p4882_p13 = scmp.lt.s32.totalorder %s4880_s20, %s4873_s27 }
 0x1fb   : > { %p4876_p9 = pnand %p4874_p0, %p6284_p8 }
 0x1fc   : > { %p4883_p4 = por %p4882_p13, %p4881_p3 }
 0x1fd   : > { %p4877_p10 = pneg %p4876_p9 }
 0x1ff   : > { %p4884_p7 = pnand %p4883_p4, %p4877_p10 }
 0x201   : > { %4887 = shalt.err (!%p4884_p7)
}
 0x202   : > { %4266 = dma.hbm_to_vmem [thread:$0]  (!%p6285_p6), %s6291_s18, 16, %s705_s26, [#allocation24]  }
 0x203   : > { %s6292_s16 = sld [smem:[#allocation71_spill]] }
 0x209   : > { %s4888_s22 = scalar_lea.hbm %s6292_s16, 16 }
 0x20a   : > { %p4889_p11 = scmp.ne.s32.totalorder %s6292_s16, %s4888_s22  ;;  %p4895_p5 = scmp.lt.u32.totalorder %s4888_s22, %s6292_s16 }
 0x20c   : > { %p4891_p12 = pnand %p4889_p11, %p6284_p8 }
 0x20e   : > { %p4892_p2 = pneg %p4891_p12 }
 0x210   : > { %p4897_p1 = pnand %p4895_p5, %p4892_p2 }
 0x212   : > { %4900 = shalt.err (!%p4897_p1)
}
 0x213   : > { %s4901_s20 = scalar_lea.vmem %s729_s28, 16  ;;  %s4908_s26 = scalar_lea.vmem %s729_s28, 32 }
 0x214   : > { %p4902_p0 = scmp.ne.s32.totalorder %s729_s28, %s4901_s20  ;;  %p4909_p3 = scmp.lt.s32.totalorder %s729_s28, %s729_s28 }
 0x215   : > { %p4910_p13 = scmp.lt.s32.totalorder %s4908_s26, %s4901_s20 }
 0x216   : > { %p4904_p9 = pnand %p4902_p0, %p6284_p8 }
 0x217   : > { %p4911_p4 = por %p4910_p13, %p4909_p3 }
 0x218   : > { %p4905_p10 = pneg %p4904_p9 }
 0x21a   : > { %p4912_p7 = pnand %p4911_p4, %p4905_p10 }
 0x21c   : > { %4915 = shalt.err (!%p4912_p7)
}
 0x21d   : > { %4272 = dma.hbm_to_vmem [thread:$0]  (!%p6285_p6), %s6292_s16, 16, %s729_s28, [#allocation27]  }
 0x21e   : > { %s5177_s13 = smov [#allocation31]   ;;  %s5178_s22 = smov [#allocation34]  }
 0x21f   : > { %s752_s7 = sshll.u32 %s5177_s13, 4  ;;  %s774_s1 = sshll.u32 %s5178_s22, 4  ;;  %s753_s7 = int_to_ptr.vmem [resolvable:$true] %s752_s7  ;;  %s775_s1 = int_to_ptr.vmem [resolvable:$true] %s774_s1 }
 0x220   : > { %s6293_s27 = sld [smem:[#allocation73_spill]] }
 0x226   : > { %s6294_s10 = smov %s6293_s27  ;;  %s4916_s17 = scalar_lea.hbm %s6293_s27, 16 }
 0x227   : > { %p4917_p11 = scmp.ne.s32.totalorder %s6294_s10, %s4916_s17  ;;  %p4923_p5 = scmp.lt.u32.totalorder %s4916_s17, %s6294_s10 }
 0x229   : > { %p4919_p12 = pnand %p4917_p11, %p6284_p8 }
 0x22b   : > { %p4920_p2 = pneg %p4919_p12 }
 0x22d   : > { %p4925_p1 = pnand %p4923_p5, %p4920_p2 }
 0x22f   : > { %4928 = shalt.err (!%p4925_p1)
}
 0x230   : > { %s4929_s28 = scalar_lea.vmem %s753_s7, 16  ;;  %s4936_s8 = scalar_lea.vmem %s753_s7, 32 }
 0x231   : > { %p4930_p0 = scmp.ne.s32.totalorder %s753_s7, %s4929_s28  ;;  %p4937_p3 = scmp.lt.s32.totalorder %s753_s7, %s753_s7 }
 0x232   : > { %p4938_p13 = scmp.lt.s32.totalorder %s4936_s8, %s4929_s28 }
 0x233   : > { %p4932_p9 = pnand %p4930_p0, %p6284_p8 }
 0x234   : > { %p4939_p4 = por %p4938_p13, %p4937_p3 }
 0x235   : > { %p4933_p10 = pneg %p4932_p9 }
 0x237   : > { %p4940_p7 = pnand %p4939_p4, %p4933_p10 }
 0x239   : > { %4943 = shalt.err (!%p4940_p7)
}
 0x23a   : > { %4278 = dma.hbm_to_vmem [thread:$0]  (!%p6285_p6), %s6294_s10, 16, %s753_s7, [#allocation30]  }
 0x23b   : > { %s6295_s0 = sld [smem:[#allocation75_spill]] }
 0x241   : > { %s4944_s19 = scalar_lea.hbm %s6295_s0, 16 }
 0x242   : > { %p4945_p11 = scmp.ne.s32.totalorder %s6295_s0, %s4944_s19  ;;  %p4951_p5 = scmp.lt.u32.totalorder %s4944_s19, %s6295_s0 }
 0x244   : > { %p4947_p12 = pnand %p4945_p11, %p6284_p8 }
 0x246   : > { %p4948_p2 = pneg %p4947_p12 }
 0x248   : > { %p4953_p1 = pnand %p4951_p5, %p4948_p2 }
 0x24a   : > { %4956 = shalt.err (!%p4953_p1)
}
 0x24b   : > { %s4957_s28 = scalar_lea.vmem %s775_s1, 16  ;;  %s4964_s7 = scalar_lea.vmem %s775_s1, 32 }
 0x24c   : > { %p4958_p0 = scmp.ne.s32.totalorder %s775_s1, %s4957_s28  ;;  %p4965_p3 = scmp.lt.s32.totalorder %s775_s1, %s775_s1 }
 0x24d   : > { %p4966_p13 = scmp.lt.s32.totalorder %s4964_s7, %s4957_s28 }
 0x24e   : > { %p4960_p9 = pnand %p4958_p0, %p6284_p8 }
 0x24f   : > { %p4967_p4 = por %p4966_p13, %p4965_p3 }
 0x250   : > { %p4961_p10 = pneg %p4960_p9 }
 0x252   : > { %p4968_p7 = pnand %p4967_p4, %p4961_p10 }
 0x254   : > { %4971 = shalt.err (!%p4968_p7)
}
 0x255   : > { %4284 = dma.hbm_to_vmem [thread:$0]  (!%p6285_p6), %s6295_s0, 16, %s775_s1, [#allocation33]  }
 0x256   : > { %s6296_s14 = sshll.u32 %s5150_s3, 7  ;;  %s6297_s18 = sld [smem:[#allocation55_spill]] }
 0x257   : > { %s6298_s27 = sshll.u32 %s5586_s6, 3  ;;  %s3717_s26 = sshll.u32 %s5150_s3, 9 }
 0x258   : > { %s789_s5 = scalar_lea.vmem [#allocation2], %s6298_s27  ;;  %s6299_s7 = sld [smem:[#allocation57_spill]] }
 0x259   : > { %s797_s20 = sshll.u32 %s789_s5, 4  ;;  %s786_s8 = scalar_lea.sflag [#allocation3], %s5586_s6  ;;  %s5824_s20 = int_to_ptr.vmem [resolvable:$true] %s797_s20 }
 0x25a   : > { %p6300_p6 = scmp.ne.s32.totalorder %s6282_s15, 0 }
 0x25c   : > { %s5819_s19 = scalar_lea.hbm %s6297_s18, %s6296_s14  ;;  %s4977_s17 = scalar_lea.hbm %s6297_s18, 256 }
 0x25d   : > { %s4972_s13 = scalar_lea.hbm %s5819_s19, 128  ;;  %p4978_p2 = scmp.lt.u32.totalorder %s5819_s19, %s6297_s18 }
 0x25e   : > { %s5829_s1 = scalar_lea.hbm %s6299_s7, %s3717_s26  ;;  %p4973_p8 = scmp.ne.s32.totalorder %s5819_s19, %s4972_s13 }
 0x25f   : > { %p4979_p5 = scmp.lt.u32.totalorder %s4977_s17, %s4972_s13  ;;  %p4981_p0 = scmp.lt.u32.totalorder %s4972_s13, %s5819_s19 }
 0x260   : > { %p4975_p11 = pnand %p4973_p8, %p6300_p6 }
 0x261   : > { %p4980_p1 = por %p4979_p5, %p4978_p2 }
 0x262   : > { %p4976_p12 = pneg %p4975_p11 }
 0x263   : > { %p4982_p9 = por %p4981_p0, %p4980_p1 }
 0x265   : > { %p4983_p10 = pnand %p4982_p9, %p4976_p12 }
 0x267   : > { %4986 = shalt.err (!%p4983_p10)
}
 0x268   : > { %s4987_s6 = scalar_lea.vmem %s5824_s20, 128  ;;  %s5179_s26 = smov [#allocation2]  }
 0x269   : > { %p4988_p3 = scmp.ne.s32.totalorder %s5824_s20, %s4987_s6  ;;  %s4992_s9 = sshll.u32 %s5179_s26, 4  ;;  %s4993_s9 = int_to_ptr.vmem [resolvable:$false] %s4992_s9 }
 0x26a   : > { %s4994_s28 = scalar_lea.vmem %s4993_s9, 256  ;;  %p4995_p7 = scmp.lt.s32.totalorder %s5824_s20, %s4993_s9 }
 0x26b   : > { %p4990_p13 = pnand %p4988_p3, %p6300_p6  ;;  %p4996_p8 = scmp.lt.s32.totalorder %s4994_s28, %s4987_s6 }
 0x26d   : > { %p4991_p4 = pneg %p4990_p13  ;;  %p4997_p11 = por %p4996_p8, %p4995_p7 }
 0x26f   : > { %p4998_p2 = pnand %p4997_p11, %p4991_p4 }
 0x271   : > { %5001 = shalt.err (!%p4998_p2)
}
 0x272   : > { %p6301_p12 = scmp.ne.s32.totalorder %s6280_s24, 0  ;;  %s5002_s13 = scalar_lea.hbm %s5829_s1, 512 }
 0x273   : > { %p5003_p5 = scmp.ne.s32.totalorder %s5829_s1, %s5002_s13  ;;  %s5007_s17 = scalar_lea.hbm %s6299_s7, 1024 }
 0x274   : > { %4288 = dma.hbm_to_vmem [thread:$0]  (!%p6301_p12), %s5819_s19, 128, %s5824_s20, %s786_s8  }
 0x275   : > { %p5005_p1 = pnand %p5003_p5, %p6300_p6  ;;  %p5008_p9 = scmp.lt.u32.totalorder %s5829_s1, %s6299_s7 }
 0x276   : > { %p5009_p10 = scmp.lt.u32.totalorder %s5007_s17, %s5002_s13  ;;  %p5011_p13 = scmp.lt.u32.totalorder %s5002_s13, %s5829_s1 }
 0x277   : > { %p5006_p0 = pneg %p5005_p1 }
 0x278   : > { %p5010_p3 = por %p5009_p10, %p5008_p9 }
 0x27a   : > { %p5012_p4 = por %p5011_p13, %p5010_p3 }
 0x27c   : > { %p5013_p7 = pnand %p5012_p4, %p5006_p0 }
 0x27e   : > { %5016 = shalt.err (!%p5013_p7)
}
 0x27f   : > { %s5017_s19 = scalar_lea.vmem %s5641_s12, 512  ;;  %s5180_s20 = smov [#allocation7]  }
 0x280   : > { %p5018_p8 = scmp.ne.s32.totalorder %s5641_s12, %s5017_s19  ;;  %s5022_s8 = sshll.u32 %s5180_s20, 4  ;;  %s5023_s8 = int_to_ptr.vmem [resolvable:$false] %s5022_s8 }
 0x281   : > { %s5024_s6 = scalar_lea.vmem %s5023_s8, 1024  ;;  %p5025_p5 = scmp.lt.s32.totalorder %s5641_s12, %s5023_s8 }
 0x282   : > { %p5020_p11 = pnand %p5018_p8, %p6300_p6  ;;  %p5026_p1 = scmp.lt.s32.totalorder %s5024_s6, %s5017_s19 }
 0x284   : > { %p5021_p2 = pneg %p5020_p11  ;;  %p5027_p9 = por %p5026_p1, %p5025_p5 }
 0x286   : > { %p5028_p10 = pnand %p5027_p9, %p5021_p2 }
 0x288   : > { %5031 = shalt.err (!%p5028_p10)
}
 0x289   : > { %s6302_s26 = smov 8   ;;  %s6303_s9 = smov 128  }
 0x28a   : > { %4294 = dma.hbm_to_vmem [thread:$0]  (!%p6301_p12), %s5829_s1, 512, %s5641_s12, %s5609_s11, %s6303_s9, %s6303_s9, %s6302_s26  }
 0x28b   : > { %s6304_s15 = sld [smem:[#allocation51_spill]] }
 0x291   : > { %p6305_p6 = scmp.ne.s32.totalorder %s6304_s15, 0 }
 0x292   : > { %s5881_s28 = sand.u32 (!%p6305_p6), 1, %s5138_s25   ;;  %p6306_p0 = scmp.ne.s32.totalorder (!%p6305_p6), %s6275_s4, 0 }
 0x293   : > { %846 = sbr.rel (%p6305_p6) target bundleno = 3279 (0xccf), region = 104  ;;  %s5884_s13 = sshll.u32 (!%p6305_p6), %s5881_s28, 3 }
 0x294   : > { %s849_s24 = scalar_lea.sflag (!%p6305_p6), [#allocation3], %s5881_s28  ;;  %s852_s14 = scalar_lea.vmem (!%p6305_p6), [#allocation2], %s5884_s13 }
 0x29a   : > { %5085 = dma.done.wait (%p6306_p0), %s849_s24, 128  }
 0x29b   : > { %5087 = vsyncadd (%p6306_p0), %s849_s24, 4294967168  ;;  %s857_s11 = sand.u32 1, %s5326_s29   ;;  %s861_s1 = scalar_lea.vmem [#allocation5], %s5884_s13 }
 0x29c   : > { %s858_s12 = scalar_lea.sflag [#allocation6], %s857_s11 }
 0x29d   : > { %5089 = dma.done.wait (%p6306_p0), %s858_s12, 640  }
 0x29e   : > { %5091 = vsyncadd (%p6306_p0), %s858_s12, 4294966656  ;;  %s3642_s22 = sshll.u32 %s5881_s28, 5  ;;  %p6307_p12 = scmp.eq.s32.totalorder %s5326_s29, 0 }
 0x29f   : > { %s5899_s17 = scalar_lea.vmem [#allocation7], %s3642_s22 }
 0x2a0   : > { %5093 = dma.done.wait (%p6307_p12), [#allocation9], 2112   ;;  %p6308_p3 = pmov %p6307_p12 }
 0x2a2   : > { %5095 = vsyncadd (%p6308_p3), [#allocation9], 4294965184  ;;  %p6309_p13 = pmov %p6308_p3 }
 0x2a3   : > { %p6310_p4 = pmov %p6308_p3 }
 0x2a4   : > { %5097 = dma.done.wait (%p6309_p13), [#allocation12], 2112  }
 0x2a5   : > { %5099 = vsyncadd (%p6310_p4), [#allocation12], 4294965184  ;;  %p6311_p7 = pmov %p6308_p3 }
 0x2a6   : > { %p6312_p8 = pmov %p6308_p3 }
 0x2a7   : > { %5101 = dma.done.wait (%p6311_p7), [#allocation15], 2112  }
 0x2a8   : > { %5103 = vsyncadd (%p6312_p8), [#allocation15], 4294965184  ;;  %p6313_p11 = pmov %p6308_p3 }
 0x2a9   : > { %p6314_p2 = pmov %p6308_p3 }
 0x2aa   : > { %5105 = dma.done.wait (%p6313_p11), [#allocation18], 528  }
 0x2ab   : > { %5107 = vsyncadd (%p6314_p2), [#allocation18], 4294966768  ;;  %p6315_p5 = pmov %p6314_p2 }
 0x2ac   : > { %p6316_p1 = pmov %p6314_p2 }
 0x2ad   : > { %5109 = dma.done.wait (%p6315_p5), [#allocation21], 528  }
 0x2ae   : > { %5111 = vsyncadd (%p6316_p1), [#allocation21], 4294966768  ;;  %p6317_p9 = pmov %p6316_p1 }
 0x2af   : > { %p6318_p10 = pmov %p6316_p1 }
 0x2b0   : > { %5113 = dma.done.wait (%p6317_p9), [#allocation24], 32  }
 0x2b1   : > { %5115 = vsyncadd (%p6318_p10), [#allocation24], 4294967264  ;;  %p6319_p6 = pmov %p6316_p1 }
 0x2b2   : > { %p6320_p0 = pmov %p6316_p1 }
 0x2b3   : > { %5117 = dma.done.wait (%p6319_p6), [#allocation27], 528  }
 0x2b4   : > { %5119 = vsyncadd (%p6320_p0), [#allocation27], 4294966768  ;;  %p6321_p12 = pmov %p6320_p0 }
 0x2b5   : > { %p6322_p3 = pmov %p6320_p0 }
 0x2b6   : > { %5121 = dma.done.wait (%p6321_p12), [#allocation30], 1040  }
 0x2b7   : > { %5123 = vsyncadd (%p6322_p3), [#allocation30], 4294966256  ;;  %p6323_p13 = pmov %p6320_p0 }
 0x2b8   : > { %p6324_p4 = pmov %p6320_p0 }
 0x2b9   : > { %5125 = dma.done.wait (%p6323_p13), [#allocation33], 32  }
 0x2ba   : > { %5127 = vsyncadd (%p6324_p4), [#allocation33], 4294967264  ;;  %v5181_v0 = vmov 0.0|0.0   ;;  %vm5182_vm0 = vmmov 0   ;;  %v5183_v1 = vmov 0.0   ;;  %v1013_v2 = vld [vmem:[#allocation8] sm:$0xff] }
 0x2bb   : > { %4054 = vmatprep.subr.bf16.mxu1 %v5181_v0  ;;  %4066 = vmatprep.subr.bf16.mxu0 %v5181_v0  ;;  %v1014_v3 = vld [vmem:[#allocation8 + $0x8] sm:$0xff]  ;;  %v1021_v4 = vld [vmem:[#allocation8 + $0x40] sm:$0xff]  ;;  %v1015_v7 = vld [vmem:[#allocation8 + $0x10] sm:$0xff]  ;;  %vm1057_vm1 = vcmask 261120   ;;  %vm1996_vm2 = vcmask 64512   ;;  %vm3194_vm4 = vcmask 523264  }
 0x2bc   : > { %3829 = vmatprep.mubr.msk.f32.mxu1 %vm5182_vm0, %v5183_v1  ;;  %3851 = vmatprep.mubr.msk.f32.mxu0 %vm5182_vm0, %v5183_v1  ;;  %v4055_v5 = vpack.c.bf16 %v1014_v3, %v1013_v2  ;;  %v1022_v6 = vld [vmem:[#allocation8 + $0x48] sm:$0xff]  ;;  %v1016_v8 = vld [vmem:[#allocation8 + $0x18] sm:$0xff]  ;;  %v1023_v10 = vld [vmem:[#allocation8 + $0x50] sm:$0xff]  ;;  %s6325_s29 = sld [smem:[#allocation49_spill]]  ;;  %s1010_s27 = scalar_lea.vmem [#allocation35], %s5884_s13 }
 0x2bd   : > { %v4067_v9 = vpack.c.bf16 %v1022_v6, %v1021_v4  ;;  %v1024_v11 = vld [vmem:[#allocation8 + $0x58] sm:$0xff]  ;;  %v4058_v12 = vpack.c.bf16 %v1016_v8, %v1015_v7  ;;  %v1017_v14 = vld [vmem:[#allocation8 + $0x20] sm:$0xff]  ;;  %v1018_v15 = vld [vmem:[#allocation8 + $0x28] sm:$0xff]  ;;  %s3314_s5 = sshll.u32 %s1010_s27, 4  ;;  %s6326_s8 = sld [smem:[#allocation76_spill]]  ;;  %s6119_s5 = int_to_ptr.vmem [resolvable:$true] %s3314_s5 }
 0x2be   : > { %4056 = vmatpush3.bf16.msra.mxu1 %v4055_v5  ;;  %v4070_v13 = vpack.c.bf16 %v1024_v11, %v1023_v10  ;;  %v1341_v16 = vld [vmem:[#allocation11] sm:$0xff]  ;;  %v1342_v17 = vld [vmem:[#allocation11 + $0x8] sm:$0xff]  ;;  %v4061_v19 = vpack.c.bf16 %v1018_v15, %v1017_v14  ;;  %v1020_v22 = vld [vmem:[#allocation8 + $0x38] sm:$0xff]  ;;  %s3300_s26 = scalar_lea.sflag [#allocation4], %s5881_s28  ;;  %s5032_s9 = scalar_lea.vmem %s6119_s5, 128 }
 0x2bf   : > { %4068 = vmatpush3.bf16.msra.mxu0 %v4067_v9  ;;  %4057 = vmatprep.subr.bf16.mxu1 %v5181_v0  ;;  %v5947_v18 = vld [vmem:[%s852_s14] sm:$0xff]  ;;  %v4079_v20 = vpack.c.bf16 %v1342_v17, %v1341_v16  ;;  %v1019_v21 = vld [vmem:[#allocation8 + $0x30] sm:$0xff]  ;;  %v1028_v35 = vld [vmem:[#allocation8 + $0x78] sm:$0xff]  ;;  %p5033_p7 = scmp.ne.s32.totalorder %s6119_s5, %s5032_s9  ;;  %p6327_p8 = scmp.ne.s32.totalorder %s6276_s23, 0 }
 0x2c0   : > { %4069 = vmatprep.subr.bf16.mxu0 %v5181_v0  ;;  %v1343_v23 = vld [vmem:[#allocation11 + $0x10] sm:$0xff]  ;;  %v1344_v24 = vld [vmem:[#allocation11 + $0x18] sm:$0xff]  ;;  %v4064_v25 = vpack.c.bf16 %v1020_v22, %v1019_v21  ;;  %v1026_v28 = vld [vmem:[#allocation8 + $0x68] sm:$0xff]  ;;  %s5184_s15 = smov [#allocation35]  }
 0x2c1   : > { %v4082_v26 = vpack.c.bf16 %v1344_v24, %v1343_v23  ;;  %v1025_v27 = vld [vmem:[#allocation8 + $0x60] sm:$0xff]  ;;  %v1350_v30 = vld [vmem:[#allocation11 + $0x48] sm:$0xff]  ;;  %v1351_v36 = vld [vmem:[#allocation11 + $0x50] sm:$0xff]  ;;  %p5034_p11 = pnand %p5033_p7, %p6327_p8  ;;  %s5036_s13 = sshll.u32 %s5184_s15, 4  ;;  %s5037_s13 = int_to_ptr.vmem [resolvable:$false] %s5036_s13 }
 0x2c2   : > { %4059 = vmatpush3.bf16.msra.mxu1 %v4058_v12  ;;  %v1349_v29 = vld [vmem:[#allocation11 + $0x40] sm:$0xff]  ;;  %v4073_v31 = vpack.c.bf16 %v1026_v28, %v1025_v27  ;;  %v5964_v32 = vld [vmem:[%s861_s1] sm:$0xff]  ;;  %v3662_v23 = vld [vmem:[#allocation10] ss:$0 sm:$0xff]  ;;  %s3714_s4 = sshll.u32 %s6325_s29, 7  ;;  %s5038_s24 = scalar_lea.vmem %s5037_s13, 256 }
 0x2c3   : > { %4071 = vmatpush3.bf16.msra.mxu0 %v4070_v13  ;;  %4060 = vmatprep.subr.bf16.mxu1 %v5181_v0  ;;  %v4091_v33 = vpack.c.bf16 %v1350_v30, %v1349_v29  ;;  %v1027_v34 = vld [vmem:[#allocation8 + $0x70] sm:$0xff]  ;;  %v1352_v37 = vld [vmem:[#allocation11 + $0x58] sm:$0xff]  ;;  %v1345_v40 = vld [vmem:[#allocation11 + $0x20] sm:$0xff]  ;;  %s6117_s6 = scalar_lea.hbm %s6326_s8, %s3714_s4  ;;  %p5035_p2 = pneg %p5034_p11 }
 0x2c4   : > { %4078 = vmatprep.subr.bf16.mxu0 %v5181_v0  ;;  %v4076_v38 = vpack.c.bf16 %v1028_v35, %v1027_v34  ;;  %v4094_v39 = vpack.c.bf16 %v1352_v37, %v1351_v36  ;;  %v1346_v41 = vld [vmem:[#allocation11 + $0x28] sm:$0xff]  ;;  %v1347_v45 = vld [vmem:[#allocation11 + $0x30] sm:$0xff]  ;;  %v1348_v46 = vld [vmem:[#allocation11 + $0x38] sm:$0xff]  ;;  %p5039_p5 = scmp.lt.s32.totalorder %s6119_s5, %s5037_s13  ;;  %p5040_p1 = scmp.lt.s32.totalorder %s5038_s24, %s5032_s9 }
 0x2c5   : > { %3830 = vmatmul.mubr.msk.f32.vlgmr.msra.gmra.mrb[0].mxu1 %vm1057_vm1, %v5947_v18  ;;  %v1668_v42 = vld [vmem:[#allocation14] sm:$0xff]  ;;  %v1669_v43 = vld [vmem:[#allocation14 + $0x8] sm:$0xff]  ;;  %v4085_v44 = vpack.c.bf16 %v1346_v41, %v1345_v40  ;;  %v1670_v48 = vld [vmem:[#allocation14 + $0x10] sm:$0xff]  ;;  %v4088_v50 = vpack.c.bf16 %v1348_v46, %v1347_v45 }
 0x2c6   : > { %4062 = vmatpush3.bf16.msra.mxu1 %v4061_v19  ;;  %3852 = vmatmul.mubr.msk.f32.vlgmr.msra.gmra.mrb[0].mxu0 %vm1057_vm1, %v5947_v18  ;;  %v4103_v47 = vpack.c.bf16 %v1669_v43, %v1668_v42  ;;  %v1671_v49 = vld [vmem:[#allocation14 + $0x18] sm:$0xff]  ;;  %v1354_v52 = vld [vmem:[#allocation11 + $0x68] sm:$0xff]  ;;  %v1355_v57 = vld [vmem:[#allocation11 + $0x70] sm:$0xff]  ;;  %p5041_p9 = por %p5040_p1, %p5039_p5 }
 0x2c7   : > { %4080 = vmatpush3.bf16.msra.mxu0 %v4079_v20  ;;  %4063 = vmatprep.subr.bf16.mxu1 %v5181_v0  ;;  %v1353_v51 = vld [vmem:[#allocation11 + $0x60] sm:$0xff]  ;;  %v4106_v53 = vpack.c.bf16 %v1671_v49, %v1670_v48  ;;  %v1677_v55 = vld [vmem:[#allocation14 + $0x48] sm:$0xff]  ;;  %v1356_v58 = vld [vmem:[#allocation11 + $0x78] sm:$0xff] }
 0x2c8   : > { %4081 = vmatprep.subr.bf16.mxu0 %v5181_v0  ;;  %3840 = vmatprep.mubr.msk.f32.mxu1 %vm5182_vm0, %v5183_v1  ;;  %v1676_v54 = vld [vmem:[#allocation14 + $0x40] sm:$0xff]  ;;  %v4097_v56 = vpack.c.bf16 %v1354_v52, %v1353_v51  ;;  %v4100_v60 = vpack.c.bf16 %v1356_v58, %v1355_v57  ;;  %v1678_v61 = vld [vmem:[#allocation14 + $0x50] sm:$0xff]  ;;  %v1679_v62 = vld [vmem:[#allocation14 + $0x58] sm:$0xff]  ;;  %p5042_p10 = pnand %p5041_p9, %p5035_p2 }
 0x2c9   : > { %3873 = vmatprep.mubr.msk.f32.mxu0 %vm5182_vm0, %v5183_v1  ;;  %v4115_v59 = vpack.c.bf16 %v1677_v55, %v1676_v54  ;;  %v4118_v63 = vpack.c.bf16 %v1679_v62, %v1678_v61  ;;  %v1672_v2 = vld [vmem:[#allocation14 + $0x20] sm:$0xff]  ;;  %v1673_v3 = vld [vmem:[#allocation14 + $0x28] sm:$0xff]  ;;  %v1674_v5 = vld [vmem:[#allocation14 + $0x30] sm:$0xff] }
 0x2ca   : > { %4065 = vmatpush3.bf16.msra.mxu1 %v4064_v25  ;;  %v4109_v4 = vpack.c.bf16 %v1673_v3, %v1672_v2  ;;  %v1675_v6 = vld [vmem:[#allocation14 + $0x38] sm:$0xff]  ;;  %v1680_v8 = vld [vmem:[#allocation14 + $0x60] sm:$0xff]  ;;  %v1681_v9 = vld [vmem:[#allocation14 + $0x68] sm:$0xff] }
 0x2cb   : > { %4083 = vmatpush3.bf16.msra.mxu0 %v4082_v26  ;;  %4072 = vmatprep.subr.bf16.mxu1 %v5181_v0  ;;  %v4112_v7 = vpack.c.bf16 %v1675_v6, %v1674_v5  ;;  %v4121_v10 = vpack.c.bf16 %v1681_v9, %v1680_v8  ;;  %v1682_v11 = vld [vmem:[#allocation14 + $0x70] sm:$0xff]  ;;  %v1683_v12 = vld [vmem:[#allocation14 + $0x78] sm:$0xff]  ;;  %v3678_v37 = vld [vmem:[#allocation16] ss:$0 sm:$0xff] }
 0x2cc   : > { %4090 = vmatprep.subr.bf16.mxu0 %v5181_v0  ;;  %v4124_v13 = vpack.c.bf16 %v1683_v12, %v1682_v11  ;;  %v3670_v19 = vld [vmem:[#allocation13] ss:$0 sm:$0xff]  ;;  %v3672_v27 = vld [vmem:[#allocation13 + $0x2] ss:$0 sm:$0xff]  ;;  %v3671_v35 = vld [vmem:[#allocation13 + $0x1] ss:$0 sm:$0xff] }
 0x2cd   : > { %3841 = vmatmul.mubr.msk.f32.vlgmr.msra.gmra.mrb[2].mxu1 %vm1057_vm1, %v5947_v18  ;;  %v3673_v45 = vld [vmem:[#allocation13 + $0x3] ss:$0 sm:$0xff]  ;;  %v1994_v2 = vld [vmem:[%s5899_s17 + $0x10] sm:$0xff]  ;;  %v1995_v12 = vld [vmem:[%s5899_s17 + $0x18] sm:$0xff] }
 0x2ce   : > { %3874 = vmatmul.mubr.msk.f32.vlgmr.msra.gmra.mrb[2].mxu0 %vm1057_vm1, %v5964_v32  ;;  %4074 = vmatpush3.bf16.msra.mxu1 %v4073_v31  ;;  %v3664_v31 = vld [vmem:[#allocation10 + $0x2] ss:$0 sm:$0xff] }
 0x2cf   : > { %4092 = vmatpush3.bf16.msra.mxu0 %v4091_v33  ;;  %4075 = vmatprep.subr.bf16.mxu1 %v5181_v0 }
 0x2d0   : > { %4093 = vmatprep.subr.bf16.mxu0 %v5181_v0  ;;  %3862 = vmatprep.mubr.msk.f32.mxu1 %vm5182_vm0, %v5183_v1 }
 0x2d1   : > { %3895 = vmatprep.mubr.msk.f32.mxu0 %vm5182_vm0, %v5183_v1 }
 0x2d2   : > { %4077 = vmatpush3.bf16.msra.mxu1 %v4076_v38  ;;  %v3663_v38 = vld [vmem:[#allocation10 + $0x1] ss:$0 sm:$0xff] }
 0x2d3   : > { %4095 = vmatpush3.bf16.msra.mxu0 %v4094_v39  ;;  %4084 = vmatprep.subr.bf16.mxu1 %v5181_v0 }
 0x2d4   : > { %4102 = vmatprep.subr.bf16.mxu0 %v5181_v0 }
 0x2d5   : > { %3863 = vmatmul.mubr.msk.f32.vlgmr.msra.gmra.mrb[4].mxu1 %vm1057_vm1, %v5947_v18 }
 0x2d6   : > { %3896 = vmatmul.mubr.msk.f32.vlgmr.msra.gmra.mrb[4].mxu0 %vm1057_vm1, %v5964_v32  ;;  %4086 = vmatpush3.bf16.msra.mxu1 %v4085_v44 }
 0x2d7   : > { %4087 = vmatprep.subr.bf16.mxu1 %v5181_v0  ;;  %3884 = vmatprep.mubr.msk.f32.mxu1 %vm5182_vm0, %v5183_v1 }
 0x2d8   : > { %4104 = vmatpush3.bf16.msra.mxu0 %v4103_v47  ;;  %3917 = vmatprep.mubr.msk.f32.mxu0 %vm5182_vm0, %v5183_v1  ;;  %v3665_v47 = vld [vmem:[#allocation10 + $0x3] ss:$0 sm:$0xff] }
 0x2d9   : > { %4105 = vmatprep.subr.bf16.mxu0 %v5181_v0 }
 0x2da   : > { %4089 = vmatpush3.bf16.msra.mxu1 %v4088_v50 }
 0x2db   : > { %4096 = vmatprep.subr.bf16.mxu1 %v5181_v0 }
 0x2dc   : > { %4107 = vmatpush3.bf16.msra.mxu0 %v4106_v53  ;;  %v3679_v53 = vld [vmem:[#allocation16 + $0x1] ss:$0 sm:$0xff] }
 0x2dd   : > { %3885 = vmatmul.mubr.msk.f32.vlgmr.msra.gmra.mrb[6].mxu1 %vm1057_vm1, %v5964_v32  ;;  %4114 = vmatprep.subr.bf16.mxu0 %v5181_v0 }
 0x2de   : > { %4098 = vmatpush3.bf16.msra.mxu1 %v4097_v56  ;;  %3906 = vmatprep.mubr.msk.f32.mxu1 %vm5182_vm0, %v5183_v1 }
 0x2df   : > { %4099 = vmatprep.subr.bf16.mxu1 %v5181_v0  ;;  %3918 = vmatmul.mubr.msk.f32.vlgmr.msra.gmra.mrb[6].mxu0 %vm1057_vm1, %v5964_v32 }
 0x2e0   : > { %4116 = vmatpush3.bf16.msra.mxu0 %v4115_v59  ;;  %3939 = vmatprep.mubr.msk.f32.mxu0 %vm5182_vm0, %v5183_v1  ;;  %v1992_v59 = vld [vmem:[%s5899_s17] sm:$0xff] }
 0x2e1   : > { %4117 = vmatprep.subr.bf16.mxu0 %v5181_v0 }
 0x2e2   : > { %4101 = vmatpush3.bf16.msra.mxu1 %v4100_v60 }
 0x2e3   : > { %4108 = vmatprep.subr.bf16.mxu1 %v5181_v0 }
 0x2e4   : > { %4119 = vmatpush3.bf16.msra.mxu0 %v4118_v63 }
 0x2e5   : > { %3907 = vmatmul.mubr.msk.f32.vlgmr.msra.gmra.mrb[8].mxu1 %vm1057_vm1, %v5964_v32  ;;  %3953 = vmatprep.subr.mxu0 %v5183_v1 }
 0x2e6   : > { %3928 = vmatprep.mubr.msk.f32.mxu1 %vm5182_vm0, %v5183_v1  ;;  %4110 = vmatpush3.bf16.msra.mxu1 %v4109_v4 }
 0x2e7   : > { %4111 = vmatprep.subr.bf16.mxu1 %v5181_v0  ;;  %3940 = vmatmul.mubr.msk.f32.vlgmr.msra.gmra.mrb[8].mxu0 %vm1057_vm1, %v5964_v32 }
 0x2e8   : > { %3955 = vmatprep.mubr.msk.f32.mxu0 %vm5182_vm0, %v5183_v1 }
 0x2ea   : > { %4113 = vmatpush3.bf16.msra.mxu1 %v4112_v7  ;;  %v1993_v7 = vld [vmem:[%s5899_s17 + $0x8] sm:$0xff] }
 0x2eb   : > { %4120 = vmatprep.subr.bf16.mxu1 %v5181_v0 }
 0x2ed   : > { %3929 = vmatmul.mubr.msk.f32.vlgmr.msra.gmra.mrb[10].mxu1 %vm1057_vm1, %v5964_v32 }
 0x2ee   : > { %4122 = vmatpush3.bf16.msra.mxu1 %v4121_v10  ;;  %3950 = vmatprep.mubr.msk.f32.mxu1 %vm5182_vm0, %v5183_v1 }
 0x2ef   : > { %4123 = vmatprep.subr.bf16.mxu1 %v5181_v0 }
 0x2f2   : > { %4125 = vmatpush3.bf16.msra.mxu1 %v4124_v13 }
 0x2f3   : > { %3958 = vmatprep.subr.mxu1 %v5183_v1 }
 0x2f5   : > { %3951 = vmatmul.mubr.msk.f32.vlgmr.msra.gmra.mrb[12].mxu1 %vm1057_vm1, %v5964_v32 }
 0x2f6   : > { %3960 = vmatprep.mubr.msk.f32.mxu1 %vm5182_vm0, %v5183_v1 }
 0x398   : > { %v1127_v14 = vpop.f32.mrb[0].mxu1 }
 0x399   : > { %v3831_v15 = vpop.f32.mrb[1].mxu1  ;;  %v1267_v16 = vpop.f32.mrb[0].mxu0  ;;  %v1128_v26 = vadd.f32 %v3662_v23, %v1127_v14 }
 0x39a   : > { %v3853_v17 = vpop.f32.mrb[1].mxu0  ;;  %v1268_v34 = vadd.f32 %v3664_v31, %v1267_v16 }
 0x3a0   : > { %v1197_v20 = vpop.f32.mrb[2].mxu1 }
 0x3a1   : > { %v1454_v21 = vpop.f32.mrb[2].mxu0  ;;  %v3842_v22 = vpop.f32.mrb[3].mxu1  ;;  %v1198_v44 = vadd.f32 %v3663_v38, %v1197_v20 }
 0x3a2   : > { %v1455_v24 = vadd.f32 %v3670_v19, %v1454_v21  ;;  %v3875_v25 = vpop.f32.mrb[3].mxu0 }
 0x3a4   : > { %3954 = vmatpush3.xpose.msk.msra.mxu0 %vm1996_vm2, %v1455_v24 }
 0x3a5   : > { %3963 = vmatprep.subr.mxu0 %v5183_v1 }
 0x3a7   : > { %3956 = vmatmul.mubr.msk.f32.vlgmr.msra.gmra.mrb[10].mxu0 %vm1996_vm2, %v1128_v26 }
 0x3a8   : > { %v1337_v28 = vpop.f32.mrb[4].mxu1  ;;  %3965 = vmatprep.mubr.msk.f32.mxu0 %vm5182_vm0, %v5183_v1 }
 0x3a9   : > { %v1594_v29 = vpop.f32.mrb[4].mxu0  ;;  %v3864_v30 = vpop.f32.mrb[5].mxu1  ;;  %v1338_v50 = vadd.f32 %v3665_v47, %v1337_v28 }
 0x3aa   : > { %v1595_v32 = vadd.f32 %v3672_v27, %v1594_v29  ;;  %v3897_v33 = vpop.f32.mrb[5].mxu0 }
 0x3ac   : > { %3964 = vmatpush3.xpose.msk.msra.mxu0 %vm1996_vm2, %v1595_v32 }
 0x3ad   : > { %3973 = vmatprep.subr.mxu0 %v5183_v1 }
 0x3af   : > { %3966 = vmatmul.mubr.msk.f32.vlgmr.msra.gmra.mrb[12].mxu0 %vm1996_vm2, %v1268_v34 }
 0x3b0   : > { %v1524_v36 = vpop.f32.mrb[6].mxu1  ;;  %3975 = vmatprep.mubr.msk.f32.mxu0 %vm5182_vm0, %v5183_v1 }
 0x3b1   : > { %v1525_v39 = vadd.f32 %v3671_v35, %v1524_v36  ;;  %v3886_v40 = vpop.f32.mrb[7].mxu1 }
 0x3b2   : > { %v1778_v41 = vpop.f32.mrb[6].mxu0  ;;  %v3680_v40 = vld [vmem:[#allocation16 + $0x2] ss:$0 sm:$0xff] }
 0x3b3   : > { %3959 = vmatpush3.xpose.msk.msra.mxu1 %vm1996_vm2, %v1525_v39  ;;  %v1779_v42 = vadd.f32 %v3678_v37, %v1778_v41  ;;  %v3919_v43 = vpop.f32.mrb[7].mxu0 }
 0x3b4   : > { %3968 = vmatprep.subr.mxu1 %v5183_v1 }
 0x3b5   : > { %3974 = vmatpush3.msra.mxu0 %v1779_v42 }
 0x3b6   : > { %3961 = vmatmul.mubr.msk.f32.vlgmr.msra.gmra.mrb[14].mxu1 %vm1996_vm2, %v1198_v44  ;;  %3983 = vmatprep.subr.mxu0 %v5183_v1 }
 0x3b7   : > { %3970 = vmatprep.mubr.msk.f32.mxu1 %vm5182_vm0, %v5183_v1 }
 0x3b8   : > { %v1664_v46 = vpop.f32.mrb[8].mxu1 }
 0x3b9   : > { %v1665_v48 = vadd.f32 %v3673_v45, %v1664_v46  ;;  %v3908_v49 = vpop.f32.mrb[9].mxu1 }
 0x3ba   : > { %v6044_v51 = vpop.f32.mrb[8].mxu0 }
 0x3bb   : > { %3969 = vmatpush3.xpose.msk.msra.mxu1 %vm1996_vm2, %v1665_v48  ;;  %v3941_v52 = vpop.f32.mrb[9].mxu0  ;;  %v1919_v43 = vadd.f32 %v3680_v40, %v6044_v51  ;;  %v3681_v48 = vld [vmem:[#allocation16 + $0x3] ss:$0 sm:$0xff] }
 0x3bc   : > { %3978 = vmatprep.subr.mxu1 %v5183_v1 }
 0x3be   : > { %3971 = vmatmul.mubr.msk.f32.vlgmr.msra.gmra.mrb[16].mxu1 %vm1996_vm2, %v1338_v50 }
 0x3bf   : > { %3980 = vmatprep.mubr.msk.f32.mxu1 %vm5182_vm0, %v5183_v1 }
 0x3c0   : > { %v1848_v54 = vpop.f32.mrb[10].mxu1 }
 0x3c1   : > { %v1849_v55 = vadd.f32 %v3679_v53, %v1848_v54  ;;  %v3930_v56 = vpop.f32.mrb[11].mxu1  ;;  %v2637_v54 = vld [vmem:[#allocation17] sm:$0xff] }
 0x3c2   : > { %v2639_v56 = vld [vmem:[#allocation17 + $0x10] sm:$0xff] }
 0x3c3   : > { %3979 = vmatpush3.msra.mxu1 %v1849_v55  ;;  %v2638_v55 = vld [vmem:[#allocation17 + $0x8] sm:$0xff] }
 0x3c4   : > { %3988 = vmatprep.subr.mxu1 %v5183_v1 }
 0x3c8   : > { %v6047_v57 = vpop.f32.mrb[12].mxu1 }
 0x3c9   : > { %v3952_v58 = vpop.f32.mrb[13].mxu1  ;;  %v1989_v51 = vadd.f32 %v3681_v48, %v6047_v57  ;;  %v3072_v48 = vld [vmem:[#allocation26 + $0x18] sm:$0xff] }
 0x47a   : > { %v2069_v60 = vpop.f32.mrb[10].mxu0 }
 0x47b   : > { %v2070_v61 = vadd.f32 %v2069_v60, %v1992_v59  ;;  %v3957_v62 = vpop.f32.mrb[11].mxu0 }
 0x47d   : > { %v2301_v63 = vsel %vm1996_vm2, %v2070_v61, -inf }
 0x47e   : > { %2302 = vmax.xlane.f32.xlu0 %v2301_v63 }
 0x482   : > { %v2221_v3 = vpop.f32.mrb[12].mxu0 }
 0x483   : > { %v2222_v4 = vadd.f32 %v2221_v3, %v1994_v2  ;;  %v3967_v5 = vpop.f32.mrb[13].mxu0 }
 0x484   : > { %v2955_v5 = vld [vmem:[#allocation20 + $0x8] sm:$0xff] }
 0x485   : > { %v2307_v6 = vsel %vm1996_vm2, %v2222_v4, -inf }
 0x486   : > { %2308 = vmax.xlane.f32.xlu1 %v2307_v6 }
 0x489   : > { %v2145_v8 = vpop.f32.mrb[14].mxu1 }
 0x48a   : > { %v2146_v9 = vadd.f32 %v2145_v8, %v1993_v7  ;;  %v3962_v10 = vpop.f32.mrb[15].mxu1  ;;  %v2956_v7 = vld [vmem:[#allocation20 + $0x10] sm:$0xff]  ;;  %v2957_v8 = vld [vmem:[#allocation20 + $0x18] sm:$0xff] }
 0x48c   : > { %v2304_v11 = vsel %vm1996_vm2, %v2146_v9, -inf }
 0x48d   : > { %2305 = vmax.xlane.f32.xlu0 %v2304_v11 }
 0x491   : > { %v2297_v13 = vpop.f32.mrb[16].mxu1 }
 0x492   : > { %v2298_v14 = vadd.f32 %v2297_v13, %v1995_v12  ;;  %v3972_v15 = vpop.f32.mrb[17].mxu1 }
 0x494   : > { %v2310_v16 = vsel %vm1996_vm2, %v2298_v14, -inf }
 0x495   : > { %2311 = vmax.xlane.f32.xlu1 %v2310_v16 }
 0x50b   : > { %v2303_v17 = vpop.xlane.xlu0 %2302 }
 0x50c   : > { %v2313_v19 = vsub.f32 %v2070_v61, %v2303_v17  ;;  %v2640_v61 = vld [vmem:[#allocation17 + $0x18] sm:$0xff] }
 0x50e   : > { %v2317_v20 = vmul.f32 1.442695, %v2313_v19 }
 0x510   : > { %4410 = vpow2.f32 %v2317_v20 }
 0x513   : > { %v2309_v21 = vpop.xlane.xlu1 %2308 }
 0x514   : > { %v2315_v22 = vsub.f32 %v2222_v4, %v2309_v21  ;;  %v2954_v4 = vld [vmem:[#allocation20] sm:$0xff] }
 0x515   : > { %v4127_v6 = vpack.c.bf16 %v2955_v5, %v2954_v4  ;;  %v3185_v5 = vld [vmem:[#allocation29 + $0x30] sm:$0xff] }
 0x516   : > { %v2321_v23 = vmul.f32 1.442695, %v2315_v22 }
 0x518   : > { %4412 = vpow2.f32 %v2321_v23 }
 0x51a   : > { %v4411_v24 = vpop.eup %4410  ;;  %v2306_v25 = vpop.xlane.xlu0 %2305 }
 0x51b   : > { %v2314_v26 = vsub.f32 %v2146_v9, %v2306_v25  ;;  %v2325_v27 = vsel %vm1996_vm2, %v4411_v24, 0.0  ;;  %v4130_v9 = vpack.c.bf16 %v2957_v8, %v2956_v7  ;;  %v3707_v8 = vld [vmem:[#allocation28] ss:$0 sm:$0xff] }
 0x51c   : > { %2326 = vadd.xlane.f32.xlu0 %v2325_v27 }
 0x51d   : > { %v2319_v28 = vmul.f32 1.442695, %v2314_v26 }
 0x51f   : > { %4414 = vpow2.f32 %v2319_v28 }
 0x522   : > { %v4413_v29 = vpop.eup %4412  ;;  %v2312_v30 = vpop.xlane.xlu1 %2311 }
 0x523   : > { %v2316_v31 = vsub.f32 %v2298_v14, %v2312_v30  ;;  %v2331_v32 = vsel %vm1996_vm2, %v4413_v29, 0.0 }
 0x524   : > { %2332 = vadd.xlane.f32.xlu0 %v2331_v32 }
 0x525   : > { %v2323_v33 = vmul.f32 1.442695, %v2316_v31 }
 0x527   : > { %4416 = vpow2.f32 %v2323_v33 }
 0x529   : > { %v4415_v34 = vpop.eup %4414 }
 0x52a   : > { %v2328_v35 = vsel %vm1996_vm2, %v4415_v34, 0.0 }
 0x52b   : > { %2329 = vadd.xlane.f32.xlu1 %v2328_v35 }
 0x531   : > { %v4417_v36 = vpop.eup %4416 }
 0x532   : > { %v2334_v37 = vsel %vm1996_vm2, %v4417_v36, 0.0 }
 0x533   : > { %2335 = vadd.xlane.f32.xlu1 %v2334_v37 }
 0x5a9   : > { %v2327_v38 = vpop.xlane.xlu0 %2326 }
 0x5aa   : > { %4418 = vrcp.f32 %v2327_v38 }
 0x5b1   : > { %v2333_v39 = vpop.xlane.xlu0 %2332 }
 0x5b2   : > { %4420 = vrcp.f32 %v2333_v39 }
 0x5b4   : > { %v4419_v41 = vpop.eup %4418 }
 0x5b5   : > { %v2341_v42 = vmul.f32 %v4419_v41, %v4411_v24  ;;  %v3702_v24 = vld [vmem:[#allocation19] ss:$0 sm:$0xff] }
 0x5b7   : > { %3976 = vmatmul.mubr.msk.f32.vlgmr.msra.gmra.mrb[14].mxu0 %vm1996_vm2, %v2341_v42 }
 0x5b8   : > { %3984 = vmatpush3.msra.mxu0 %v1919_v43  ;;  %v2330_v44 = vpop.xlane.xlu1 %2329  ;;  %3985 = vmatprep.mubr.msk.f32.mxu0 %vm5182_vm0, %v5183_v1 }
 0x5b9   : > { %4422 = vrcp.f32 %v2330_v44  ;;  %3993 = vmatprep.subr.mxu0 %v5183_v1 }
 0x5bc   : > { %v4421_v45 = vpop.eup %4420 }
 0x5bd   : > { %v2343_v46 = vmul.f32 %v4421_v45, %v4413_v29  ;;  %v3069_v45 = vld [vmem:[#allocation26] sm:$0xff] }
 0x5bf   : > { %3986 = vmatmul.mubr.msk.f32.vlgmr.msra.gmra.mrb[16].mxu0 %vm1996_vm2, %v2343_v46  ;;  %v3070_v46 = vld [vmem:[#allocation26 + $0x8] sm:$0xff] }
 0x5c0   : > { %v2336_v47 = vpop.xlane.xlu1 %2335  ;;  %3995 = vmatprep.mubr.msk.f32.mxu0 %vm5182_vm0, %v5183_v1  ;;  %3994 = vmatpush3.msra.mxu0 %v2637_v54 }
 0x5c1   : > { %4424 = vrcp.f32 %v2336_v47  ;;  %4003 = vmatprep.subr.mxu0 %v5183_v1  ;;  %v4133_v47 = vpack.c.bf16 %v3070_v46, %v3069_v45 }
 0x5c3   : > { %v4423_v49 = vpop.eup %4422 }
 0x5c4   : > { %v2342_v50 = vmul.f32 %v4423_v49, %v4415_v34  ;;  %v3703_v34 = vld [vmem:[#allocation22] ss:$0 sm:$0xff] }
 0x5c6   : > { %3981 = vmatmul.mubr.msk.f32.vlgmr.msra.gmra.mrb[18].mxu1 %vm1996_vm2, %v2342_v50 }
 0x5c7   : > { %3989 = vmatpush3.msra.mxu1 %v1989_v51  ;;  %3990 = vmatprep.mubr.msk.f32.mxu1 %vm5182_vm0, %v5183_v1 }
 0x5c8   : > { %3998 = vmatprep.subr.mxu1 %v5183_v1 }
 0x5cb   : > { %v4425_v52 = vpop.eup %4424 }
 0x5cc   : > { %v2344_v53 = vmul.f32 %v4425_v52, %v4417_v36 }
 0x5ce   : > { %3991 = vmatmul.mubr.msk.f32.vlgmr.msra.gmra.mrb[20].mxu1 %vm1996_vm2, %v2344_v53  ;;  %v3705_v53 = vld [vmem:[#allocation23] ss:$0 sm:$0xff] }
 0x5cf   : > { %4000 = vmatprep.mubr.msk.f32.mxu1 %vm5182_vm0, %v5183_v1  ;;  %3999 = vmatpush3.msra.mxu1 %v2638_v55  ;;  %v3706_v55 = vld [vmem:[#allocation25] ss:$0 sm:$0xff] }
 0x5d0   : > { %4008 = vmatprep.subr.mxu1 %v5183_v1 }
 0x68a   : > { %v2414_v57 = vpop.f32.mrb[14].mxu0 }
 0x68b   : > { %v3977_v58 = vpop.f32.mrb[15].mxu0  ;;  %3996 = vmatmul.mubr.msk.f32.vlgmr.msra.gmra.mrb[18].mxu0 %vm1996_vm2, %v2414_v57 }
 0x68c   : > { %4004 = vmatpush3.msra.mxu0 %v2639_v56  ;;  %4005 = vmatprep.mubr.msk.f32.mxu0 %vm5182_vm0, %v5183_v1  ;;  %v3179_v58 = vld [vmem:[#allocation29] sm:$0xff] }
 0x68d   : > { %4126 = vmatprep.subr.bf16.mxu0 %v5181_v0 }
 0x692   : > { %v2560_v59 = vpop.f32.mrb[16].mxu0 }
 0x693   : > { %v3987_v60 = vpop.f32.mrb[17].mxu0  ;;  %4006 = vmatmul.mubr.msk.f32.vlgmr.msra.gmra.mrb[20].mxu0 %vm1996_vm2, %v2560_v59  ;;  %v3180_v59 = vld [vmem:[#allocation29 + $0x8] sm:$0xff] }
 0x694   : > { %4021 = vmatprep.mubr.msk.f32.mxu0 %vm5182_vm0, %v5183_v1  ;;  %4128 = vmatpush3.bf16.msra.mxu0 %v4127_v6  ;;  %v4139_v60 = vpack.c.bf16 %v3180_v59, %v3179_v58  ;;  %v3186_v6 = vld [vmem:[#allocation29 + $0x38] sm:$0xff] }
 0x695   : > { %4129 = vmatprep.subr.bf16.mxu0 %v5181_v0  ;;  %v4148_v7 = vpack.c.bf16 %v3186_v6, %v3185_v5 }
 0x698   : > { %4131 = vmatpush3.bf16.msra.mxu0 %v4130_v9 }
 0x699   : > { %v2487_v62 = vpop.f32.mrb[18].mxu1  ;;  %4138 = vmatprep.subr.bf16.mxu0 %v5181_v0 }
 0x69a   : > { %v3982_v63 = vpop.f32.mrb[19].mxu1  ;;  %4001 = vmatmul.mubr.msk.f32.vlgmr.msra.gmra.mrb[22].mxu1 %vm1996_vm2, %v2487_v62  ;;  %v3182_v62 = vld [vmem:[#allocation29 + $0x18] sm:$0xff] }
 0x69b   : > { %4009 = vmatpush3.msra.mxu1 %v2640_v61  ;;  %4010 = vmatprep.mubr.msk.f32.mxu1 %vm5182_vm0, %v5183_v1  ;;  %v3181_v61 = vld [vmem:[#allocation29 + $0x10] sm:$0xff] }
 0x69c   : > { %4132 = vmatprep.subr.bf16.mxu1 %v5181_v0  ;;  %v4142_v63 = vpack.c.bf16 %v3182_v62, %v3181_v61 }
 0x6a1   : > { %v2633_v2 = vpop.f32.mrb[20].mxu1 }
 0x6a2   : > { %v3992_v3 = vpop.f32.mrb[21].mxu1  ;;  %4011 = vmatmul.mubr.msk.f32.vlgmr.msra.gmra.mrb[24].mxu1 %vm1996_vm2, %v2633_v2  ;;  %v3183_v2 = vld [vmem:[#allocation29 + $0x20] sm:$0xff] }
 0x6a3   : > { %4032 = vmatprep.mubr.msk.f32.mxu1 %vm5182_vm0, %v5183_v1  ;;  %4134 = vmatpush3.bf16.msra.mxu1 %v4133_v47  ;;  %v3184_v3 = vld [vmem:[#allocation29 + $0x28] sm:$0xff] }
 0x6a4   : > { %4135 = vmatprep.subr.bf16.mxu1 %v5181_v0  ;;  %v4145_v4 = vpack.c.bf16 %v3184_v3, %v3183_v2 }
 0x75e   : > { %v2710_v10 = vpop.f32.mrb[18].mxu0 }
 0x75f   : > { %v3997_v11 = vpop.f32.mrb[19].mxu0  ;;  %v2933_v15 = vsel %vm1057_vm1, %v2710_v10, 0.0 }
 0x766   : > { %v2856_v12 = vpop.f32.mrb[20].mxu0 }
 0x767   : > { %v4007_v13 = vpop.f32.mrb[21].mxu0  ;;  %v2936_v20 = vsel %vm1057_vm1, %v2856_v12, 0.0 }
 0x76d   : > { %v2783_v14 = vpop.f32.mrb[22].mxu1 }
 0x76e   : > { %v2934_v16 = vsel %vm1057_vm1, %v2783_v14, 0.0  ;;  %v4002_v17 = vpop.f32.mrb[23].mxu1 }
 0x76f   : > { %v2935_v19 = vadd.f32 %v2934_v16, %v2933_v15 }
 0x771   : > { %v2937_v21 = vadd.f32 %v2936_v20, %v2935_v19 }
 0x775   : > { %v2929_v22 = vpop.f32.mrb[24].mxu1 }
 0x776   : > { %v2938_v23 = vsel %vm1057_vm1, %v2929_v22, 0.0  ;;  %v4012_v25 = vpop.f32.mrb[25].mxu1 }
 0x777   : > { %v2939_v26 = vadd.f32 %v2938_v23, %v2937_v21 }
 0x779   : > { %v2947_v27 = vadd.f32 %v3702_v24, %v2939_v26 }
 0x77b   : > { %v2948_v28 = vsub.f32 0.0, %v2947_v27 }
 0x77d   : > { %v2949_v29 = vmul.f32 1.442695, %v2948_v28 }
 0x77f   : > { %4426 = vpow2.f32 %v2949_v29 }
 0x789   : > { %v4427_v30 = vpop.eup %4426 }
 0x78a   : > { %v2951_v31 = vadd.f32 1.0, %v4427_v30 }
 0x78c   : > { %4428 = vrcp.f32 %v2951_v31 }
 0x796   : > { %v4429_v32 = vpop.eup %4428 }
 0x797   : > { %v2953_v33 = vmul.f32 %v4429_v32, %v2947_v27 }
 0x799   : > { %4022 = vmatmul.mubr.msk.f32.vlgmr.msra.gmra.mrb[22].mxu0 %vm1057_vm1, %v2953_v33 }
 0x79a   : > { %4051 = vmatprep.mubr.msk.f32.mxu0 %vm5182_vm0, %v5183_v1  ;;  %v3071_v1 = vld [vmem:[#allocation26 + $0x10] sm:$0xff]  ;;  %4140 = vmatpush3.bf16.msra.mxu0 %v4139_v60 }
 0x79b   : > { %v4136_v49 = vpack.c.bf16 %v3072_v48, %v3071_v1  ;;  %4141 = vmatprep.subr.bf16.mxu0 %v5181_v0 }
 0x79d   : > { %4137 = vmatpush3.bf16.msra.mxu1 %v4136_v49 }
 0x79e   : > { %4143 = vmatpush3.bf16.msra.mxu0 %v4142_v63 }
 0x79f   : > { %4144 = vmatprep.subr.bf16.mxu0 %v5181_v0 }
 0x7a2   : > { %4146 = vmatpush3.bf16.msra.mxu0 %v4145_v4 }
 0x7a3   : > { %4147 = vmatprep.subr.bf16.mxu0 %v5181_v0 }
 0x7a6   : > { %4149 = vmatpush3.bf16.msra.mxu0 %v4148_v7 }
 0x86c   : > { %v3034_v35 = vpop.f32.mrb[22].mxu0 }
 0x86d   : > { %v3035_v36 = vadd.f32 %v3703_v34, %v3034_v35  ;;  %v4023_v37 = vpop.f32.mrb[23].mxu0 }
 0x86e   : > { %v3709_v37 = vld [vmem:[#allocation31] ss:$0 sm:$0xff] }
 0x86f   : > { %v3038_v38 = vadd.f32 %v3035_v36, %v5947_v18 }
 0x871   : > { %v3041_v39 = vsel %vm1057_vm1, %v3038_v38, 0.0 }
 0x872   : > { %3042 = vadd.xlane.f32.xlu0 %v3041_v39 }
 0x8ff   : > { %v3043_v40 = vpop.xlane.xlu0 %3042 }
 0x900   : > { %v3045_v41 = vmul.f32 0.03125, %v3043_v40 }
 0x902   : > { %v3046_v42 = vsub.f32 %v3038_v38, %v3045_v41 }
 0x904   : > { %v3047_v43 = vmul.f32 %v3046_v42, %v3046_v42 }
 0x906   : > { %v3048_v44 = vsel %vm1057_vm1, %v3047_v43, 0.0 }
 0x907   : > { %3049 = vadd.xlane.f32.xlu1 %v3048_v44 }
 0x994   : > { %v3050_v18 = vpop.xlane.xlu1 %3049 }
 0x995   : > { %v3051_v50 = vmul.f32 0.03125, %v3050_v18 }
 0x997   : > { %v3052_v51 = vadd.f32 1e-06, %v3051_v50  ;;  %v3711_v50 = vld [vmem:[#allocation32] ss:$0 sm:$0xff] }
 0x999   : > { %4430 = vrsqrt.f32 %v3052_v51 }
 0x9a3   : > { %v4431_v52 = vpop.eup %4430 }
 0x9a4   : > { %v3054_v54 = vmul.f32 %v4431_v52, %v3046_v42  ;;  %v3712_v52 = vld [vmem:[#allocation34] ss:$0 sm:$0xff] }
 0x9a6   : > { %v3061_v56 = vmul.f32 %v3705_v53, %v3054_v54 }
 0x9a8   : > { %v3068_v57 = vadd.f32 %v3706_v55, %v3061_v56 }
 0x9aa   : > { %4033 = vmatmul.mubr.msk.f32.vlgmr.msra.gmra.mrb[26].mxu1 %vm1057_vm1, %v3068_v57 }
 0xa7d   : > { %v3149_v9 = vpop.f32.mrb[26].mxu1 }
 0xa7e   : > { %v3150_v10 = vadd.f32 %v3707_v8, %v3149_v9  ;;  %v4034_v11 = vpop.f32.mrb[27].mxu1 }
 0xa80   : > { %v3154_v12 = vmul.f32 0.70710677, %v3150_v10  ;;  %v3153_v34 = vmul.f32 0.5, %v3150_v10 }
 0xa82   : > { %v3155_v13 = vand.u32 2147483647, %v3154_v12  ;;  %vm3174_vm3 = vcmp.ge.f32.partialorder %v3154_v12, 0.0 }
 0xa84   : > { %v3156_v14 = vmul.f32 0.3275911, %v3155_v13  ;;  %v3168_v16 = vsub.f32 0.0, %v3155_v13 }
 0xa86   : > { %v3157_v15 = vadd.f32 1.0, %v3156_v14  ;;  %v3169_v19 = vmul.f32 %v3168_v16, %v3155_v13 }
 0xa88   : > { %4432 = vrcp.f32 %v3157_v15  ;;  %v3170_v22 = vmul.f32 1.442695, %v3169_v19 }
 0xa8a   : > { %4434 = vpow2.f32 %v3170_v22 }
 0xa92   : > { %v4433_v17 = vpop.eup %4432 }
 0xa93   : > { %v3159_v20 = vmul.f32 1.0614054, %v4433_v17 }
 0xa94   : > { %v4435_v29 = vpop.eup %4434 }
 0xa95   : > { %v3160_v21 = vadd.f32 -1.4531521, %v3159_v20 }
 0xa97   : > { %v3161_v0 = vmul.f32 %v4433_v17, %v3160_v21 }
 0xa99   : > { %v3162_v23 = vadd.f32 1.4214138, %v3161_v0 }
 0xa9b   : > { %v3163_v24 = vmul.f32 %v4433_v17, %v3162_v23 }
 0xa9d   : > { %v3164_v25 = vadd.f32 -0.28449672, %v3163_v24 }
 0xa9f   : > { %v3165_v26 = vmul.f32 %v4433_v17, %v3164_v25 }
 0xaa1   : > { %v3166_v27 = vadd.f32 0.2548296, %v3165_v26 }
 0xaa3   : > { %v3167_v28 = vmul.f32 %v4433_v17, %v3166_v27 }
 0xaa5   : > { %v3172_v30 = vmul.f32 %v4435_v29, %v3167_v28 }
 0xaa7   : > { %v3173_v31 = vsub.f32 1.0, %v3172_v30 }
 0xaa9   : > { %v3175_v32 = vsub.f32 0.0, %v3173_v31 }
 0xaab   : > { %v3176_v33 = vsel %vm3174_vm3, %v3173_v31, %v3175_v32 }
 0xaac   : > { %v3177_v35 = vadd.f32 1.0, %v3176_v33 }
 0xaae   : > { %v3178_v36 = vmul.f32 %v3177_v35, %v3153_v34 }
 0xab0   : > { %4052 = vmatmul.mubr.msk.f32.vlgmr.msra.gmra.mrb[24].mxu0 %vm3194_vm4, %v3178_v36 }
 0xb83   : > { %v3264_v38 = vpop.f32.mrb[24].mxu0 }
 0xb84   : > { %v3265_v39 = vadd.f32 %v3709_v37, %v3264_v38  ;;  %v4053_v40 = vpop.f32.mrb[25].mxu0 }
 0xb86   : > { %v3268_v41 = vadd.f32 %v3265_v39, %v3068_v57 }
 0xb88   : > { %v3271_v42 = vsel %vm1057_vm1, %v3268_v41, 0.0 }
 0xb89   : > { %3272 = vadd.xlane.f32.xlu0 %v3271_v42 }
 0xc16   : > { %v3273_v43 = vpop.xlane.xlu0 %3272 }
 0xc17   : > { %v3274_v44 = vmul.f32 0.03125, %v3273_v43 }
 0xc19   : > { %v3275_v45 = vsub.f32 %v3268_v41, %v3274_v44 }
 0xc1b   : > { %v3276_v46 = vmul.f32 %v3275_v45, %v3275_v45 }
 0xc1d   : > { %v3277_v47 = vsel %vm1057_vm1, %v3276_v46, 0.0 }
 0xc1e   : > { %3278 = vadd.xlane.f32.xlu1 %v3277_v47 }
 0xcab   : > { %v3279_v1 = vpop.xlane.xlu1 %3278 }
 0xcac   : > { %v3280_v48 = vmul.f32 0.03125, %v3279_v1 }
 0xcae   : > { %v3281_v49 = vadd.f32 1e-06, %v3280_v48 }
 0xcb0   : > { %4436 = vrsqrt.f32 %v3281_v49 }
 0xcba   : > { %v4437_v18 = vpop.eup %4436 }
 0xcbb   : > { %v3283_v51 = vmul.f32 %v4437_v18, %v3275_v45 }
 0xcbd   : > { %v3290_v53 = vmul.f32 %v3711_v50, %v3283_v51 }
 0xcbf   : > { %v3297_v54 = vadd.f32 %v3712_v52, %v3290_v53 }
 0xcc1   : > { %3298 = vst.msk [vmem:[%s1010_s27] sm:$0xff] %vm1057_vm1, %v3297_v54 }
 0xcc2   : > { %5045 = shalt.err (!%p5042_p10)
}
 0xcc3   : > { %s5046_s28 = scalar_lea.hbm %s6117_s6, 128  ;;  %s5050_s12 = scalar_lea.hbm %s6326_s8, 256 }
 0xcc4   : > { %p5047_p6 = scmp.ne.s32.totalorder %s6117_s6, %s5046_s28  ;;  %p5051_p3 = scmp.lt.u32.totalorder %s6117_s6, %s6326_s8 }
 0xcc5   : > { %p5052_p13 = scmp.lt.u32.totalorder %s5050_s12, %s5046_s28  ;;  %p5054_p7 = scmp.lt.u32.totalorder %s5046_s28, %s6117_s6 }
 0xcc6   : > { %p5048_p0 = pnand %p5047_p6, %p6327_p8 }
 0xcc7   : > { %p5053_p4 = por %p5052_p13, %p5051_p3 }
 0xcc8   : > { %p5049_p12 = pneg %p5048_p0 }
 0xcc9   : > { %p5055_p11 = por %p5054_p7, %p5053_p4 }
 0xccb   : > { %p5056_p2 = pnand %p5055_p11, %p5049_p12 }
 0xccd   : > { %5059 = shalt.err (!%p5056_p2)
}
 0xcce   : > { %4228 = dma.vmem_to_hbm [thread:$0]  (%p6327_p8), %s6119_s5, 128, %s6117_s6, %s3300_s26  }
 0xccf PF: > { %s6328_s17 = sld [smem:[#allocation54_spill]]  ;;  %s6329_s29 = sld [smem:[#allocation50_spill]] }
 0xcd0   : > { %s3326_s4 = sand.u32 1, %s5134_s2  }
 0xcd1   : > { %s3327_s27 = scalar_lea.sflag [#allocation4], %s3326_s4 }
 0xcd5   : > { %p6330_p5 = scmp.ne.s32.totalorder %s6328_s17, 0  ;;  %p6331_p1 = scmp.ge.s32.totalorder %s6329_s29, 2 }
 0xcd7   : > { %p4296_p9 = pnand %p6331_p1, %p6330_p5 }
 0xcd9   : > { %5129 = dma.done.wait (!%p4296_p9), %s3327_s27, 128  }
 0xcda   : > { %5131 = vsyncadd (!%p4296_p9), %s3327_s27, 4294967168  ;;  %s49_s28 = sadd.s32 1, %s6329_s29   ;;  %s6332_s19 = sld [smem:[#allocation48_spill]] }
 0xcdb   : > { %p46_p10 = scmp.ge.s32.totalorder %s49_s28, 4   ;;  %s6333_s26 = sld [smem:[#allocation53_spill]] }
 0xcdc   : > { %s6334_s23 = sld [smem:[#allocation52_spill]]  ;;  %s6335_s2 = smov %s5138_s25 }
 0xcdd   : > { %s6337_s27 = smov %s5150_s3  ;;  %48 = sbr.rel (!%p46_p10) target bundleno = 40 (0x28), region = 245 }
 0xce0   : > { %s6336_s25 = smov %s6332_s19 }
 0xce2   : > { %s6338_s3 = smov %s6334_s23 }
 0xce4   :  { %3332 = vsyncpa [#allocation3], 1 }
 0xce5   :  { %3334 = vsyncpa [#allocation3 + $0x1], 1 }
 0xce6   :  { %3335 = vsyncpa [#allocation6], 1 }
 0xce7   :  { %3337 = vsyncpa [#allocation6 + $0x1], 1 }
 0xce8   :  { %3338 = vsyncpa [#allocation9], 1 }
 0xce9   :  { %3339 = vsyncpa [#allocation12], 1 }
 0xcea   :  { %3340 = vsyncpa [#allocation15], 1 }
 0xceb   :  { %3341 = vsyncpa [#allocation18], 1 }
 0xcec   :  { %3342 = vsyncpa [#allocation21], 1 }
 0xced   :  { %3343 = vsyncpa [#allocation24], 1 }
 0xcee   :  { %3344 = vsyncpa [#allocation27], 1 }
 0xcef   :  { %3345 = vsyncpa [#allocation30], 1 }
 0xcf0   :  { %3346 = vsyncpa [#allocation33], 1 }
 0xcf1   :  { %3347 = vsyncpa [#allocation4], 1 }
 0xcf2   :  { %3349 = vsyncpa [#allocation4 + $0x1], 1 }

// kernel: tpu_custom_call.1
= control target key start
LH: loop header
LB: loop body
LE: loop exit
PB: predicated region body
PF: predicated region fallthrough
CT: control target
= control target key end

     0   :  { %s6167_s0 = inlined_call_operand.hbm [shape: f32[2,8,32], index: 0, kind: input, shape index: {}]   ;;  %s6168_s1 = inlined_call_operand.hbm [shape: f32[2,8,32], index: 1, kind: input, shape index: {}]   ;;  %s6169_s2 = inlined_call_operand.hbm [shape: f32[2,4,8,8], index: 2, kind: input, shape index: {}]   ;;  %s6170_s3 = inlined_call_operand.hbm [shape: f32[4,32,8], index: 3, kind: input, shape index: {}]   ;;  %s6171_s4 = inlined_call_operand.hbm [shape: f32[4,1,8], index: 4, kind: input, shape index: {}]   ;;  %s6172_s5 = inlined_call_operand.hbm [shape: f32[4,32,8], index: 5, kind: input, shape index: {}]   ;;  %s6173_s6 = inlined_call_operand.hbm [shape: f32[4,1,8], index: 6, kind: input, shape index: {}]   ;;  %s6174_s7 = inlined_call_operand.hbm [shape: f32[4,32,8], index: 7, kind: input, shape index: {}]   ;;  %s6175_s8 = inlined_call_operand.hbm [shape: f32[4,1,8], index: 8, kind: input, shape index: {}]   ;;  %s6176_s9 = inlined_call_operand.hbm [shape: f32[4,8,32], index: 9, kind: input, shape index: {}]   ;;  %s6177_s10 = inlined_call_operand.hbm [shape: f32[1,32], index: 10, kind: input, shape index: {}]   ;;  %s6178_s11 = inlined_call_operand.hbm [shape: f32[32,32], index: 11, kind: input, shape index: {}]   ;;  %s6179_s12 = inlined_call_operand.hbm [shape: f32[1,32], index: 12, kind: input, shape index: {}]   ;;  %s6180_s13 = inlined_call_operand.hbm [shape: f32[1,32], index: 13, kind: input, shape index: {}]   ;;  %s6181_s14 = inlined_call_operand.hbm [shape: f32[1,32], index: 14, kind: input, shape index: {}]   ;;  %s6182_s15 = inlined_call_operand.hbm [shape: f32[32,64], index: 15, kind: input, shape index: {}]   ;;  %s6183_s16 = inlined_call_operand.hbm [shape: f32[1,64], index: 16, kind: input, shape index: {}]   ;;  %s6184_s17 = inlined_call_operand.hbm [shape: f32[64,32], index: 17, kind: input, shape index: {}]   ;;  %s6185_s18 = inlined_call_operand.hbm [shape: f32[1,32], index: 18, kind: input, shape index: {}]   ;;  %s6186_s19 = inlined_call_operand.hbm [shape: f32[1,32], index: 19, kind: input, shape index: {}]   ;;  %s6187_s20 = inlined_call_operand.hbm [shape: f32[1,32], index: 20, kind: input, shape index: {}]   ;;  %s6188_s21 = inlined_call_operand.hbm [shape: f32[2,8,32], index: 21, kind: output, shape index: {}]  }
   0x1   :  { %6233 = sst [smem:[#allocation55_spill]] %s6167_s0 }
   0x2   :  { %6234 = sst [smem:[#allocation56_spill]] %s6168_s1 }
   0x3   :  { %6235 = sst [smem:[#allocation57_spill]] %s6169_s2 }
   0x4   :  { %6236 = sst [smem:[#allocation58_spill]] %s6170_s3 }
   0x5   :  { %6237 = sst [smem:[#allocation59_spill]] %s6171_s4 }
   0x6   :  { %6238 = sst [smem:[#allocation60_spill]] %s6172_s5 }
   0x7   :  { %6239 = sst [smem:[#allocation61_spill]] %s6173_s6 }
   0x8   :  { %6240 = sst [smem:[#allocation62_spill]] %s6174_s7 }
   0x9   :  { %6241 = sst [smem:[#allocation63_spill]] %s6175_s8 }
   0xa   :  { %6242 = sst [smem:[#allocation64_spill]] %s6176_s9 }
   0xb   :  { %6243 = sst [smem:[#allocation65_spill]] %s6177_s10 }
   0xc   :  { %6244 = sst [smem:[#allocation66_spill]] %s6178_s11 }
   0xd   :  { %6245 = sst [smem:[#allocation67_spill]] %s6179_s12 }
   0xe   :  { %6246 = sst [smem:[#allocation68_spill]] %s6180_s13 }
   0xf   :  { %6247 = sst [smem:[#allocation69_spill]] %s6181_s14 }
  0x10   :  { %6248 = sst [smem:[#allocation70_spill]] %s6182_s15 }
  0x11   :  { %6249 = sst [smem:[#allocation71_spill]] %s6183_s16 }
  0x12   :  { %6250 = sst [smem:[#allocation72_spill]] %s6184_s17 }
  0x13   :  { %6251 = sst [smem:[#allocation73_spill]] %s6185_s18 }
  0x14   :  { %6252 = sst [smem:[#allocation74_spill]] %s6186_s19 }
  0x15   :  { %6253 = sst [smem:[#allocation75_spill]] %s6187_s20 }
  0x16   :  { %6254 = sst [smem:[#allocation76_spill]] %s6188_s21 }
  0x17   :  { %26 = vsyncpa [#allocation3], 0 }
  0x18   :  { %28 = vsyncpa [#allocation3 + $0x1], 0 }
  0x19   :  { %29 = vsyncpa [#allocation6], 0 }
  0x1a   :  { %31 = vsyncpa [#allocation6 + $0x1], 0 }
  0x1b   :  { %32 = vsyncpa [#allocation9], 0 }
  0x1c   :  { %33 = vsyncpa [#allocation12], 0 }
  0x1d   :  { %34 = vsyncpa [#allocation15], 0 }
  0x1e   :  { %35 = vsyncpa [#allocation18], 0 }
  0x1f   :  { %36 = vsyncpa [#allocation21], 0 }
  0x20   :  { %37 = vsyncpa [#allocation24], 0 }
  0x21   :  { %38 = vsyncpa [#allocation27], 0 }
  0x22   :  { %39 = vsyncpa [#allocation30], 0 }
  0x23   :  { %40 = vsyncpa [#allocation33], 0 }
  0x24   :  { %41 = vsyncpa [#allocation4], 0 }
  0x25   :  { %43 = vsyncpa [#allocation4 + $0x1], 0  ;;  %s5295_s2 = smov 0   ;;  %s5297_s25 = smov 0  }
  0x26   :  { %s5299_s26 = smov 0   ;;  %s5301_s27 = smov 0  }
  0x27   :  { %s5303_s3 = smov 0   ;;  %s5305_s28 = smov 0  }
  0x28 LB: > { %6255 = sst [smem:[#allocation48_spill]] %s5142_s26  ;;  %s5326_s29 = sadd.s32 4294967295, %s5154_s28   ;;  %s5154_s28 = sphi %s5305_s28, %s49_s28   ;;  %s5150_s3 = sphi %s5303_s3, %s6338_s3   ;;  %s5146_s27 = sphi %s5301_s27, %s6337_s27   ;;  %s5142_s26 = sphi %s5299_s26, %s6333_s26   ;;  %s5138_s25 = sphi %s5297_s25, %s6336_s25   ;;  %s5134_s2 = sphi %s5295_s2, %s6335_s2  }
  0x29   : > { %6256 = sst [smem:[#allocation49_spill]] %s5146_s27  ;;  %p3612_p0 = scmp.ge.s32.totalorder %s5154_s28, 1 }
  0x2a   : > { %6257 = sst [smem:[#allocation50_spill]] %s5154_s28  ;;  %p6205_p1 = scmp.eq.s32.totalorder %s5326_s29, 0 }
  0x2b   : > { %p554_p2 = scmp.lt.s32.totalorder %s5154_s28, 3  ;;  %s5156_s4 = smov [#allocation8]  }
  0x2c   : > { %s566_s30 = sshll.u32 %s5156_s4, 4  ;;  %s5157_s22 = smov [#allocation11]   ;;  %s5335_s30 = int_to_ptr.vmem [resolvable:$true] %s566_s30 }
  0x2d   : > { %p5331_p3 = pnand %p3612_p0, %p554_p2  ;;  %s592_s23 = sshll.u32 %s5157_s22, 4  ;;  %s5346_s23 = int_to_ptr.vmem [resolvable:$true] %s592_s23 }
  0x2e   : > { %s5158_s1 = smov [#allocation14]   ;;  %s6261_s27 = sld [smem:[#allocation58_spill]] }
  0x2f   : > { %s6258_s0 = scalar_select %p5331_p3, 1, 0 }
  0x30   : > { %p4230_p4 = pneg %p5331_p3  ;;  %s5348_s24 = sshll.u32 %s5158_s1, 4  ;;  %s619_s24 = int_to_ptr.vmem [resolvable:$true] %s5348_s24 }
  0x31   : > { %6259 = sst [smem:[#allocation51_spill]] %s6258_s0 }
  0x32   : > { %p5342_p6 = pnand %p4230_p4, %p6205_p1 }
  0x34   : > { %s6260_s5 = scalar_select %p5342_p6, 1, 0 }
  0x35   : > { %s6262_s20 = smov %s6261_s27  ;;  %s4438_s18 = scalar_lea.hbm %s6261_s27, 2048 }
  0x36   : > { %p4439_p7 = scmp.ne.s32.totalorder %s6262_s20, %s4438_s18  ;;  %p5358_p8 = pneg %p5342_p6 }
  0x37   : > { %p4445_p11 = scmp.lt.u32.totalorder %s4438_s18, %s6262_s20 }
  0x38   : > { %s6263_s14 = scalar_select %p5358_p8, 1, 0 }
  0x39   : > { %p4441_p9 = pnand %p5358_p8, %p4439_p7 }
  0x3b   : > { %p4442_p10 = pneg %p4441_p9 }
  0x3d   : > { %p4447_p12 = pnand %p4445_p11, %p4442_p10 }
  0x3f   : > { %4450 = shalt.err (!%p4447_p12)
}
  0x40   : > { %s4451_s16 = scalar_lea.vmem %s5335_s30, 2048  ;;  %p4459_p4 = scmp.lt.s32.totalorder %s5335_s30, %s5335_s30 }
  0x41   : > { %p4452_p13 = scmp.ne.s32.totalorder %s5335_s30, %s4451_s16  ;;  %p4460_p5 = scmp.lt.s32.totalorder %s4451_s16, %s4451_s16 }
  0x43   : > { %p4454_p0 = pnand %p4452_p13, %p5358_p8  ;;  %p4461_p7 = por %p4460_p5, %p4459_p4 }
  0x45   : > { %p4455_p2 = pneg %p4454_p0 }
  0x47   : > { %p4462_p9 = pnand %p4461_p7, %p4455_p2 }
  0x49   : > { %4465 = shalt.err (!%p4462_p9)
}
  0x4a   : > { %s6208_s21 = smov 128   ;;  %s6209_s18 = smov 8  }
  0x4b   : > { %4233 = dma.hbm_to_vmem [thread:$0]  (!%p5342_p6), %s6262_s20, 2048, %s5335_s30, [#allocation9], %s6208_s21, %s6208_s21, %s6209_s18  }
  0x4c   : > { %s6264_s1 = sld [smem:[#allocation60_spill]] }
  0x52   : > { %s4466_s16 = scalar_lea.hbm %s6264_s1, 2048 }
  0x53   : > { %p4467_p5 = scmp.ne.s32.totalorder %s6264_s1, %s4466_s16  ;;  %p4473_p12 = scmp.lt.u32.totalorder %s4466_s16, %s6264_s1 }
  0x55   : > { %p4469_p10 = pnand %p4467_p5, %p5358_p8 }
  0x57   : > { %p4470_p11 = pneg %p4469_p10 }
  0x59   : > { %p4475_p13 = pnand %p4473_p12, %p4470_p11 }
  0x5b   : > { %4478 = shalt.err (!%p4475_p13)
}
  0x5c   : > { %s4479_s30 = scalar_lea.vmem %s5346_s23, 2048  ;;  %p4487_p7 = scmp.lt.s32.totalorder %s5346_s23, %s5346_s23 }
  0x5d   : > { %p4480_p0 = scmp.ne.s32.totalorder %s5346_s23, %s4479_s30  ;;  %p4488_p9 = scmp.lt.s32.totalorder %s4479_s30, %s4479_s30 }
  0x5f   : > { %p4482_p2 = pnand %p4480_p0, %p5358_p8  ;;  %p4489_p5 = por %p4488_p9, %p4487_p7 }
  0x61   : > { %p4483_p4 = pneg %p4482_p2 }
  0x63   : > { %p4490_p10 = pnand %p4489_p5, %p4483_p4 }
  0x65   : > { %4493 = shalt.err (!%p4490_p10)
}
  0x66   : > { %4239 = dma.hbm_to_vmem [thread:$0]  (!%p5342_p6), %s6264_s1, 2048, %s5346_s23, [#allocation12], %s6208_s21, %s6208_s21, %s6209_s18  }
  0x67   : > { %s6265_s7 = sld [smem:[#allocation62_spill]] }
  0x6d   : > { %s4494_s27 = scalar_lea.hbm %s6265_s7, 2048 }
  0x6e   : > { %p4495_p11 = scmp.ne.s32.totalorder %s6265_s7, %s4494_s27  ;;  %p4501_p0 = scmp.lt.u32.totalorder %s4494_s27, %s6265_s7 }
  0x70   : > { %p4497_p12 = pnand %p4495_p11, %p5358_p8 }
  0x72   : > { %p4498_p13 = pneg %p4497_p12 }
  0x74   : > { %p4503_p2 = pnand %p4501_p0, %p4498_p13 }
  0x76   : > { %4506 = shalt.err (!%p4503_p2)
}
  0x77   : > { %s4507_s30 = scalar_lea.vmem %s619_s24, 2048  ;;  %p4515_p5 = scmp.lt.s32.totalorder %s619_s24, %s619_s24 }
  0x78   : > { %p4508_p4 = scmp.ne.s32.totalorder %s619_s24, %s4507_s30  ;;  %p4516_p10 = scmp.lt.s32.totalorder %s4507_s30, %s4507_s30 }
  0x7a   : > { %p4510_p7 = pnand %p4508_p4, %p5358_p8  ;;  %p4517_p1 = por %p4516_p10, %p4515_p5 }
  0x7c   : > { %p4511_p9 = pneg %p4510_p7 }
  0x7e   : > { %p4518_p3 = pnand %p4517_p1, %p4511_p9 }
  0x80   : > { %4521 = shalt.err (!%p4518_p3)
}
  0x81   : > { %4245 = dma.hbm_to_vmem [thread:$0]  (!%p5342_p6), %s6265_s7, 2048, %s619_s24, [#allocation15], %s6208_s21, %s6208_s21, %s6209_s18  }
  0x82   : > { %s5161_s8 = smov [#allocation17]   ;;  %s5162_s12 = smov [#allocation20]  }
  0x83   : > { %s644_s10 = sshll.u32 %s5161_s8, 4  ;;  %s668_s27 = sshll.u32 %s5162_s12, 4  ;;  %s645_s10 = int_to_ptr.vmem [resolvable:$true] %s644_s10  ;;  %s669_s27 = int_to_ptr.vmem [resolvable:$true] %s668_s27 }
  0x84   : > { %s6266_s9 = sld [smem:[#allocation64_spill]] }
  0x8a   : > { %s4522_s22 = scalar_lea.hbm %s6266_s9, 512 }
  0x8b   : > { %p4523_p1 = scmp.ne.s32.totalorder %s6266_s9, %s4522_s22  ;;  %p4529_p12 = scmp.lt.u32.totalorder %s4522_s22, %s6266_s9 }
  0x8d   : > { %p4525_p3 = pnand %p4523_p1, %p5358_p8 }
  0x8f   : > { %p4526_p11 = pneg %p4525_p3 }
  0x91   : > { %p4531_p13 = pnand %p4529_p12, %p4526_p11 }
  0x93   : > { %4534 = shalt.err (!%p4531_p13)
}
  0x94   : > { %s4535_s24 = scalar_lea.vmem %s645_s10, 512  ;;  %p4543_p7 = scmp.lt.s32.totalorder %s645_s10, %s645_s10 }
  0x95   : > { %p4536_p0 = scmp.ne.s32.totalorder %s645_s10, %s4535_s24  ;;  %p4544_p9 = scmp.lt.s32.totalorder %s4535_s24, %s4535_s24 }
  0x97   : > { %p4538_p2 = pnand %p4536_p0, %p5358_p8  ;;  %p4545_p5 = por %p4544_p9, %p4543_p7 }
  0x99   : > { %p4539_p4 = pneg %p4538_p2 }
  0x9b   : > { %p4546_p10 = pnand %p4545_p5, %p4539_p4 }
  0x9d   : > { %4549 = shalt.err (!%p4546_p10)
}
  0x9e   : > { %4251 = dma.hbm_to_vmem [thread:$0]  (!%p5342_p6), %s6266_s9, 512, %s645_s10, [#allocation18], %s6208_s21, %s6208_s21, %s6209_s18  }
  0x9f   : > { %s6267_s11 = sld [smem:[#allocation66_spill]] }
  0xa5   : > { %s4550_s0 = scalar_lea.hbm %s6267_s11, 512 }
  0xa6   : > { %p4551_p1 = scmp.ne.s32.totalorder %s6267_s11, %s4550_s0  ;;  %p4557_p12 = scmp.lt.u32.totalorder %s4550_s0, %s6267_s11 }
  0xa8   : > { %p4553_p3 = pnand %p4551_p1, %p5358_p8 }
  0xaa   : > { %p4554_p11 = pneg %p4553_p3 }
  0xac   : > { %p4559_p13 = pnand %p4557_p12, %p4554_p11 }
  0xae   : > { %4562 = shalt.err (!%p4559_p13)
}
  0xaf   : > { %s4563_s23 = scalar_lea.vmem %s669_s27, 512  ;;  %p4571_p7 = scmp.lt.s32.totalorder %s669_s27, %s669_s27 }
  0xb0   : > { %p4564_p0 = scmp.ne.s32.totalorder %s669_s27, %s4563_s23  ;;  %p4572_p9 = scmp.lt.s32.totalorder %s4563_s23, %s4563_s23 }
  0xb2   : > { %p4566_p2 = pnand %p4564_p0, %p5358_p8  ;;  %p4573_p5 = por %p4572_p9, %p4571_p7 }
  0xb4   : > { %p4567_p4 = pneg %p4566_p2 }
  0xb6   : > { %p4574_p10 = pnand %p4573_p5, %p4567_p4 }
  0xb8   : > { %4577 = shalt.err (!%p4574_p10)
}
  0xb9   : > { %4257 = dma.hbm_to_vmem [thread:$0]  (!%p5342_p6), %s6267_s11, 512, %s669_s27, [#allocation21], %s6208_s21, %s6208_s21, %s6209_s18  }
  0xba   : > { %s5163_s1 = smov [#allocation23]   ;;  %s5164_s8 = smov [#allocation26]  }
  0xbb   : > { %s693_s6 = sshll.u32 %s5163_s1, 4  ;;  %s714_s12 = sshll.u32 %s5164_s8, 4  ;;  %s694_s6 = int_to_ptr.vmem [resolvable:$true] %s693_s6  ;;  %s715_s12 = int_to_ptr.vmem [resolvable:$true] %s714_s12 }
  0xbc   : > { %s6268_s13 = sld [smem:[#allocation68_spill]] }
  0xc2   : > { %s4578_s22 = scalar_lea.hbm %s6268_s13, 16 }
  0xc3   : > { %p4579_p1 = scmp.ne.s32.totalorder %s6268_s13, %s4578_s22  ;;  %p4585_p12 = scmp.lt.u32.totalorder %s4578_s22, %s6268_s13 }
  0xc5   : > { %p4581_p3 = pnand %p4579_p1, %p5358_p8 }
  0xc7   : > { %p4582_p11 = pneg %p4581_p3 }
  0xc9   : > { %p4587_p13 = pnand %p4585_p12, %p4582_p11 }
  0xcb   : > { %4590 = shalt.err (!%p4587_p13)
}
  0xcc   : > { %s4591_s27 = scalar_lea.vmem %s694_s6, 16  ;;  %s4598_s24 = scalar_lea.vmem %s694_s6, 32 }
  0xcd   : > { %p4592_p0 = scmp.ne.s32.totalorder %s694_s6, %s4591_s27  ;;  %p4599_p7 = scmp.lt.s32.totalorder %s694_s6, %s694_s6 }
  0xce   : > { %p4600_p9 = scmp.lt.s32.totalorder %s4598_s24, %s4591_s27 }
  0xcf   : > { %p4594_p2 = pnand %p4592_p0, %p5358_p8 }
  0xd0   : > { %p4601_p5 = por %p4600_p9, %p4599_p7 }
  0xd1   : > { %p4595_p4 = pneg %p4594_p2 }
  0xd3   : > { %p4602_p10 = pnand %p4601_p5, %p4595_p4 }
  0xd5   : > { %4605 = shalt.err (!%p4602_p10)
}
  0xd6   : > { %4263 = dma.hbm_to_vmem [thread:$0]  (!%p5342_p6), %s6268_s13, 16, %s694_s6, [#allocation24]  }
  0xd7   : > { %s6269_s15 = sld [smem:[#allocation70_spill]] }
  0xdd   : > { %s4606_s22 = scalar_lea.hbm %s6269_s15, 512 }
  0xde   : > { %p4607_p1 = scmp.ne.s32.totalorder %s6269_s15, %s4606_s22  ;;  %p4613_p12 = scmp.lt.u32.totalorder %s4606_s22, %s6269_s15 }
  0xe0   : > { %p4609_p3 = pnand %p4607_p1, %p5358_p8 }
  0xe2   : > { %p4610_p11 = pneg %p4609_p3 }
  0xe4   : > { %p4615_p13 = pnand %p4613_p12, %p4610_p11 }
  0xe6   : > { %4618 = shalt.err (!%p4615_p13)
}
  0xe7   : > { %s4619_s27 = scalar_lea.vmem %s715_s12, 512  ;;  %p4627_p7 = scmp.lt.s32.totalorder %s715_s12, %s715_s12 }
  0xe8   : > { %p4620_p0 = scmp.ne.s32.totalorder %s715_s12, %s4619_s27  ;;  %p4628_p9 = scmp.lt.s32.totalorder %s4619_s27, %s4619_s27 }
  0xea   : > { %p4622_p2 = pnand %p4620_p0, %p5358_p8  ;;  %p4629_p5 = por %p4628_p9, %p4627_p7 }
  0xec   : > { %p4623_p4 = pneg %p4622_p2 }
  0xee   : > { %p4630_p10 = pnand %p4629_p5, %p4623_p4 }
  0xf0   : > { %4633 = shalt.err (!%p4630_p10)
}
  0xf1   : > { %4269 = dma.hbm_to_vmem [thread:$0]  (!%p5342_p6), %s6269_s15, 512, %s715_s12, [#allocation27], %s6208_s21, %s6208_s21, %s6209_s18  }
  0xf2   : > { %s5165_s1 = smov [#allocation29]   ;;  %s5166_s0 = smov [#allocation32]  }
  0xf3   : > { %s738_s8 = sshll.u32 %s5165_s1, 4  ;;  %s763_s4 = sshll.u32 %s5166_s0, 4  ;;  %s739_s8 = int_to_ptr.vmem [resolvable:$true] %s738_s8  ;;  %s764_s4 = int_to_ptr.vmem [resolvable:$true] %s763_s4 }
  0xf4   : > { %s6270_s17 = sld [smem:[#allocation72_spill]] }
  0xfa   : > { %s4634_s30 = scalar_lea.hbm %s6270_s17, 1024 }
  0xfb   : > { %p4635_p1 = scmp.ne.s32.totalorder %s6270_s17, %s4634_s30  ;;  %p4641_p12 = scmp.lt.u32.totalorder %s4634_s30, %s6270_s17 }
  0xfd   : > { %p4637_p3 = pnand %p4635_p1, %p5358_p8 }
  0xff   : > { %p4638_p11 = pneg %p4637_p3 }
 0x101   : > { %p4643_p13 = pnand %p4641_p12, %p4638_p11 }
 0x103   : > { %4646 = shalt.err (!%p4643_p13)
}
 0x104   : > { %s4647_s12 = scalar_lea.vmem %s739_s8, 1024  ;;  %p4655_p7 = scmp.lt.s32.totalorder %s739_s8, %s739_s8 }
 0x105   : > { %p4648_p0 = scmp.ne.s32.totalorder %s739_s8, %s4647_s12  ;;  %p4656_p9 = scmp.lt.s32.totalorder %s4647_s12, %s4647_s12 }
 0x107   : > { %p4650_p2 = pnand %p4648_p0, %p5358_p8  ;;  %p4657_p5 = por %p4656_p9, %p4655_p7 }
 0x109   : > { %p4651_p4 = pneg %p4650_p2 }
 0x10b   : > { %p4658_p10 = pnand %p4657_p5, %p4651_p4 }
 0x10d   : > { %4661 = shalt.err (!%p4658_p10)
}
 0x10e   : > { %4275 = dma.hbm_to_vmem [thread:$0]  (!%p5342_p6), %s6270_s17, 1024, %s739_s8, [#allocation30], %s6208_s21, %s6208_s21, %s6209_s18  }
 0x10f   : > { %s6271_s19 = sld [smem:[#allocation74_spill]] }
 0x115   : > { %s4662_s16 = scalar_lea.hbm %s6271_s19, 16 }
 0x116   : > { %p4663_p1 = scmp.ne.s32.totalorder %s6271_s19, %s4662_s16  ;;  %p4669_p12 = scmp.lt.u32.totalorder %s4662_s16, %s6271_s19 }
 0x118   : > { %p4665_p3 = pnand %p4663_p1, %p5358_p8 }
 0x11a   : > { %p4666_p11 = pneg %p4665_p3 }
 0x11c   : > { %p4671_p13 = pnand %p4669_p12, %p4666_p11 }
 0x11e   : > { %4674 = shalt.err (!%p4671_p13)
}
 0x11f   : > { %s4675_s6 = scalar_lea.vmem %s764_s4, 16  ;;  %s4682_s8 = scalar_lea.vmem %s764_s4, 32 }
 0x120   : > { %p4676_p0 = scmp.ne.s32.totalorder %s764_s4, %s4675_s6  ;;  %p4683_p7 = scmp.lt.s32.totalorder %s764_s4, %s764_s4 }
 0x121   : > { %p4684_p9 = scmp.lt.s32.totalorder %s4682_s8, %s4675_s6 }
 0x122   : > { %p4678_p2 = pnand %p4676_p0, %p5358_p8 }
 0x123   : > { %p4685_p5 = por %p4684_p9, %p4683_p7 }
 0x124   : > { %p4679_p4 = pneg %p4678_p2 }
 0x126   : > { %p4686_p10 = pnand %p4685_p5, %p4679_p4 }
 0x128   : > { %4689 = shalt.err (!%p4686_p10)
}
 0x129   : > { %4281 = dma.hbm_to_vmem [thread:$0]  (!%p5342_p6), %s6271_s19, 16, %s764_s4, [#allocation33]  }
 0x12a   : > { %s3611_s1 = sadd.s32 4294967294, %s5154_s28   ;;  %s61_s0 = sadd.s32 1, %s5150_s3 }
 0x12b   : > { %s70_s22 = sadd.s32 1, %s5142_s26  ;;  %p63_p1 = scmp.ge.s32.totalorder %s61_s0, 2 }
 0x12c   : > { %p77_p3 = scmp.ne.s32.totalorder %s5142_s26, %s5138_s25  ;;  %p78_p11 = scmp.eq.s32.totalorder %s5154_s28, 0 }
 0x12d   : > { %p83_p12 = scmp.ne.s32.totalorder %s5138_s25, %s5134_s2  ;;  %s6340_s0 = smov (%p63_p1, %s61_s0), 0 }
 0x12e   : > { %6272 = sst [smem:[#allocation52_spill]] %s6340_s0  ;;  %p5560_p13 = por %p78_p11, %p77_p3 }
 0x12f   : > { %p6274_p0 = scmp.eq.s32.totalorder %s5326_s29, 0  ;;  %s65_s30 = ssub.s32 %s5150_s3, %s6340_s0 }
 0x130   : > { %p541_p4 = scmp.eq.s32.totalorder %s5326_s29, 1  ;;  %p68_p7 = scmp.eq.s32.totalorder %s65_s30, 0 }
 0x131   : > { %p5566_p2 = por %p6274_p0, %p83_p12  ;;  %p547_p9 = scmp.eq.s32.totalorder %s3611_s1, 1 }
 0x132   : > { %p5573_p5 = por %p541_p4, %p77_p3  ;;  %p4317_p10 = scmp.lt.s32.totalorder %s5154_s28, 2 }
 0x133   : > { %s6275_s4 = scalar_select %p5566_p2, 1, 0 }
 0x134   : > { %s6276_s23 = scalar_select %p5573_p5, 1, 0 }
 0x135   : > { %s5579_s10 = scalar_select %p68_p7, %s5142_s26, %s70_s22  }
 0x136   : > { %p5581_p1 = por %p547_p9, %p83_p12  ;;  %s5586_s6 = sand.u32 1, %s5142_s26  }
 0x137   : > { %6277 = sst [smem:[#allocation53_spill]] %s5579_s10  ;;  %s6210_s8 = sshll.u32 %s5586_s6, 3 }
 0x138   : > { %s6278_s27 = scalar_select %p5581_p1, 1, 0 }
 0x139   : > { %s6211_s12 = sshll.u32 %s5150_s3, 7  ;;  %p5592_p11 = pnand %p4317_p10, %p5560_p13 }
 0x13a   : > { %6279 = sst [smem:[#allocation54_spill]] %s6278_s27  ;;  %s804_s1 = sand.u32 1, %s5154_s28  }
 0x13b   : > { %s6280_s24 = scalar_select %p5592_p11, 1, 0 }
 0x13c   : > { %s6281_s21 = sld [smem:[#allocation56_spill]]  ;;  %s808_s7 = scalar_lea.vmem [#allocation5], %s6210_s8 }
 0x13d   : > { %s815_s9 = sshll.u32 %s808_s7, 4  ;;  %s3636_s16 = sshll.u32 %s5586_s6, 5  ;;  %s5607_s9 = int_to_ptr.vmem [resolvable:$true] %s815_s9 }
 0x13e   : > { %s5609_s11 = scalar_lea.sflag [#allocation6], %s804_s1  ;;  %p5615_p12 = pneg %p5592_p11 }
 0x140   : > { %s6282_s15 = scalar_select %p5615_p12, 1, 0 }
 0x142   : > { %s5602_s18 = scalar_lea.hbm %s6281_s21, %s6211_s12  ;;  %s4695_s7 = scalar_lea.hbm %s6281_s21, 256 }
 0x143   : > { %s4690_s13 = scalar_lea.hbm %s5602_s18, 128  ;;  %p4696_p4 = scmp.lt.u32.totalorder %s5602_s18, %s6281_s21 }
 0x144   : > { %p4691_p3 = scmp.ne.s32.totalorder %s5602_s18, %s4690_s13  ;;  %p4697_p7 = scmp.lt.u32.totalorder %s4695_s7, %s4690_s13 }
 0x145   : > { %p4699_p10 = scmp.lt.u32.totalorder %s4690_s13, %s5602_s18 }
 0x146   : > { %p4693_p13 = pnand %p5615_p12, %p4691_p3  ;;  %p4698_p9 = por %p4697_p7, %p4696_p4 }
 0x148   : > { %p4694_p0 = pneg %p4693_p13  ;;  %p4700_p1 = por %p4699_p10, %p4698_p9 }
 0x14a   : > { %p4701_p5 = pnand %p4700_p1, %p4694_p0 }
 0x14c   : > { %4704 = shalt.err (!%p4701_p5)
}
 0x14d   : > { %s4705_s1 = scalar_lea.vmem %s5607_s9, 128  ;;  %s5167_s22 = smov [#allocation5]  }
 0x14e   : > { %p4706_p3 = scmp.ne.s32.totalorder %s5607_s9, %s4705_s1  ;;  %s4710_s30 = sshll.u32 %s5167_s22, 4  ;;  %s4711_s30 = int_to_ptr.vmem [resolvable:$false] %s4710_s30 }
 0x14f   : > { %s4712_s8 = scalar_lea.vmem %s4711_s30, 256  ;;  %p4713_p6 = scmp.lt.s32.totalorder %s5607_s9, %s4711_s30 }
 0x150   : > { %p4708_p13 = pnand %p4706_p3, %p5615_p12  ;;  %p4714_p8 = scmp.lt.s32.totalorder %s4712_s8, %s4705_s1 }
 0x152   : > { %p4709_p2 = pneg %p4708_p13  ;;  %p4715_p4 = por %p4714_p8, %p4713_p6 }
 0x154   : > { %p4716_p7 = pnand %p4715_p4, %p4709_p2 }
 0x156   : > { %4719 = shalt.err (!%p4716_p7)
}
 0x157   : > { %4291 = dma.hbm_to_vmem [thread:$0]  (!%p5592_p11), %s5602_s18, 128, %s5607_s9, %s5609_s11  }
 0x158   : > { %s826_s13 = scalar_lea.vmem [#allocation7], %s3636_s16  ;;  %s5168_s7 = smov [#allocation10]  }
 0x159   : > { %s834_s12 = sshll.u32 %s826_s13, 4  ;;  %s579_s22 = sshll.u32 %s5168_s7, 4  ;;  %s5641_s12 = int_to_ptr.vmem [resolvable:$true] %s834_s12  ;;  %s580_s22 = int_to_ptr.vmem [resolvable:$true] %s579_s22 }
 0x15a   : > { %s6283_s8 = sld [smem:[#allocation59_spill]]  ;;  %p6284_p8 = scmp.ne.s32.totalorder %s6263_s14, 0 }
 0x160   : > { %s4720_s17 = scalar_lea.hbm %s6283_s8, 64 }
 0x161   : > { %p4721_p6 = scmp.ne.s32.totalorder %s6283_s8, %s4720_s17  ;;  %p4727_p1 = scmp.lt.u32.totalorder %s4720_s17, %s6283_s8 }
 0x163   : > { %p4723_p2 = pnand %p4721_p6, %p6284_p8 }
 0x165   : > { %p4724_p5 = pneg %p4723_p2 }
 0x167   : > { %p4729_p0 = pnand %p4727_p1, %p4724_p5 }
 0x169   : > { %4732 = shalt.err (!%p4729_p0)
}
 0x16a   : > { %s4733_s16 = scalar_lea.vmem %s580_s22, 64  ;;  %p4741_p13 = scmp.lt.s32.totalorder %s580_s22, %s580_s22 }
 0x16b   : > { %p4734_p9 = scmp.ne.s32.totalorder %s580_s22, %s4733_s16  ;;  %p4742_p4 = scmp.lt.s32.totalorder %s4733_s16, %s4733_s16 }
 0x16d   : > { %p4736_p10 = pnand %p4734_p9, %p6284_p8  ;;  %p4743_p7 = por %p4742_p4, %p4741_p13 }
 0x16f   : > { %p4737_p3 = pneg %p4736_p10 }
 0x171   : > { %p4744_p11 = pnand %p4743_p7, %p4737_p3 }
 0x173   : > { %4747 = shalt.err (!%p4744_p11)
}
 0x174   : > { %s5169_s19 = smov 16   ;;  %s5170_s20 = smov 1  }
 0x175   : > { %p6285_p6 = scmp.ne.s32.totalorder %s6260_s5, 0  ;;  %s5171_s7 = smov [#allocation13]  }
 0x176   : > { %s605_s1 = sshll.u32 %s5171_s7, 4  ;;  %s5172_s30 = smov [#allocation16]   ;;  %s606_s1 = int_to_ptr.vmem [resolvable:$true] %s605_s1 }
 0x177   : > { %4236 = dma.hbm_to_vmem [thread:$0]  (!%p6285_p6), %s6283_s8, 64, %s580_s22, [#allocation9], %s5169_s19, %s5169_s19, %s5170_s20  }
 0x178   : > { %s631_s9 = sshll.u32 %s5172_s30, 4  ;;  %s6286_s21 = sld [smem:[#allocation61_spill]]  ;;  %s632_s9 = int_to_ptr.vmem [resolvable:$true] %s631_s9 }
 0x17e   : > { %s4748_s0 = scalar_lea.hbm %s6286_s21, 64 }
 0x17f   : > { %p4749_p11 = scmp.ne.s32.totalorder %s6286_s21, %s4748_s0  ;;  %p4755_p1 = scmp.lt.u32.totalorder %s4748_s0, %s6286_s21 }
 0x181   : > { %p4751_p2 = pnand %p4749_p11, %p6284_p8 }
 0x183   : > { %p4752_p5 = pneg %p4751_p2 }
 0x185   : > { %p4757_p0 = pnand %p4755_p1, %p4752_p5 }
 0x187   : > { %4760 = shalt.err (!%p4757_p0)
}
 0x188   : > { %s4761_s22 = scalar_lea.vmem %s606_s1, 64  ;;  %p4769_p13 = scmp.lt.s32.totalorder %s606_s1, %s606_s1 }
 0x189   : > { %p4762_p9 = scmp.ne.s32.totalorder %s606_s1, %s4761_s22  ;;  %p4770_p4 = scmp.lt.s32.totalorder %s4761_s22, %s4761_s22 }
 0x18b   : > { %p4764_p10 = pnand %p4762_p9, %p6284_p8  ;;  %p4771_p7 = por %p4770_p4, %p4769_p13 }
 0x18d   : > { %p4765_p3 = pneg %p4764_p10 }
 0x18f   : > { %p4772_p12 = pnand %p4771_p7, %p4765_p3 }
 0x191   : > { %4775 = shalt.err (!%p4772_p12)
}
 0x192   : > { %4242 = dma.hbm_to_vmem [thread:$0]  (!%p6285_p6), %s6286_s21, 64, %s606_s1, [#allocation12], %s5169_s19, %s5169_s19, %s5170_s20  }
 0x193   : > { %s6287_s27 = sld [smem:[#allocation63_spill]] }
 0x199   : > { %s6288_s17 = smov %s6287_s27  ;;  %s4776_s13 = scalar_lea.hbm %s6287_s27, 64 }
 0x19a   : > { %p4777_p11 = scmp.ne.s32.totalorder %s6288_s17, %s4776_s13  ;;  %p4783_p5 = scmp.lt.u32.totalorder %s4776_s13, %s6288_s17 }
 0x19c   : > { %p4779_p12 = pnand %p4777_p11, %p6284_p8 }
 0x19e   : > { %p4780_p2 = pneg %p4779_p12 }
 0x1a0   : > { %p4785_p1 = pnand %p4783_p5, %p4780_p2 }
 0x1a2   : > { %4788 = shalt.err (!%p4785_p1)
}
 0x1a3   : > { %s4789_s22 = scalar_lea.vmem %s632_s9, 64  ;;  %p4797_p3 = scmp.lt.s32.totalorder %s632_s9, %s632_s9 }
 0x1a4   : > { %p4790_p0 = scmp.ne.s32.totalorder %s632_s9, %s4789_s22  ;;  %p4798_p13 = scmp.lt.s32.totalorder %s4789_s22, %s4789_s22 }
 0x1a6   : > { %p4792_p9 = pnand %p4790_p0, %p6284_p8  ;;  %p4799_p4 = por %p4798_p13, %p4797_p3 }
 0x1a8   : > { %p4793_p10 = pneg %p4792_p9 }
 0x1aa   : > { %p4800_p7 = pnand %p4799_p4, %p4793_p10 }
 0x1ac   : > { %4803 = shalt.err (!%p4800_p7)
}
 0x1ad   : > { %4248 = dma.hbm_to_vmem [thread:$0]  (!%p6285_p6), %s6288_s17, 64, %s632_s9, [#allocation15], %s5169_s19, %s5169_s19, %s5170_s20  }
 0x1ae   : > { %s5173_s28 = smov [#allocation19]   ;;  %s5174_s10 = smov [#allocation22]  }
 0x1af   : > { %s658_s0 = sshll.u32 %s5173_s28, 4  ;;  %s682_s27 = sshll.u32 %s5174_s10, 4  ;;  %s659_s0 = int_to_ptr.vmem [resolvable:$true] %s658_s0  ;;  %s683_s27 = int_to_ptr.vmem [resolvable:$true] %s682_s27 }
 0x1b0   : > { %s6289_s30 = sld [smem:[#allocation65_spill]] }
 0x1b6   : > { %s4804_s18 = scalar_lea.hbm %s6289_s30, 16 }
 0x1b7   : > { %p4805_p11 = scmp.ne.s32.totalorder %s6289_s30, %s4804_s18  ;;  %p4811_p5 = scmp.lt.u32.totalorder %s4804_s18, %s6289_s30 }
 0x1b9   : > { %p4807_p12 = pnand %p4805_p11, %p6284_p8 }
 0x1bb   : > { %p4808_p2 = pneg %p4807_p12 }
 0x1bd   : > { %p4813_p1 = pnand %p4811_p5, %p4808_p2 }
 0x1bf   : > { %4816 = shalt.err (!%p4813_p1)
}
 0x1c0   : > { %s4817_s19 = scalar_lea.vmem %s659_s0, 16  ;;  %s4824_s20 = scalar_lea.vmem %s659_s0, 32 }
 0x1c1   : > { %p4818_p0 = scmp.ne.s32.totalorder %s659_s0, %s4817_s19  ;;  %p4825_p3 = scmp.lt.s32.totalorder %s659_s0, %s659_s0 }
 0x1c2   : > { %p4826_p13 = scmp.lt.s32.totalorder %s4824_s20, %s4817_s19 }
 0x1c3   : > { %p4820_p9 = pnand %p4818_p0, %p6284_p8 }
 0x1c4   : > { %p4827_p4 = por %p4826_p13, %p4825_p3 }
 0x1c5   : > { %p4821_p10 = pneg %p4820_p9 }
 0x1c7   : > { %p4828_p7 = pnand %p4827_p4, %p4821_p10 }
 0x1c9   : > { %4831 = shalt.err (!%p4828_p7)
}
 0x1ca   : > { %4254 = dma.hbm_to_vmem [thread:$0]  (!%p6285_p6), %s6289_s30, 16, %s659_s0, [#allocation18]  }
 0x1cb   : > { %s6290_s10 = sld [smem:[#allocation67_spill]] }
 0x1d1   : > { %s4832_s13 = scalar_lea.hbm %s6290_s10, 16 }
 0x1d2   : > { %p4833_p11 = scmp.ne.s32.totalorder %s6290_s10, %s4832_s13  ;;  %p4839_p5 = scmp.lt.u32.totalorder %s4832_s13, %s6290_s10 }
 0x1d4   : > { %p4835_p12 = pnand %p4833_p11, %p6284_p8 }
 0x1d6   : > { %p4836_p2 = pneg %p4835_p12 }
 0x1d8   : > { %p4841_p1 = pnand %p4839_p5, %p4836_p2 }
 0x1da   : > { %4844 = shalt.err (!%p4841_p1)
}
 0x1db   : > { %s4845_s1 = scalar_lea.vmem %s683_s27, 16  ;;  %s4852_s0 = scalar_lea.vmem %s683_s27, 32 }
 0x1dc   : > { %p4846_p0 = scmp.ne.s32.totalorder %s683_s27, %s4845_s1  ;;  %p4853_p3 = scmp.lt.s32.totalorder %s683_s27, %s683_s27 }
 0x1dd   : > { %p4854_p13 = scmp.lt.s32.totalorder %s4852_s0, %s4845_s1 }
 0x1de   : > { %p4848_p9 = pnand %p4846_p0, %p6284_p8 }
 0x1df   : > { %p4855_p4 = por %p4854_p13, %p4853_p3 }
 0x1e0   : > { %p4849_p10 = pneg %p4848_p9 }
 0x1e2   : > { %p4856_p7 = pnand %p4855_p4, %p4849_p10 }
 0x1e4   : > { %4859 = shalt.err (!%p4856_p7)
}
 0x1e5   : > { %4260 = dma.hbm_to_vmem [thread:$0]  (!%p6285_p6), %s6290_s10, 16, %s683_s27, [#allocation21]  }
 0x1e6   : > { %s5175_s9 = smov [#allocation25]   ;;  %s5176_s8 = smov [#allocation28]  }
 0x1e7   : > { %s704_s26 = sshll.u32 %s5175_s9, 4  ;;  %s728_s28 = sshll.u32 %s5176_s8, 4  ;;  %s705_s26 = int_to_ptr.vmem [resolvable:$true] %s704_s26  ;;  %s729_s28 = int_to_ptr.vmem [resolvable:$true] %s728_s28 }
 0x1e8   : > { %s6291_s18 = sld [smem:[#allocation69_spill]] }
 0x1ee   : > { %s4860_s16 = scalar_lea.hbm %s6291_s18, 16 }
 0x1ef   : > { %p4861_p11 = scmp.ne.s32.totalorder %s6291_s18, %s4860_s16  ;;  %p4867_p5 = scmp.lt.u32.totalorder %s4860_s16, %s6291_s18 }
 0x1f1   : > { %p4863_p12 = pnand %p4861_p11, %p6284_p8 }
 0x1f3   : > { %p4864_p2 = pneg %p4863_p12 }
 0x1f5   : > { %p4869_p1 = pnand %p4867_p5, %p4864_p2 }
 0x1f7   : > { %4872 = shalt.err (!%p4869_p1)
}
 0x1f8   : > { %s4873_s27 = scalar_lea.vmem %s705_s26, 16  ;;  %s4880_s20 = scalar_lea.vmem %s705_s26, 32 }
 0x1f9   : > { %p4874_p0 = scmp.ne.s32.totalorder %s705_s26, %s4873_s27  ;;  %p4881_p3 = scmp.lt.s32.totalorder %s705_s26, %s705_s26 }
 0x1fa   : > { %p4882_p13 = scmp.lt.s32.totalorder %s4880_s20, %s4873_s27 }
 0x1fb   : > { %p4876_p9 = pnand %p4874_p0, %p6284_p8 }
 0x1fc   : > { %p4883_p4 = por %p4882_p13, %p4881_p3 }
 0x1fd   : > { %p4877_p10 = pneg %p4876_p9 }
 0x1ff   : > { %p4884_p7 = pnand %p4883_p4, %p4877_p10 }
 0x201   : > { %4887 = shalt.err (!%p4884_p7)
}
 0x202   : > { %4266 = dma.hbm_to_vmem [thread:$0]  (!%p6285_p6), %s6291_s18, 16, %s705_s26, [#allocation24]  }
 0x203   : > { %s6292_s16 = sld [smem:[#allocation71_spill]] }
 0x209   : > { %s4888_s22 = scalar_lea.hbm %s6292_s16, 16 }
 0x20a   : > { %p4889_p11 = scmp.ne.s32.totalorder %s6292_s16, %s4888_s22  ;;  %p4895_p5 = scmp.lt.u32.totalorder %s4888_s22, %s6292_s16 }
 0x20c   : > { %p4891_p12 = pnand %p4889_p11, %p6284_p8 }
 0x20e   : > { %p4892_p2 = pneg %p4891_p12 }
 0x210   : > { %p4897_p1 = pnand %p4895_p5, %p4892_p2 }
 0x212   : > { %4900 = shalt.err (!%p4897_p1)
}
 0x213   : > { %s4901_s20 = scalar_lea.vmem %s729_s28, 16  ;;  %s4908_s26 = scalar_lea.vmem %s729_s28, 32 }
 0x214   : > { %p4902_p0 = scmp.ne.s32.totalorder %s729_s28, %s4901_s20  ;;  %p4909_p3 = scmp.lt.s32.totalorder %s729_s28, %s729_s28 }
 0x215   : > { %p4910_p13 = scmp.lt.s32.totalorder %s4908_s26, %s4901_s20 }
 0x216   : > { %p4904_p9 = pnand %p4902_p0, %p6284_p8 }
 0x217   : > { %p4911_p4 = por %p4910_p13, %p4909_p3 }
 0x218   : > { %p4905_p10 = pneg %p4904_p9 }
 0x21a   : > { %p4912_p7 = pnand %p4911_p4, %p4905_p10 }
 0x21c   : > { %4915 = shalt.err (!%p4912_p7)
}
 0x21d   : > { %4272 = dma.hbm_to_vmem [thread:$0]  (!%p6285_p6), %s6292_s16, 16, %s729_s28, [#allocation27]  }
 0x21e   : > { %s5177_s13 = smov [#allocation31]   ;;  %s5178_s22 = smov [#allocation34]  }
 0x21f   : > { %s752_s7 = sshll.u32 %s5177_s13, 4  ;;  %s774_s1 = sshll.u32 %s5178_s22, 4  ;;  %s753_s7 = int_to_ptr.vmem [resolvable:$true] %s752_s7  ;;  %s775_s1 = int_to_ptr.vmem [resolvable:$true] %s774_s1 }
 0x220   : > { %s6293_s27 = sld [smem:[#allocation73_spill]] }
 0x226   : > { %s6294_s10 = smov %s6293_s27  ;;  %s4916_s17 = scalar_lea.hbm %s6293_s27, 16 }
 0x227   : > { %p4917_p11 = scmp.ne.s32.totalorder %s6294_s10, %s4916_s17  ;;  %p4923_p5 = scmp.lt.u32.totalorder %s4916_s17, %s6294_s10 }
 0x229   : > { %p4919_p12 = pnand %p4917_p11, %p6284_p8 }
 0x22b   : > { %p4920_p2 = pneg %p4919_p12 }
 0x22d   : > { %p4925_p1 = pnand %p4923_p5, %p4920_p2 }
 0x22f   : > { %4928 = shalt.err (!%p4925_p1)
}
 0x230   : > { %s4929_s28 = scalar_lea.vmem %s753_s7, 16  ;;  %s4936_s8 = scalar_lea.vmem %s753_s7, 32 }
 0x231   : > { %p4930_p0 = scmp.ne.s32.totalorder %s753_s7, %s4929_s28  ;;  %p4937_p3 = scmp.lt.s32.totalorder %s753_s7, %s753_s7 }
 0x232   : > { %p4938_p13 = scmp.lt.s32.totalorder %s4936_s8, %s4929_s28 }
 0x233   : > { %p4932_p9 = pnand %p4930_p0, %p6284_p8 }
 0x234   : > { %p4939_p4 = por %p4938_p13, %p4937_p3 }
 0x235   : > { %p4933_p10 = pneg %p4932_p9 }
 0x237   : > { %p4940_p7 = pnand %p4939_p4, %p4933_p10 }
 0x239   : > { %4943 = shalt.err (!%p4940_p7)
}
 0x23a   : > { %4278 = dma.hbm_to_vmem [thread:$0]  (!%p6285_p6), %s6294_s10, 16, %s753_s7, [#allocation30]  }
 0x23b   : > { %s6295_s0 = sld [smem:[#allocation75_spill]] }
 0x241   : > { %s4944_s19 = scalar_lea.hbm %s6295_s0, 16 }
 0x242   : > { %p4945_p11 = scmp.ne.s32.totalorder %s6295_s0, %s4944_s19  ;;  %p4951_p5 = scmp.lt.u32.totalorder %s4944_s19, %s6295_s0 }
 0x244   : > { %p4947_p12 = pnand %p4945_p11, %p6284_p8 }
 0x246   : > { %p4948_p2 = pneg %p4947_p12 }
 0x248   : > { %p4953_p1 = pnand %p4951_p5, %p4948_p2 }
 0x24a   : > { %4956 = shalt.err (!%p4953_p1)
}
 0x24b   : > { %s4957_s28 = scalar_lea.vmem %s775_s1, 16  ;;  %s4964_s7 = scalar_lea.vmem %s775_s1, 32 }
 0x24c   : > { %p4958_p0 = scmp.ne.s32.totalorder %s775_s1, %s4957_s28  ;;  %p4965_p3 = scmp.lt.s32.totalorder %s775_s1, %s775_s1 }
 0x24d   : > { %p4966_p13 = scmp.lt.s32.totalorder %s4964_s7, %s4957_s28 }
 0x24e   : > { %p4960_p9 = pnand %p4958_p0, %p6284_p8 }
 0x24f   : > { %p4967_p4 = por %p4966_p13, %p4965_p3 }
 0x250   : > { %p4961_p10 = pneg %p4960_p9 }
 0x252   : > { %p4968_p7 = pnand %p4967_p4, %p4961_p10 }
 0x254   : > { %4971 = shalt.err (!%p4968_p7)
}
 0x255   : > { %4284 = dma.hbm_to_vmem [thread:$0]  (!%p6285_p6), %s6295_s0, 16, %s775_s1, [#allocation33]  }
 0x256   : > { %s6296_s14 = sshll.u32 %s5150_s3, 7  ;;  %s6297_s18 = sld [smem:[#allocation55_spill]] }
 0x257   : > { %s6298_s27 = sshll.u32 %s5586_s6, 3  ;;  %s3717_s26 = sshll.u32 %s5150_s3, 9 }
 0x258   : > { %s789_s5 = scalar_lea.vmem [#allocation2], %s6298_s27  ;;  %s6299_s7 = sld [smem:[#allocation57_spill]] }
 0x259   : > { %s797_s20 = sshll.u32 %s789_s5, 4  ;;  %s786_s8 = scalar_lea.sflag [#allocation3], %s5586_s6  ;;  %s5824_s20 = int_to_ptr.vmem [resolvable:$true] %s797_s20 }
 0x25a   : > { %p6300_p6 = scmp.ne.s32.totalorder %s6282_s15, 0 }
 0x25c   : > { %s5819_s19 = scalar_lea.hbm %s6297_s18, %s6296_s14  ;;  %s4977_s17 = scalar_lea.hbm %s6297_s18, 256 }
 0x25d   : > { %s4972_s13 = scalar_lea.hbm %s5819_s19, 128  ;;  %p4978_p2 = scmp.lt.u32.totalorder %s5819_s19, %s6297_s18 }
 0x25e   : > { %s5829_s1 = scalar_lea.hbm %s6299_s7, %s3717_s26  ;;  %p4973_p8 = scmp.ne.s32.totalorder %s5819_s19, %s4972_s13 }
 0x25f   : > { %p4979_p5 = scmp.lt.u32.totalorder %s4977_s17, %s4972_s13  ;;  %p4981_p0 = scmp.lt.u32.totalorder %s4972_s13, %s5819_s19 }
 0x260   : > { %p4975_p11 = pnand %p4973_p8, %p6300_p6 }
 0x261   : > { %p4980_p1 = por %p4979_p5, %p4978_p2 }
 0x262   : > { %p4976_p12 = pneg %p4975_p11 }
 0x263   : > { %p4982_p9 = por %p4981_p0, %p4980_p1 }
 0x265   : > { %p4983_p10 = pnand %p4982_p9, %p4976_p12 }
 0x267   : > { %4986 = shalt.err (!%p4983_p10)
}
 0x268   : > { %s4987_s6 = scalar_lea.vmem %s5824_s20, 128  ;;  %s5179_s26 = smov [#allocation2]  }
 0x269   : > { %p4988_p3 = scmp.ne.s32.totalorder %s5824_s20, %s4987_s6  ;;  %s4992_s9 = sshll.u32 %s5179_s26, 4  ;;  %s4993_s9 = int_to_ptr.vmem [resolvable:$false] %s4992_s9 }
 0x26a   : > { %s4994_s28 = scalar_lea.vmem %s4993_s9, 256  ;;  %p4995_p7 = scmp.lt.s32.totalorder %s5824_s20, %s4993_s9 }
 0x26b   : > { %p4990_p13 = pnand %p4988_p3, %p6300_p6  ;;  %p4996_p8 = scmp.lt.s32.totalorder %s4994_s28, %s4987_s6 }
 0x26d   : > { %p4991_p4 = pneg %p4990_p13  ;;  %p4997_p11 = por %p4996_p8, %p4995_p7 }
 0x26f   : > { %p4998_p2 = pnand %p4997_p11, %p4991_p4 }
 0x271   : > { %5001 = shalt.err (!%p4998_p2)
}
 0x272   : > { %p6301_p12 = scmp.ne.s32.totalorder %s6280_s24, 0  ;;  %s5002_s13 = scalar_lea.hbm %s5829_s1, 512 }
 0x273   : > { %p5003_p5 = scmp.ne.s32.totalorder %s5829_s1, %s5002_s13  ;;  %s5007_s17 = scalar_lea.hbm %s6299_s7, 1024 }
 0x274   : > { %4288 = dma.hbm_to_vmem [thread:$0]  (!%p6301_p12), %s5819_s19, 128, %s5824_s20, %s786_s8  }
 0x275   : > { %p5005_p1 = pnand %p5003_p5, %p6300_p6  ;;  %p5008_p9 = scmp.lt.u32.totalorder %s5829_s1, %s6299_s7 }
 0x276   : > { %p5009_p10 = scmp.lt.u32.totalorder %s5007_s17, %s5002_s13  ;;  %p5011_p13 = scmp.lt.u32.totalorder %s5002_s13, %s5829_s1 }
 0x277   : > { %p5006_p0 = pneg %p5005_p1 }
 0x278   : > { %p5010_p3 = por %p5009_p10, %p5008_p9 }
 0x27a   : > { %p5012_p4 = por %p5011_p13, %p5010_p3 }
 0x27c   : > { %p5013_p7 = pnand %p5012_p4, %p5006_p0 }
 0x27e   : > { %5016 = shalt.err (!%p5013_p7)
}
 0x27f   : > { %s5017_s19 = scalar_lea.vmem %s5641_s12, 512  ;;  %s5180_s20 = smov [#allocation7]  }
 0x280   : > { %p5018_p8 = scmp.ne.s32.totalorder %s5641_s12, %s5017_s19  ;;  %s5022_s8 = sshll.u32 %s5180_s20, 4  ;;  %s5023_s8 = int_to_ptr.vmem [resolvable:$false] %s5022_s8 }
 0x281   : > { %s5024_s6 = scalar_lea.vmem %s5023_s8, 1024  ;;  %p5025_p5 = scmp.lt.s32.totalorder %s5641_s12, %s5023_s8 }
 0x282   : > { %p5020_p11 = pnand %p5018_p8, %p6300_p6  ;;  %p5026_p1 = scmp.lt.s32.totalorder %s5024_s6, %s5017_s19 }
 0x284   : > { %p5021_p2 = pneg %p5020_p11  ;;  %p5027_p9 = por %p5026_p1, %p5025_p5 }
 0x286   : > { %p5028_p10 = pnand %p5027_p9, %p5021_p2 }
 0x288   : > { %5031 = shalt.err (!%p5028_p10)
}
 0x289   : > { %s6302_s26 = smov 8   ;;  %s6303_s9 = smov 128  }
 0x28a   : > { %4294 = dma.hbm_to_vmem [thread:$0]  (!%p6301_p12), %s5829_s1, 512, %s5641_s12, %s5609_s11, %s6303_s9, %s6303_s9, %s6302_s26  }
 0x28b   : > { %s6304_s15 = sld [smem:[#allocation51_spill]] }
 0x291   : > { %p6305_p6 = scmp.ne.s32.totalorder %s6304_s15, 0 }
 0x292   : > { %s5881_s28 = sand.u32 (!%p6305_p6), 1, %s5138_s25   ;;  %p6306_p0 = scmp.ne.s32.totalorder (!%p6305_p6), %s6275_s4, 0 }
 0x293   : > { %846 = sbr.rel (%p6305_p6) target bundleno = 3279 (0xccf), region = 104  ;;  %s5884_s13 = sshll.u32 (!%p6305_p6), %s5881_s28, 3 }
 0x294   : > { %s849_s24 = scalar_lea.sflag (!%p6305_p6), [#allocation3], %s5881_s28  ;;  %s852_s14 = scalar_lea.vmem (!%p6305_p6), [#allocation2], %s5884_s13 }
 0x29a   : > { %5085 = dma.done.wait (%p6306_p0), %s849_s24, 128  }
 0x29b   : > { %5087 = vsyncadd (%p6306_p0), %s849_s24, 4294967168  ;;  %s857_s11 = sand.u32 1, %s5326_s29   ;;  %s861_s1 = scalar_lea.vmem [#allocation5], %s5884_s13 }
 0x29c   : > { %s858_s12 = scalar_lea.sflag [#allocation6], %s857_s11 }
 0x29d   : > { %5089 = dma.done.wait (%p6306_p0), %s858_s12, 640  }
 0x29e   : > { %5091 = vsyncadd (%p6306_p0), %s858_s12, 4294966656  ;;  %s3642_s22 = sshll.u32 %s5881_s28, 5  ;;  %p6307_p12 = scmp.eq.s32.totalorder %s5326_s29, 0 }
 0x29f   : > { %s5899_s17 = scalar_lea.vmem [#allocation7], %s3642_s22 }
 0x2a0   : > { %5093 = dma.done.wait (%p6307_p12), [#allocation9], 2112   ;;  %p6308_p3 = pmov %p6307_p12 }
 0x2a2   : > { %5095 = vsyncadd (%p6308_p3), [#allocation9], 4294965184  ;;  %p6309_p13 = pmov %p6308_p3 }
 0x2a3   : > { %p6310_p4 = pmov %p6308_p3 }
 0x2a4   : > { %5097 = dma.done.wait (%p6309_p13), [#allocation12], 2112  }
 0x2a5   : > { %5099 = vsyncadd (%p6310_p4), [#allocation12], 4294965184  ;;  %p6311_p7 = pmov %p6308_p3 }
 0x2a6   : > { %p6312_p8 = pmov %p6308_p3 }
 0x2a7   : > { %5101 = dma.done.wait (%p6311_p7), [#allocation15], 2112  }
 0x2a8   : > { %5103 = vsyncadd (%p6312_p8), [#allocation15], 4294965184  ;;  %p6313_p11 = pmov %p6308_p3 }
 0x2a9   : > { %p6314_p2 = pmov %p6308_p3 }
 0x2aa   : > { %5105 = dma.done.wait (%p6313_p11), [#allocation18], 528  }
 0x2ab   : > { %5107 = vsyncadd (%p6314_p2), [#allocation18], 4294966768  ;;  %p6315_p5 = pmov %p6314_p2 }
 0x2ac   : > { %p6316_p1 = pmov %p6314_p2 }
 0x2ad   : > { %5109 = dma.done.wait (%p6315_p5), [#allocation21], 528  }
 0x2ae   : > { %5111 = vsyncadd (%p6316_p1), [#allocation21], 4294966768  ;;  %p6317_p9 = pmov %p6316_p1 }
 0x2af   : > { %p6318_p10 = pmov %p6316_p1 }
 0x2b0   : > { %5113 = dma.done.wait (%p6317_p9), [#allocation24], 32  }
 0x2b1   : > { %5115 = vsyncadd (%p6318_p10), [#allocation24], 4294967264  ;;  %p6319_p6 = pmov %p6316_p1 }
 0x2b2   : > { %p6320_p0 = pmov %p6316_p1 }
 0x2b3   : > { %5117 = dma.done.wait (%p6319_p6), [#allocation27], 528  }
 0x2b4   : > { %5119 = vsyncadd (%p6320_p0), [#allocation27], 4294966768  ;;  %p6321_p12 = pmov %p6320_p0 }
 0x2b5   : > { %p6322_p3 = pmov %p6320_p0 }
 0x2b6   : > { %5121 = dma.done.wait (%p6321_p12), [#allocation30], 1040  }
 0x2b7   : > { %5123 = vsyncadd (%p6322_p3), [#allocation30], 4294966256  ;;  %p6323_p13 = pmov %p6320_p0 }
 0x2b8   : > { %p6324_p4 = pmov %p6320_p0 }
 0x2b9   : > { %5125 = dma.done.wait (%p6323_p13), [#allocation33], 32  }
 0x2ba   : > { %5127 = vsyncadd (%p6324_p4), [#allocation33], 4294967264  ;;  %v5181_v0 = vmov 0.0|0.0   ;;  %vm5182_vm0 = vmmov 0   ;;  %v5183_v1 = vmov 0.0   ;;  %v1013_v2 = vld [vmem:[#allocation8] sm:$0xff] }
 0x2bb   : > { %4054 = vmatprep.subr.bf16.mxu1 %v5181_v0  ;;  %4066 = vmatprep.subr.bf16.mxu0 %v5181_v0  ;;  %v1014_v3 = vld [vmem:[#allocation8 + $0x8] sm:$0xff]  ;;  %v1021_v4 = vld [vmem:[#allocation8 + $0x40] sm:$0xff]  ;;  %v1015_v7 = vld [vmem:[#allocation8 + $0x10] sm:$0xff]  ;;  %vm1057_vm1 = vcmask 261120   ;;  %vm1996_vm2 = vcmask 64512   ;;  %vm3194_vm4 = vcmask 523264  }
 0x2bc   : > { %3829 = vmatprep.mubr.msk.f32.mxu1 %vm5182_vm0, %v5183_v1  ;;  %3851 = vmatprep.mubr.msk.f32.mxu0 %vm5182_vm0, %v5183_v1  ;;  %v4055_v5 = vpack.c.bf16 %v1014_v3, %v1013_v2  ;;  %v1022_v6 = vld [vmem:[#allocation8 + $0x48] sm:$0xff]  ;;  %v1016_v8 = vld [vmem:[#allocation8 + $0x18] sm:$0xff]  ;;  %v1023_v10 = vld [vmem:[#allocation8 + $0x50] sm:$0xff]  ;;  %s6325_s29 = sld [smem:[#allocation49_spill]]  ;;  %s1010_s27 = scalar_lea.vmem [#allocation35], %s5884_s13 }
 0x2bd   : > { %v4067_v9 = vpack.c.bf16 %v1022_v6, %v1021_v4  ;;  %v1024_v11 = vld [vmem:[#allocation8 + $0x58] sm:$0xff]  ;;  %v4058_v12 = vpack.c.bf16 %v1016_v8, %v1015_v7  ;;  %v1017_v14 = vld [vmem:[#allocation8 + $0x20] sm:$0xff]  ;;  %v1018_v15 = vld [vmem:[#allocation8 + $0x28] sm:$0xff]  ;;  %s3314_s5 = sshll.u32 %s1010_s27, 4  ;;  %s6326_s8 = sld [smem:[#allocation76_spill]]  ;;  %s6119_s5 = int_to_ptr.vmem [resolvable:$true] %s3314_s5 }
 0x2be   : > { %4056 = vmatpush3.bf16.msra.mxu1 %v4055_v5  ;;  %v4070_v13 = vpack.c.bf16 %v1024_v11, %v1023_v10  ;;  %v1341_v16 = vld [vmem:[#allocation11] sm:$0xff]  ;;  %v1342_v17 = vld [vmem:[#allocation11 + $0x8] sm:$0xff]  ;;  %v4061_v19 = vpack.c.bf16 %v1018_v15, %v1017_v14  ;;  %v1020_v22 = vld [vmem:[#allocation8 + $0x38] sm:$0xff]  ;;  %s3300_s26 = scalar_lea.sflag [#allocation4], %s5881_s28  ;;  %s5032_s9 = scalar_lea.vmem %s6119_s5, 128 }
 0x2bf   : > { %4068 = vmatpush3.bf16.msra.mxu0 %v4067_v9  ;;  %4057 = vmatprep.subr.bf16.mxu1 %v5181_v0  ;;  %v5947_v18 = vld [vmem:[%s852_s14] sm:$0xff]  ;;  %v4079_v20 = vpack.c.bf16 %v1342_v17, %v1341_v16  ;;  %v1019_v21 = vld [vmem:[#allocation8 + $0x30] sm:$0xff]  ;;  %v1028_v35 = vld [vmem:[#allocation8 + $0x78] sm:$0xff]  ;;  %p5033_p7 = scmp.ne.s32.totalorder %s6119_s5, %s5032_s9  ;;  %p6327_p8 = scmp.ne.s32.totalorder %s6276_s23, 0 }
 0x2c0   : > { %4069 = vmatprep.subr.bf16.mxu0 %v5181_v0  ;;  %v1343_v23 = vld [vmem:[#allocation11 + $0x10] sm:$0xff]  ;;  %v1344_v24 = vld [vmem:[#allocation11 + $0x18] sm:$0xff]  ;;  %v4064_v25 = vpack.c.bf16 %v1020_v22, %v1019_v21  ;;  %v1026_v28 = vld [vmem:[#allocation8 + $0x68] sm:$0xff]  ;;  %s5184_s15 = smov [#allocation35]  }
 0x2c1   : > { %v4082_v26 = vpack.c.bf16 %v1344_v24, %v1343_v23  ;;  %v1025_v27 = vld [vmem:[#allocation8 + $0x60] sm:$0xff]  ;;  %v1350_v30 = vld [vmem:[#allocation11 + $0x48] sm:$0xff]  ;;  %v1351_v36 = vld [vmem:[#allocation11 + $0x50] sm:$0xff]  ;;  %p5034_p11 = pnand %p5033_p7, %p6327_p8  ;;  %s5036_s13 = sshll.u32 %s5184_s15, 4  ;;  %s5037_s13 = int_to_ptr.vmem [resolvable:$false] %s5036_s13 }
 0x2c2   : > { %4059 = vmatpush3.bf16.msra.mxu1 %v4058_v12  ;;  %v1349_v29 = vld [vmem:[#allocation11 + $0x40] sm:$0xff]  ;;  %v4073_v31 = vpack.c.bf16 %v1026_v28, %v1025_v27  ;;  %v5964_v32 = vld [vmem:[%s861_s1] sm:$0xff]  ;;  %v3662_v23 = vld [vmem:[#allocation10] ss:$0 sm:$0xff]  ;;  %s3714_s4 = sshll.u32 %s6325_s29, 7  ;;  %s5038_s24 = scalar_lea.vmem %s5037_s13, 256 }
 0x2c3   : > { %4071 = vmatpush3.bf16.msra.mxu0 %v4070_v13  ;;  %4060 = vmatprep.subr.bf16.mxu1 %v5181_v0  ;;  %v4091_v33 = vpack.c.bf16 %v1350_v30, %v1349_v29  ;;  %v1027_v34 = vld [vmem:[#allocation8 + $0x70] sm:$0xff]  ;;  %v1352_v37 = vld [vmem:[#allocation11 + $0x58] sm:$0xff]  ;;  %v1345_v40 = vld [vmem:[#allocation11 + $0x20] sm:$0xff]  ;;  %s6117_s6 = scalar_lea.hbm %s6326_s8, %s3714_s4  ;;  %p5035_p2 = pneg %p5034_p11 }
 0x2c4   : > { %4078 = vmatprep.subr.bf16.mxu0 %v5181_v0  ;;  %v4076_v38 = vpack.c.bf16 %v1028_v35, %v1027_v34  ;;  %v4094_v39 = vpack.c.bf16 %v1352_v37, %v1351_v36  ;;  %v1346_v41 = vld [vmem:[#allocation11 + $0x28] sm:$0xff]  ;;  %v1347_v45 = vld [vmem:[#allocation11 + $0x30] sm:$0xff]  ;;  %v1348_v46 = vld [vmem:[#allocation11 + $0x38] sm:$0xff]  ;;  %p5039_p5 = scmp.lt.s32.totalorder %s6119_s5, %s5037_s13  ;;  %p5040_p1 = scmp.lt.s32.totalorder %s5038_s24, %s5032_s9 }
 0x2c5   : > { %3830 = vmatmul.mubr.msk.f32.vlgmr.msra.gmra.mrb[0].mxu1 %vm1057_vm1, %v5947_v18  ;;  %v1668_v42 = vld [vmem:[#allocation14] sm:$0xff]  ;;  %v1669_v43 = vld [vmem:[#allocation14 + $0x8] sm:$0xff]  ;;  %v4085_v44 = vpack.c.bf16 %v1346_v41, %v1345_v40  ;;  %v1670_v48 = vld [vmem:[#allocation14 + $0x10] sm:$0xff]  ;;  %v4088_v50 = vpack.c.bf16 %v1348_v46, %v1347_v45 }
 0x2c6   : > { %4062 = vmatpush3.bf16.msra.mxu1 %v4061_v19  ;;  %3852 = vmatmul.mubr.msk.f32.vlgmr.msra.gmra.mrb[0].mxu0 %vm1057_vm1, %v5947_v18  ;;  %v4103_v47 = vpack.c.bf16 %v1669_v43, %v1668_v42  ;;  %v1671_v49 = vld [vmem:[#allocation14 + $0x18] sm:$0xff]  ;;  %v1354_v52 = vld [vmem:[#allocation11 + $0x68] sm:$0xff]  ;;  %v1355_v57 = vld [vmem:[#allocation11 + $0x70] sm:$0xff]  ;;  %p5041_p9 = por %p5040_p1, %p5039_p5 }
 0x2c7   : > { %4080 = vmatpush3.bf16.msra.mxu0 %v4079_v20  ;;  %4063 = vmatprep.subr.bf16.mxu1 %v5181_v0  ;;  %v1353_v51 = vld [vmem:[#allocation11 + $0x60] sm:$0xff]  ;;  %v4106_v53 = vpack.c.bf16 %v1671_v49, %v1670_v48  ;;  %v1677_v55 = vld [vmem:[#allocation14 + $0x48] sm:$0xff]  ;;  %v1356_v58 = vld [vmem:[#allocation11 + $0x78] sm:$0xff] }
 0x2c8   : > { %4081 = vmatprep.subr.bf16.mxu0 %v5181_v0  ;;  %3840 = vmatprep.mubr.msk.f32.mxu1 %vm5182_vm0, %v5183_v1  ;;  %v1676_v54 = vld [vmem:[#allocation14 + $0x40] sm:$0xff]  ;;  %v4097_v56 = vpack.c.bf16 %v1354_v52, %v1353_v51  ;;  %v4100_v60 = vpack.c.bf16 %v1356_v58, %v1355_v57  ;;  %v1678_v61 = vld [vmem:[#allocation14 + $0x50] sm:$0xff]  ;;  %v1679_v62 = vld [vmem:[#allocation14 + $0x58] sm:$0xff]  ;;  %p5042_p10 = pnand %p5041_p9, %p5035_p2 }
 0x2c9   : > { %3873 = vmatprep.mubr.msk.f32.mxu0 %vm5182_vm0, %v5183_v1  ;;  %v4115_v59 = vpack.c.bf16 %v1677_v55, %v1676_v54  ;;  %v4118_v63 = vpack.c.bf16 %v1679_v62, %v1678_v61  ;;  %v1672_v2 = vld [vmem:[#allocation14 + $0x20] sm:$0xff]  ;;  %v1673_v3 = vld [vmem:[#allocation14 + $0x28] sm:$0xff]  ;;  %v1674_v5 = vld [vmem:[#allocation14 + $0x30] sm:$0xff] }
 0x2ca   : > { %4065 = vmatpush3.bf16.msra.mxu1 %v4064_v25  ;;  %v4109_v4 = vpack.c.bf16 %v1673_v3, %v1672_v2  ;;  %v1675_v6 = vld [vmem:[#allocation14 + $0x38] sm:$0xff]  ;;  %v1680_v8 = vld [vmem:[#allocation14 + $0x60] sm:$0xff]  ;;  %v1681_v9 = vld [vmem:[#allocation14 + $0x68] sm:$0xff] }
 0x2cb   : > { %4083 = vmatpush3.bf16.msra.mxu0 %v4082_v26  ;;  %4072 = vmatprep.subr.bf16.mxu1 %v5181_v0  ;;  %v4112_v7 = vpack.c.bf16 %v1675_v6, %v1674_v5  ;;  %v4121_v10 = vpack.c.bf16 %v1681_v9, %v1680_v8  ;;  %v1682_v11 = vld [vmem:[#allocation14 + $0x70] sm:$0xff]  ;;  %v1683_v12 = vld [vmem:[#allocation14 + $0x78] sm:$0xff]  ;;  %v3678_v37 = vld [vmem:[#allocation16] ss:$0 sm:$0xff] }
 0x2cc   : > { %4090 = vmatprep.subr.bf16.mxu0 %v5181_v0  ;;  %v4124_v13 = vpack.c.bf16 %v1683_v12, %v1682_v11  ;;  %v3670_v19 = vld [vmem:[#allocation13] ss:$0 sm:$0xff]  ;;  %v3672_v27 = vld [vmem:[#allocation13 + $0x2] ss:$0 sm:$0xff]  ;;  %v3671_v35 = vld [vmem:[#allocation13 + $0x1] ss:$0 sm:$0xff] }
 0x2cd   : > { %3841 = vmatmul.mubr.msk.f32.vlgmr.msra.gmra.mrb[2].mxu1 %vm1057_vm1, %v5947_v18  ;;  %v3673_v45 = vld [vmem:[#allocation13 + $0x3] ss:$0 sm:$0xff]  ;;  %v1994_v2 = vld [vmem:[%s5899_s17 + $0x10] sm:$0xff]  ;;  %v1995_v12 = vld [vmem:[%s5899_s17 + $0x18] sm:$0xff] }
 0x2ce   : > { %3874 = vmatmul.mubr.msk.f32.vlgmr.msra.gmra.mrb[2].mxu0 %vm1057_vm1, %v5964_v32  ;;  %4074 = vmatpush3.bf16.msra.mxu1 %v4073_v31  ;;  %v3664_v31 = vld [vmem:[#allocation10 + $0x2] ss:$0 sm:$0xff] }
 0x2cf   : > { %4092 = vmatpush3.bf16.msra.mxu0 %v4091_v33  ;;  %4075 = vmatprep.subr.bf16.mxu1 %v5181_v0 }
 0x2d0   : > { %4093 = vmatprep.subr.bf16.mxu0 %v5181_v0  ;;  %3862 = vmatprep.mubr.msk.f32.mxu1 %vm5182_vm0, %v5183_v1 }
 0x2d1   : > { %3895 = vmatprep.mubr.msk.f32.mxu0 %vm5182_vm0, %v5183_v1 }
 0x2d2   : > { %4077 = vmatpush3.bf16.msra.mxu1 %v4076_v38  ;;  %v3663_v38 = vld [vmem:[#allocation10 + $0x1] ss:$0 sm:$0xff] }
 0x2d3   : > { %4095 = vmatpush3.bf16.msra.mxu0 %v4094_v39  ;;  %4084 = vmatprep.subr.bf16.mxu1 %v5181_v0 }
 0x2d4   : > { %4102 = vmatprep.subr.bf16.mxu0 %v5181_v0 }
 0x2d5   : > { %3863 = vmatmul.mubr.msk.f32.vlgmr.msra.gmra.mrb[4].mxu1 %vm1057_vm1, %v5947_v18 }
 0x2d6   : > { %3896 = vmatmul.mubr.msk.f32.vlgmr.msra.gmra.mrb[4].mxu0 %vm1057_vm1, %v5964_v32  ;;  %4086 = vmatpush3.bf16.msra.mxu1 %v4085_v44 }
 0x2d7   : > { %4087 = vmatprep.subr.bf16.mxu1 %v5181_v0  ;;  %3884 = vmatprep.mubr.msk.f32.mxu1 %vm5182_vm0, %v5183_v1 }
 0x2d8   : > { %4104 = vmatpush3.bf16.msra.mxu0 %v4103_v47  ;;  %3917 = vmatprep.mubr.msk.f32.mxu0 %vm5182_vm0, %v5183_v1  ;;  %v3665_v47 = vld [vmem:[#allocation10 + $0x3] ss:$0 sm:$0xff] }
 0x2d9   : > { %4105 = vmatprep.subr.bf16.mxu0 %v5181_v0 }
 0x2da   : > { %4089 = vmatpush3.bf16.msra.mxu1 %v4088_v50 }
 0x2db   : > { %4096 = vmatprep.subr.bf16.mxu1 %v5181_v0 }
 0x2dc   : > { %4107 = vmatpush3.bf16.msra.mxu0 %v4106_v53  ;;  %v3679_v53 = vld [vmem:[#allocation16 + $0x1] ss:$0 sm:$0xff] }
 0x2dd   : > { %3885 = vmatmul.mubr.msk.f32.vlgmr.msra.gmra.mrb[6].mxu1 %vm1057_vm1, %v5964_v32  ;;  %4114 = vmatprep.subr.bf16.mxu0 %v5181_v0 }
 0x2de   : > { %4098 = vmatpush3.bf16.msra.mxu1 %v4097_v56  ;;  %3906 = vmatprep.mubr.msk.f32.mxu1 %vm5182_vm0, %v5183_v1 }
 0x2df   : > { %4099 = vmatprep.subr.bf16.mxu1 %v5181_v0  ;;  %3918 = vmatmul.mubr.msk.f32.vlgmr.msra.gmra.mrb[6].mxu0 %vm1057_vm1, %v5964_v32 }
 0x2e0   : > { %4116 = vmatpush3.bf16.msra.mxu0 %v4115_v59  ;;  %3939 = vmatprep.mubr.msk.f32.mxu0 %vm5182_vm0, %v5183_v1  ;;  %v1992_v59 = vld [vmem:[%s5899_s17] sm:$0xff] }
 0x2e1   : > { %4117 = vmatprep.subr.bf16.mxu0 %v5181_v0 }
 0x2e2   : > { %4101 = vmatpush3.bf16.msra.mxu1 %v4100_v60 }
 0x2e3   : > { %4108 = vmatprep.subr.bf16.mxu1 %v5181_v0 }
 0x2e4   : > { %4119 = vmatpush3.bf16.msra.mxu0 %v4118_v63 }
 0x2e5   : > { %3907 = vmatmul.mubr.msk.f32.vlgmr.msra.gmra.mrb[8].mxu1 %vm1057_vm1, %v5964_v32  ;;  %3953 = vmatprep.subr.mxu0 %v5183_v1 }
 0x2e6   : > { %3928 = vmatprep.mubr.msk.f32.mxu1 %vm5182_vm0, %v5183_v1  ;;  %4110 = vmatpush3.bf16.msra.mxu1 %v4109_v4 }
 0x2e7   : > { %4111 = vmatprep.subr.bf16.mxu1 %v5181_v0  ;;  %3940 = vmatmul.mubr.msk.f32.vlgmr.msra.gmra.mrb[8].mxu0 %vm1057_vm1, %v5964_v32 }
 0x2e8   : > { %3955 = vmatprep.mubr.msk.f32.mxu0 %vm5182_vm0, %v5183_v1 }
 0x2ea   : > { %4113 = vmatpush3.bf16.msra.mxu1 %v4112_v7  ;;  %v1993_v7 = vld [vmem:[%s5899_s17 + $0x8] sm:$0xff] }
 0x2eb   : > { %4120 = vmatprep.subr.bf16.mxu1 %v5181_v0 }
 0x2ed   : > { %3929 = vmatmul.mubr.msk.f32.vlgmr.msra.gmra.mrb[10].mxu1 %vm1057_vm1, %v5964_v32 }
 0x2ee   : > { %4122 = vmatpush3.bf16.msra.mxu1 %v4121_v10  ;;  %3950 = vmatprep.mubr.msk.f32.mxu1 %vm5182_vm0, %v5183_v1 }
 0x2ef   : > { %4123 = vmatprep.subr.bf16.mxu1 %v5181_v0 }
 0x2f2   : > { %4125 = vmatpush3.bf16.msra.mxu1 %v4124_v13 }
 0x2f3   : > { %3958 = vmatprep.subr.mxu1 %v5183_v1 }
 0x2f5   : > { %3951 = vmatmul.mubr.msk.f32.vlgmr.msra.gmra.mrb[12].mxu1 %vm1057_vm1, %v5964_v32 }
 0x2f6   : > { %3960 = vmatprep.mubr.msk.f32.mxu1 %vm5182_vm0, %v5183_v1 }
 0x398   : > { %v1127_v14 = vpop.f32.mrb[0].mxu1 }
 0x399   : > { %v3831_v15 = vpop.f32.mrb[1].mxu1  ;;  %v1267_v16 = vpop.f32.mrb[0].mxu0  ;;  %v1128_v26 = vadd.f32 %v3662_v23, %v1127_v14 }
 0x39a   : > { %v3853_v17 = vpop.f32.mrb[1].mxu0  ;;  %v1268_v34 = vadd.f32 %v3664_v31, %v1267_v16 }
 0x3a0   : > { %v1197_v20 = vpop.f32.mrb[2].mxu1 }
 0x3a1   : > { %v1454_v21 = vpop.f32.mrb[2].mxu0  ;;  %v3842_v22 = vpop.f32.mrb[3].mxu1  ;;  %v1198_v44 = vadd.f32 %v3663_v38, %v1197_v20 }
 0x3a2   : > { %v1455_v24 = vadd.f32 %v3670_v19, %v1454_v21  ;;  %v3875_v25 = vpop.f32.mrb[3].mxu0 }
 0x3a4   : > { %3954 = vmatpush3.xpose.msk.msra.mxu0 %vm1996_vm2, %v1455_v24 }
 0x3a5   : > { %3963 = vmatprep.subr.mxu0 %v5183_v1 }
 0x3a7   : > { %3956 = vmatmul.mubr.msk.f32.vlgmr.msra.gmra.mrb[10].mxu0 %vm1996_vm2, %v1128_v26 }
 0x3a8   : > { %v1337_v28 = vpop.f32.mrb[4].mxu1  ;;  %3965 = vmatprep.mubr.msk.f32.mxu0 %vm5182_vm0, %v5183_v1 }
 0x3a9   : > { %v1594_v29 = vpop.f32.mrb[4].mxu0  ;;  %v3864_v30 = vpop.f32.mrb[5].mxu1  ;;  %v1338_v50 = vadd.f32 %v3665_v47, %v1337_v28 }
 0x3aa   : > { %v1595_v32 = vadd.f32 %v3672_v27, %v1594_v29  ;;  %v3897_v33 = vpop.f32.mrb[5].mxu0 }
 0x3ac   : > { %3964 = vmatpush3.xpose.msk.msra.mxu0 %vm1996_vm2, %v1595_v32 }
 0x3ad   : > { %3973 = vmatprep.subr.mxu0 %v5183_v1 }
 0x3af   : > { %3966 = vmatmul.mubr.msk.f32.vlgmr.msra.gmra.mrb[12].mxu0 %vm1996_vm2, %v1268_v34 }
 0x3b0   : > { %v1524_v36 = vpop.f32.mrb[6].mxu1  ;;  %3975 = vmatprep.mubr.msk.f32.mxu0 %vm5182_vm0, %v5183_v1 }
 0x3b1   : > { %v1525_v39 = vadd.f32 %v3671_v35, %v1524_v36  ;;  %v3886_v40 = vpop.f32.mrb[7].mxu1 }
 0x3b2   : > { %v1778_v41 = vpop.f32.mrb[6].mxu0  ;;  %v3680_v40 = vld [vmem:[#allocation16 + $0x2] ss:$0 sm:$0xff] }
 0x3b3   : > { %3959 = vmatpush3.xpose.msk.msra.mxu1 %vm1996_vm2, %v1525_v39  ;;  %v1779_v42 = vadd.f32 %v3678_v37, %v1778_v41  ;;  %v3919_v43 = vpop.f32.mrb[7].mxu0 }
 0x3b4   : > { %3968 = vmatprep.subr.mxu1 %v5183_v1 }
 0x3b5   : > { %3974 = vmatpush3.msra.mxu0 %v1779_v42 }
 0x3b6   : > { %3961 = vmatmul.mubr.msk.f32.vlgmr.msra.gmra.mrb[14].mxu1 %vm1996_vm2, %v1198_v44  ;;  %3983 = vmatprep.subr.mxu0 %v5183_v1 }
 0x3b7   : > { %3970 = vmatprep.mubr.msk.f32.mxu1 %vm5182_vm0, %v5183_v1 }
 0x3b8   : > { %v1664_v46 = vpop.f32.mrb[8].mxu1 }
 0x3b9   : > { %v1665_v48 = vadd.f32 %v3673_v45, %v1664_v46  ;;  %v3908_v49 = vpop.f32.mrb[9].mxu1 }
 0x3ba   : > { %v6044_v51 = vpop.f32.mrb[8].mxu0 }
 0x3bb   : > { %3969 = vmatpush3.xpose.msk.msra.mxu1 %vm1996_vm2, %v1665_v48  ;;  %v3941_v52 = vpop.f32.mrb[9].mxu0  ;;  %v1919_v43 = vadd.f32 %v3680_v40, %v6044_v51  ;;  %v3681_v48 = vld [vmem:[#allocation16 + $0x3] ss:$0 sm:$0xff] }
 0x3bc   : > { %3978 = vmatprep.subr.mxu1 %v5183_v1 }
 0x3be   : > { %3971 = vmatmul.mubr.msk.f32.vlgmr.msra.gmra.mrb[16].mxu1 %vm1996_vm2, %v1338_v50 }
 0x3bf   : > { %3980 = vmatprep.mubr.msk.f32.mxu1 %vm5182_vm0, %v5183_v1 }
 0x3c0   : > { %v1848_v54 = vpop.f32.mrb[10].mxu1 }
 0x3c1   : > { %v1849_v55 = vadd.f32 %v3679_v53, %v1848_v54  ;;  %v3930_v56 = vpop.f32.mrb[11].mxu1  ;;  %v2637_v54 = vld [vmem:[#allocation17] sm:$0xff] }
 0x3c2   : > { %v2639_v56 = vld [vmem:[#allocation17 + $0x10] sm:$0xff] }
 0x3c3   : > { %3979 = vmatpush3.msra.mxu1 %v1849_v55  ;;  %v2638_v55 = vld [vmem:[#allocation17 + $0x8] sm:$0xff] }
 0x3c4   : > { %3988 = vmatprep.subr.mxu1 %v5183_v1 }
 0x3c8   : > { %v6047_v57 = vpop.f32.mrb[12].mxu1 }
 0x3c9   : > { %v3952_v58 = vpop.f32.mrb[13].mxu1  ;;  %v1989_v51 = vadd.f32 %v3681_v48, %v6047_v57  ;;  %v3072_v48 = vld [vmem:[#allocation26 + $0x18] sm:$0xff] }
 0x47a   : > { %v2069_v60 = vpop.f32.mrb[10].mxu0 }
 0x47b   : > { %v2070_v61 = vadd.f32 %v2069_v60, %v1992_v59  ;;  %v3957_v62 = vpop.f32.mrb[11].mxu0 }
 0x47d   : > { %v2301_v63 = vsel %vm1996_vm2, %v2070_v61, -inf }
 0x47e   : > { %2302 = vmax.xlane.f32.xlu0 %v2301_v63 }
 0x482   : > { %v2221_v3 = vpop.f32.mrb[12].mxu0 }
 0x483   : > { %v2222_v4 = vadd.f32 %v2221_v3, %v1994_v2  ;;  %v3967_v5 = vpop.f32.mrb[13].mxu0 }
 0x484   : > { %v2955_v5 = vld [vmem:[#allocation20 + $0x8] sm:$0xff] }
 0x485   : > { %v2307_v6 = vsel %vm1996_vm2, %v2222_v4, -inf }
 0x486   : > { %2308 = vmax.xlane.f32.xlu1 %v2307_v6 }
 0x489   : > { %v2145_v8 = vpop.f32.mrb[14].mxu1 }
 0x48a   : > { %v2146_v9 = vadd.f32 %v2145_v8, %v1993_v7  ;;  %v3962_v10 = vpop.f32.mrb[15].mxu1  ;;  %v2956_v7 = vld [vmem:[#allocation20 + $0x10] sm:$0xff]  ;;  %v2957_v8 = vld [vmem:[#allocation20 + $0x18] sm:$0xff] }
 0x48c   : > { %v2304_v11 = vsel %vm1996_vm2, %v2146_v9, -inf }
 0x48d   : > { %2305 = vmax.xlane.f32.xlu0 %v2304_v11 }
 0x491   : > { %v2297_v13 = vpop.f32.mrb[16].mxu1 }
 0x492   : > { %v2298_v14 = vadd.f32 %v2297_v13, %v1995_v12  ;;  %v3972_v15 = vpop.f32.mrb[17].mxu1 }
 0x494   : > { %v2310_v16 = vsel %vm1996_vm2, %v2298_v14, -inf }
 0x495   : > { %2311 = vmax.xlane.f32.xlu1 %v2310_v16 }
 0x50b   : > { %v2303_v17 = vpop.xlane.xlu0 %2302 }
 0x50c   : > { %v2313_v19 = vsub.f32 %v2070_v61, %v2303_v17  ;;  %v2640_v61 = vld [vmem:[#allocation17 + $0x18] sm:$0xff] }
 0x50e   : > { %v2317_v20 = vmul.f32 1.442695, %v2313_v19 }
 0x510   : > { %4410 = vpow2.f32 %v2317_v20 }
 0x513   : > { %v2309_v21 = vpop.xlane.xlu1 %2308 }
 0x514   : > { %v2315_v22 = vsub.f32 %v2222_v4, %v2309_v21  ;;  %v2954_v4 = vld [vmem:[#allocation20] sm:$0xff] }
 0x515   : > { %v4127_v6 = vpack.c.bf16 %v2955_v5, %v2954_v4  ;;  %v3185_v5 = vld [vmem:[#allocation29 + $0x30] sm:$0xff] }
 0x516   : > { %v2321_v23 = vmul.f32 1.442695, %v2315_v22 }
 0x518   : > { %4412 = vpow2.f32 %v2321_v23 }
 0x51a   : > { %v4411_v24 = vpop.eup %4410  ;;  %v2306_v25 = vpop.xlane.xlu0 %2305 }
 0x51b   : > { %v2314_v26 = vsub.f32 %v2146_v9, %v2306_v25  ;;  %v2325_v27 = vsel %vm1996_vm2, %v4411_v24, 0.0  ;;  %v4130_v9 = vpack.c.bf16 %v2957_v8, %v2956_v7  ;;  %v3707_v8 = vld [vmem:[#allocation28] ss:$0 sm:$0xff] }
 0x51c   : > { %2326 = vadd.xlane.f32.xlu0 %v2325_v27 }
 0x51d   : > { %v2319_v28 = vmul.f32 1.442695, %v2314_v26 }
 0x51f   : > { %4414 = vpow2.f32 %v2319_v28 }
 0x522   : > { %v4413_v29 = vpop.eup %4412  ;;  %v2312_v30 = vpop.xlane.xlu1 %2311 }
 0x523   : > { %v2316_v31 = vsub.f32 %v2298_v14, %v2312_v30  ;;  %v2331_v32 = vsel %vm1996_vm2, %v4413_v29, 0.0 }
 0x524   : > { %2332 = vadd.xlane.f32.xlu0 %v2331_v32 }
 0x525   : > { %v2323_v33 = vmul.f32 1.442695, %v2316_v31 }
 0x527   : > { %4416 = vpow2.f32 %v2323_v33 }
 0x529   : > { %v4415_v34 = vpop.eup %4414 }
 0x52a   : > { %v2328_v35 = vsel %vm1996_vm2, %v4415_v34, 0.0 }
 0x52b   : > { %2329 = vadd.xlane.f32.xlu1 %v2328_v35 }
 0x531   : > { %v4417_v36 = vpop.eup %4416 }
 0x532   : > { %v2334_v37 = vsel %vm1996_vm2, %v4417_v36, 0.0 }
 0x533   : > { %2335 = vadd.xlane.f32.xlu1 %v2334_v37 }
 0x5a9   : > { %v2327_v38 = vpop.xlane.xlu0 %2326 }
 0x5aa   : > { %4418 = vrcp.f32 %v2327_v38 }
 0x5b1   : > { %v2333_v39 = vpop.xlane.xlu0 %2332 }
 0x5b2   : > { %4420 = vrcp.f32 %v2333_v39 }
 0x5b4   : > { %v4419_v41 = vpop.eup %4418 }
 0x5b5   : > { %v2341_v42 = vmul.f32 %v4419_v41, %v4411_v24  ;;  %v3702_v24 = vld [vmem:[#allocation19] ss:$0 sm:$0xff] }
 0x5b7   : > { %3976 = vmatmul.mubr.msk.f32.vlgmr.msra.gmra.mrb[14].mxu0 %vm1996_vm2, %v2341_v42 }
 0x5b8   : > { %3984 = vmatpush3.msra.mxu0 %v1919_v43  ;;  %v2330_v44 = vpop.xlane.xlu1 %2329  ;;  %3985 = vmatprep.mubr.msk.f32.mxu0 %vm5182_vm0, %v5183_v1 }
 0x5b9   : > { %4422 = vrcp.f32 %v2330_v44  ;;  %3993 = vmatprep.subr.mxu0 %v5183_v1 }
 0x5bc   : > { %v4421_v45 = vpop.eup %4420 }
 0x5bd   : > { %v2343_v46 = vmul.f32 %v4421_v45, %v4413_v29  ;;  %v3069_v45 = vld [vmem:[#allocation26] sm:$0xff] }
 0x5bf   : > { %3986 = vmatmul.mubr.msk.f32.vlgmr.msra.gmra.mrb[16].mxu0 %vm1996_vm2, %v2343_v46  ;;  %v3070_v46 = vld [vmem:[#allocation26 + $0x8] sm:$0xff] }
 0x5c0   : > { %v2336_v47 = vpop.xlane.xlu1 %2335  ;;  %3995 = vmatprep.mubr.msk.f32.mxu0 %vm5182_vm0, %v5183_v1  ;;  %3994 = vmatpush3.msra.mxu0 %v2637_v54 }
 0x5c1   : > { %4424 = vrcp.f32 %v2336_v47  ;;  %4003 = vmatprep.subr.mxu0 %v5183_v1  ;;  %v4133_v47 = vpack.c.bf16 %v3070_v46, %v3069_v45 }
 0x5c3   : > { %v4423_v49 = vpop.eup %4422 }
 0x5c4   : > { %v2342_v50 = vmul.f32 %v4423_v49, %v4415_v34  ;;  %v3703_v34 = vld [vmem:[#allocation22] ss:$0 sm:$0xff] }
 0x5c6   : > { %3981 = vmatmul.mubr.msk.f32.vlgmr.msra.gmra.mrb[18].mxu1 %vm1996_vm2, %v2342_v50 }
 0x5c7   : > { %3989 = vmatpush3.msra.mxu1 %v1989_v51  ;;  %3990 = vmatprep.mubr.msk.f32.mxu1 %vm5182_vm0, %v5183_v1 }
 0x5c8   : > { %3998 = vmatprep.subr.mxu1 %v5183_v1 }
 0x5cb   : > { %v4425_v52 = vpop.eup %4424 }
 0x5cc   : > { %v2344_v53 = vmul.f32 %v4425_v52, %v4417_v36 }
 0x5ce   : > { %3991 = vmatmul.mubr.msk.f32.vlgmr.msra.gmra.mrb[20].mxu1 %vm1996_vm2, %v2344_v53  ;;  %v3705_v53 = vld [vmem:[#allocation23] ss:$0 sm:$0xff] }
 0x5cf   : > { %4000 = vmatprep.mubr.msk.f32.mxu1 %vm5182_vm0, %v5183_v1  ;;  %3999 = vmatpush3.msra.mxu1 %v2638_v55  ;;  %v3706_v55 = vld [vmem:[#allocation25] ss:$0 sm:$0xff] }
 0x5d0   : > { %4008 = vmatprep.subr.mxu1 %v5183_v1 }
 0x68a   : > { %v2414_v57 = vpop.f32.mrb[14].mxu0 }
 0x68b   : > { %v3977_v58 = vpop.f32.mrb[15].mxu0  ;;  %3996 = vmatmul.mubr.msk.f32.vlgmr.msra.gmra.mrb[18].mxu0 %vm1996_vm2, %v2414_v57 }
 0x68c   : > { %4004 = vmatpush3.msra.mxu0 %v2639_v56  ;;  %4005 = vmatprep.mubr.msk.f32.mxu0 %vm5182_vm0, %v5183_v1  ;;  %v3179_v58 = vld [vmem:[#allocation29] sm:$0xff] }
 0x68d   : > { %4126 = vmatprep.subr.bf16.mxu0 %v5181_v0 }
 0x692   : > { %v2560_v59 = vpop.f32.mrb[16].mxu0 }
 0x693   : > { %v3987_v60 = vpop.f32.mrb[17].mxu0  ;;  %4006 = vmatmul.mubr.msk.f32.vlgmr.msra.gmra.mrb[20].mxu0 %vm1996_vm2, %v2560_v59  ;;  %v3180_v59 = vld [vmem:[#allocation29 + $0x8] sm:$0xff] }
 0x694   : > { %4021 = vmatprep.mubr.msk.f32.mxu0 %vm5182_vm0, %v5183_v1  ;;  %4128 = vmatpush3.bf16.msra.mxu0 %v4127_v6  ;;  %v4139_v60 = vpack.c.bf16 %v3180_v59, %v3179_v58  ;;  %v3186_v6 = vld [vmem:[#allocation29 + $0x38] sm:$0xff] }
 0x695   : > { %4129 = vmatprep.subr.bf16.mxu0 %v5181_v0  ;;  %v4148_v7 = vpack.c.bf16 %v3186_v6, %v3185_v5 }
 0x698   : > { %4131 = vmatpush3.bf16.msra.mxu0 %v4130_v9 }
 0x699   : > { %v2487_v62 = vpop.f32.mrb[18].mxu1  ;;  %4138 = vmatprep.subr.bf16.mxu0 %v5181_v0 }
 0x69a   : > { %v3982_v63 = vpop.f32.mrb[19].mxu1  ;;  %4001 = vmatmul.mubr.msk.f32.vlgmr.msra.gmra.mrb[22].mxu1 %vm1996_vm2, %v2487_v62  ;;  %v3182_v62 = vld [vmem:[#allocation29 + $0x18] sm:$0xff] }
 0x69b   : > { %4009 = vmatpush3.msra.mxu1 %v2640_v61  ;;  %4010 = vmatprep.mubr.msk.f32.mxu1 %vm5182_vm0, %v5183_v1  ;;  %v3181_v61 = vld [vmem:[#allocation29 + $0x10] sm:$0xff] }
 0x69c   : > { %4132 = vmatprep.subr.bf16.mxu1 %v5181_v0  ;;  %v4142_v63 = vpack.c.bf16 %v3182_v62, %v3181_v61 }
 0x6a1   : > { %v2633_v2 = vpop.f32.mrb[20].mxu1 }
 0x6a2   : > { %v3992_v3 = vpop.f32.mrb[21].mxu1  ;;  %4011 = vmatmul.mubr.msk.f32.vlgmr.msra.gmra.mrb[24].mxu1 %vm1996_vm2, %v2633_v2  ;;  %v3183_v2 = vld [vmem:[#allocation29 + $0x20] sm:$0xff] }
 0x6a3   : > { %4032 = vmatprep.mubr.msk.f32.mxu1 %vm5182_vm0, %v5183_v1  ;;  %4134 = vmatpush3.bf16.msra.mxu1 %v4133_v47  ;;  %v3184_v3 = vld [vmem:[#allocation29 + $0x28] sm:$0xff] }
 0x6a4   : > { %4135 = vmatprep.subr.bf16.mxu1 %v5181_v0  ;;  %v4145_v4 = vpack.c.bf16 %v3184_v3, %v3183_v2 }
 0x75e   : > { %v2710_v10 = vpop.f32.mrb[18].mxu0 }
 0x75f   : > { %v3997_v11 = vpop.f32.mrb[19].mxu0  ;;  %v2933_v15 = vsel %vm1057_vm1, %v2710_v10, 0.0 }
 0x766   : > { %v2856_v12 = vpop.f32.mrb[20].mxu0 }
 0x767   : > { %v4007_v13 = vpop.f32.mrb[21].mxu0  ;;  %v2936_v20 = vsel %vm1057_vm1, %v2856_v12, 0.0 }
 0x76d   : > { %v2783_v14 = vpop.f32.mrb[22].mxu1 }
 0x76e   : > { %v2934_v16 = vsel %vm1057_vm1, %v2783_v14, 0.0  ;;  %v4002_v17 = vpop.f32.mrb[23].mxu1 }
 0x76f   : > { %v2935_v19 = vadd.f32 %v2934_v16, %v2933_v15 }
 0x771   : > { %v2937_v21 = vadd.f32 %v2936_v20, %v2935_v19 }
 0x775   : > { %v2929_v22 = vpop.f32.mrb[24].mxu1 }
 0x776   : > { %v2938_v23 = vsel %vm1057_vm1, %v2929_v22, 0.0  ;;  %v4012_v25 = vpop.f32.mrb[25].mxu1 }
 0x777   : > { %v2939_v26 = vadd.f32 %v2938_v23, %v2937_v21 }
 0x779   : > { %v2947_v27 = vadd.f32 %v3702_v24, %v2939_v26 }
 0x77b   : > { %v2948_v28 = vsub.f32 0.0, %v2947_v27 }
 0x77d   : > { %v2949_v29 = vmul.f32 1.442695, %v2948_v28 }
 0x77f   : > { %4426 = vpow2.f32 %v2949_v29 }
 0x789   : > { %v4427_v30 = vpop.eup %4426 }
 0x78a   : > { %v2951_v31 = vadd.f32 1.0, %v4427_v30 }
 0x78c   : > { %4428 = vrcp.f32 %v2951_v31 }
 0x796   : > { %v4429_v32 = vpop.eup %4428 }
 0x797   : > { %v2953_v33 = vmul.f32 %v4429_v32, %v2947_v27 }
 0x799   : > { %4022 = vmatmul.mubr.msk.f32.vlgmr.msra.gmra.mrb[22].mxu0 %vm1057_vm1, %v2953_v33 }
 0x79a   : > { %4051 = vmatprep.mubr.msk.f32.mxu0 %vm5182_vm0, %v5183_v1  ;;  %v3071_v1 = vld [vmem:[#allocation26 + $0x10] sm:$0xff]  ;;  %4140 = vmatpush3.bf16.msra.mxu0 %v4139_v60 }
 0x79b   : > { %v4136_v49 = vpack.c.bf16 %v3072_v48, %v3071_v1  ;;  %4141 = vmatprep.subr.bf16.mxu0 %v5181_v0 }
 0x79d   : > { %4137 = vmatpush3.bf16.msra.mxu1 %v4136_v49 }
 0x79e   : > { %4143 = vmatpush3.bf16.msra.mxu0 %v4142_v63 }
 0x79f   : > { %4144 = vmatprep.subr.bf16.mxu0 %v5181_v0 }
 0x7a2   : > { %4146 = vmatpush3.bf16.msra.mxu0 %v4145_v4 }
 0x7a3   : > { %4147 = vmatprep.subr.bf16.mxu0 %v5181_v0 }
 0x7a6   : > { %4149 = vmatpush3.bf16.msra.mxu0 %v4148_v7 }
 0x86c   : > { %v3034_v35 = vpop.f32.mrb[22].mxu0 }
 0x86d   : > { %v3035_v36 = vadd.f32 %v3703_v34, %v3034_v35  ;;  %v4023_v37 = vpop.f32.mrb[23].mxu0 }
 0x86e   : > { %v3709_v37 = vld [vmem:[#allocation31] ss:$0 sm:$0xff] }
 0x86f   : > { %v3038_v38 = vadd.f32 %v3035_v36, %v5947_v18 }
 0x871   : > { %v3041_v39 = vsel %vm1057_vm1, %v3038_v38, 0.0 }
 0x872   : > { %3042 = vadd.xlane.f32.xlu0 %v3041_v39 }
 0x8ff   : > { %v3043_v40 = vpop.xlane.xlu0 %3042 }
 0x900   : > { %v3045_v41 = vmul.f32 0.03125, %v3043_v40 }
 0x902   : > { %v3046_v42 = vsub.f32 %v3038_v38, %v3045_v41 }
 0x904   : > { %v3047_v43 = vmul.f32 %v3046_v42, %v3046_v42 }
 0x906   : > { %v3048_v44 = vsel %vm1057_vm1, %v3047_v43, 0.0 }
 0x907   : > { %3049 = vadd.xlane.f32.xlu1 %v3048_v44 }
 0x994   : > { %v3050_v18 = vpop.xlane.xlu1 %3049 }
 0x995   : > { %v3051_v50 = vmul.f32 0.03125, %v3050_v18 }
 0x997   : > { %v3052_v51 = vadd.f32 1e-06, %v3051_v50  ;;  %v3711_v50 = vld [vmem:[#allocation32] ss:$0 sm:$0xff] }
 0x999   : > { %4430 = vrsqrt.f32 %v3052_v51 }
 0x9a3   : > { %v4431_v52 = vpop.eup %4430 }
 0x9a4   : > { %v3054_v54 = vmul.f32 %v4431_v52, %v3046_v42  ;;  %v3712_v52 = vld [vmem:[#allocation34] ss:$0 sm:$0xff] }
 0x9a6   : > { %v3061_v56 = vmul.f32 %v3705_v53, %v3054_v54 }
 0x9a8   : > { %v3068_v57 = vadd.f32 %v3706_v55, %v3061_v56 }
 0x9aa   : > { %4033 = vmatmul.mubr.msk.f32.vlgmr.msra.gmra.mrb[26].mxu1 %vm1057_vm1, %v3068_v57 }
 0xa7d   : > { %v3149_v9 = vpop.f32.mrb[26].mxu1 }
 0xa7e   : > { %v3150_v10 = vadd.f32 %v3707_v8, %v3149_v9  ;;  %v4034_v11 = vpop.f32.mrb[27].mxu1 }
 0xa80   : > { %v3154_v12 = vmul.f32 0.70710677, %v3150_v10  ;;  %v3153_v34 = vmul.f32 0.5, %v3150_v10 }
 0xa82   : > { %v3155_v13 = vand.u32 2147483647, %v3154_v12  ;;  %vm3174_vm3 = vcmp.ge.f32.partialorder %v3154_v12, 0.0 }
 0xa84   : > { %v3156_v14 = vmul.f32 0.3275911, %v3155_v13  ;;  %v3168_v16 = vsub.f32 0.0, %v3155_v13 }
 0xa86   : > { %v3157_v15 = vadd.f32 1.0, %v3156_v14  ;;  %v3169_v19 = vmul.f32 %v3168_v16, %v3155_v13 }
 0xa88   : > { %4432 = vrcp.f32 %v3157_v15  ;;  %v3170_v22 = vmul.f32 1.442695, %v3169_v19 }
 0xa8a   : > { %4434 = vpow2.f32 %v3170_v22 }
 0xa92   : > { %v4433_v17 = vpop.eup %4432 }
 0xa93   : > { %v3159_v20 = vmul.f32 1.0614054, %v4433_v17 }
 0xa94   : > { %v4435_v29 = vpop.eup %4434 }
 0xa95   : > { %v3160_v21 = vadd.f32 -1.4531521, %v3159_v20 }
 0xa97   : > { %v3161_v0 = vmul.f32 %v4433_v17, %v3160_v21 }
 0xa99   : > { %v3162_v23 = vadd.f32 1.4214138, %v3161_v0 }
 0xa9b   : > { %v3163_v24 = vmul.f32 %v4433_v17, %v3162_v23 }
 0xa9d   : > { %v3164_v25 = vadd.f32 -0.28449672, %v3163_v24 }
 0xa9f   : > { %v3165_v26 = vmul.f32 %v4433_v17, %v3164_v25 }
 0xaa1   : > { %v3166_v27 = vadd.f32 0.2548296, %v3165_v26 }
 0xaa3   : > { %v3167_v28 = vmul.f32 %v4433_v17, %v3166_v27 }
 0xaa5   : > { %v3172_v30 = vmul.f32 %v4435_v29, %v3167_v28 }
 0xaa7   : > { %v3173_v31 = vsub.f32 1.0, %v3172_v30 }
 0xaa9   : > { %v3175_v32 = vsub.f32 0.0, %v3173_v31 }
 0xaab   : > { %v3176_v33 = vsel %vm3174_vm3, %v3173_v31, %v3175_v32 }
 0xaac   : > { %v3177_v35 = vadd.f32 1.0, %v3176_v33 }
 0xaae   : > { %v3178_v36 = vmul.f32 %v3177_v35, %v3153_v34 }
 0xab0   : > { %4052 = vmatmul.mubr.msk.f32.vlgmr.msra.gmra.mrb[24].mxu0 %vm3194_vm4, %v3178_v36 }
 0xb83   : > { %v3264_v38 = vpop.f32.mrb[24].mxu0 }
 0xb84   : > { %v3265_v39 = vadd.f32 %v3709_v37, %v3264_v38  ;;  %v4053_v40 = vpop.f32.mrb[25].mxu0 }
 0xb86   : > { %v3268_v41 = vadd.f32 %v3265_v39, %v3068_v57 }
 0xb88   : > { %v3271_v42 = vsel %vm1057_vm1, %v3268_v41, 0.0 }
 0xb89   : > { %3272 = vadd.xlane.f32.xlu0 %v3271_v42 }
 0xc16   : > { %v3273_v43 = vpop.xlane.xlu0 %3272 }
 0xc17   : > { %v3274_v44 = vmul.f32 0.03125, %v3273_v43 }
 0xc19   : > { %v3275_v45 = vsub.f32 %v3268_v41, %v3274_v44 }
 0xc1b   : > { %v3276_v46 = vmul.f32 %v3275_v45, %v3275_v45 }
 0xc1d   : > { %v3277_v47 = vsel %vm1057_vm1, %v3276_v46, 0.0 }
 0xc1e   : > { %3278 = vadd.xlane.f32.xlu1 %v3277_v47 }
 0xcab   : > { %v3279_v1 = vpop.xlane.xlu1 %3278 }
 0xcac   : > { %v3280_v48 = vmul.f32 0.03125, %v3279_v1 }
 0xcae   : > { %v3281_v49 = vadd.f32 1e-06, %v3280_v48 }
 0xcb0   : > { %4436 = vrsqrt.f32 %v3281_v49 }
 0xcba   : > { %v4437_v18 = vpop.eup %4436 }
 0xcbb   : > { %v3283_v51 = vmul.f32 %v4437_v18, %v3275_v45 }
 0xcbd   : > { %v3290_v53 = vmul.f32 %v3711_v50, %v3283_v51 }
 0xcbf   : > { %v3297_v54 = vadd.f32 %v3712_v52, %v3290_v53 }
 0xcc1   : > { %3298 = vst.msk [vmem:[%s1010_s27] sm:$0xff] %vm1057_vm1, %v3297_v54 }
 0xcc2   : > { %5045 = shalt.err (!%p5042_p10)
}
 0xcc3   : > { %s5046_s28 = scalar_lea.hbm %s6117_s6, 128  ;;  %s5050_s12 = scalar_lea.hbm %s6326_s8, 256 }
 0xcc4   : > { %p5047_p6 = scmp.ne.s32.totalorder %s6117_s6, %s5046_s28  ;;  %p5051_p3 = scmp.lt.u32.totalorder %s6117_s6, %s6326_s8 }
 0xcc5   : > { %p5052_p13 = scmp.lt.u32.totalorder %s5050_s12, %s5046_s28  ;;  %p5054_p7 = scmp.lt.u32.totalorder %s5046_s28, %s6117_s6 }
 0xcc6   : > { %p5048_p0 = pnand %p5047_p6, %p6327_p8 }
 0xcc7   : > { %p5053_p4 = por %p5052_p13, %p5051_p3 }
 0xcc8   : > { %p5049_p12 = pneg %p5048_p0 }
 0xcc9   : > { %p5055_p11 = por %p5054_p7, %p5053_p4 }
 0xccb   : > { %p5056_p2 = pnand %p5055_p11, %p5049_p12 }
 0xccd   : > { %5059 = shalt.err (!%p5056_p2)
}
 0xcce   : > { %4228 = dma.vmem_to_hbm [thread:$0]  (%p6327_p8), %s6119_s5, 128, %s6117_s6, %s3300_s26  }
 0xccf PF: > { %s6328_s17 = sld [smem:[#allocation54_spill]]  ;;  %s6329_s29 = sld [smem:[#allocation50_spill]] }
 0xcd0   : > { %s3326_s4 = sand.u32 1, %s5134_s2  }
 0xcd1   : > { %s3327_s27 = scalar_lea.sflag [#allocation4], %s3326_s4 }
 0xcd5   : > { %p6330_p5 = scmp.ne.s32.totalorder %s6328_s17, 0  ;;  %p6331_p1 = scmp.ge.s32.totalorder %s6329_s29, 2 }
 0xcd7   : > { %p4296_p9 = pnand %p6331_p1, %p6330_p5 }
 0xcd9   : > { %5129 = dma.done.wait (!%p4296_p9), %s3327_s27, 128  }
 0xcda   : > { %5131 = vsyncadd (!%p4296_p9), %s3327_s27, 4294967168  ;;  %s49_s28 = sadd.s32 1, %s6329_s29   ;;  %s6332_s19 = sld [smem:[#allocation48_spill]] }
 0xcdb   : > { %p46_p10 = scmp.ge.s32.totalorder %s49_s28, 4   ;;  %s6333_s26 = sld [smem:[#allocation53_spill]] }
 0xcdc   : > { %s6334_s23 = sld [smem:[#allocation52_spill]]  ;;  %s6335_s2 = smov %s5138_s25 }
 0xcdd   : > { %s6337_s27 = smov %s5150_s3  ;;  %48 = sbr.rel (!%p46_p10) target bundleno = 40 (0x28), region = 245 }
 0xce0   : > { %s6336_s25 = smov %s6332_s19 }
 0xce2   : > { %s6338_s3 = smov %s6334_s23 }
 0xce4   :  { %3332 = vsyncpa [#allocation3], 1 }
 0xce5   :  { %3334 = vsyncpa [#allocation3 + $0x1], 1 }
 0xce6   :  { %3335 = vsyncpa [#allocation6], 1 }
 0xce7   :  { %3337 = vsyncpa [#allocation6 + $0x1], 1 }
 0xce8   :  { %3338 = vsyncpa [#allocation9], 1 }
 0xce9   :  { %3339 = vsyncpa [#allocation12], 1 }
 0xcea   :  { %3340 = vsyncpa [#allocation15], 1 }
 0xceb   :  { %3341 = vsyncpa [#allocation18], 1 }
 0xcec   :  { %3342 = vsyncpa [#allocation21], 1 }
 0xced   :  { %3343 = vsyncpa [#allocation24], 1 }
 0xcee   :  { %3344 = vsyncpa [#allocation27], 1 }
 0xcef   :  { %3345 = vsyncpa [#allocation30], 1 }
 0xcf0   :  { %3346 = vsyncpa [#allocation33], 1 }
 0xcf1   :  { %3347 = vsyncpa [#allocation4], 1 }
 0xcf2   :  { %3349 = vsyncpa [#allocation4 + $0x1], 1 }

</bundles_post_ra>
